<compile_context>
chip_gen: v6e
topology: v6e:2x2x1
jax: 0.10.0
libtpu: 0.0.40
codegen_flags: <defaults>
</compile_context>

<pallas_src>
import functools

import jax
import jax.numpy as jnp
from jax import lax
from jax.experimental import pallas as pl
from jax.experimental.pallas import tpu as pltpu


def _round_up(x, m):
    return (x + m - 1) // m * m


# ----------------------------------------------------------------------------
# Conv GEMM kernel: (M, K) @ (K, N) with a fused BN-statistics epilogue.
# ----------------------------------------------------------------------------
def _conv_gemm_kernel(a_ref, b_ref, o_ref, s_ref, ss_ref):
    # Full-K block: one MXU pass per (i, j) tile, f32 accumulation, direct
    # store to the output block (no scratch accumulator, no pl.when).
    acc = jnp.dot(a_ref[...], b_ref[...], preferred_element_type=jnp.float32)
    o_ref[...] = acc
    # Fused BN-stats epilogue: per-channel partial sums over this M tile.
    # Written as 8-row (sublane-aligned) broadcast blocks so the stores obey
    # the (8, 128) rule and the i axis stays "parallel"; the tiny per-block
    # partials are reduced in the wrapper.
    csum = jnp.sum(acc, axis=0, keepdims=True)          # (1, tn)
    csumsq = jnp.sum(acc * acc, axis=0, keepdims=True)  # (1, tn)
    s_ref[...] = jnp.broadcast_to(csum, s_ref.shape)
    ss_ref[...] = jnp.broadcast_to(csumsq, ss_ref.shape)


def conv_gemm(a, b):
    """a: (M, K), b: (K, N) -> (out (M, N) f32, sum_c (N,), sumsq_c (N,)).

    * full-K block (tk == K): no K grid axis, no K zero-pad, weight tile
      (K, tn) bf16 stays VMEM-resident across the whole grid
    * bf16 MXU operands, f32 accumulation; N zero-padded to a multiple of 128
      (weight columns only) so every output store is a lane-dense vst
    * tm = 512 when M >= 1024 (>= 2 parallel i-tiles for v7x's two cores),
      otherwise a single full-M block
    * per-channel sum / sum-of-squares of the conv output come out of the
      epilogue, so training-mode BN needs no extra HBM passes for its stats
    """
    M, K = a.shape
    K2, N = b.shape
    assert K == K2

    Np = _round_up(N, 128)
    # 256-wide N tiles fill the v6e/v7x 2x256x256 MXU; 128 matches v5e exactly
    # (and is all this net presents at base width 16).
    tn = 256 if Np % 256 == 0 else 128
    tm = 512 if M >= 1024 else _round_up(M, 8)
    Mp = _round_up(M, tm)
    mi, nj = Mp // tm, Np // tn

    a = a.astype(jnp.bfloat16)
    if Mp != M:  # no-op for every conv in this net -> no extra HBM copy
        a = jnp.pad(a, ((0, Mp - M), (0, 0)))
    b = b.astype(jnp.bfloat16)
    if Np != N:  # tiny weight-only pad
        b = jnp.pad(b, ((0, 0), (0, Np - N)))

    out, s, ss = pl.pallas_call(
        _conv_gemm_kernel,
        out_shape=(
            jax.ShapeDtypeStruct((Mp, Np), jnp.float32),
            jax.ShapeDtypeStruct((mi * 8, Np), jnp.float32),
            jax.ShapeDtypeStruct((mi * 8, Np), jnp.float32),
        ),
        grid=(mi, nj),
        in_specs=[
            pl.BlockSpec((tm, K), lambda i, j: (i, 0)),
            pl.BlockSpec((K, tn), lambda i, j: (0, j)),
        ],
        out_specs=(
            pl.BlockSpec((tm, tn), lambda i, j: (i, j)),
            pl.BlockSpec((8, tn), lambda i, j: (i, j)),
            pl.BlockSpec((8, tn), lambda i, j: (i, j)),
        ),
        compiler_params=pltpu.CompilerParams(
            dimension_semantics=("parallel", "parallel")),
    )(a, b)

    sum_c = s.reshape(mi, 8, Np)[:, 0, :N].sum(axis=0)
    sumsq_c = ss.reshape(mi, 8, Np)[:, 0, :N].sum(axis=0)
    return out[:M, :N], sum_c, sumsq_c


# ----------------------------------------------------------------------------
# Convolution via im2col + fused-stats Pallas GEMM, and BN from those stats
# ----------------------------------------------------------------------------
def conv2d_gemm(x, w, stride=1):
    """x: (B, H, W, Cin) NHWC, w: (kh, kw, Cin, Cout), bias-free,
    padding = (k-1)//2 (PyTorch padding=1 for 3x3, 0 for 1x1).
    Returns (y, per-channel sum, per-channel sumsq) of the pre-BN output.
    TODO(synk): implicit GEMM instead of materialized im2col patches.
    """
    kh, kw, cin, cout = w.shape
    ph, pw = (kh - 1) // 2, (kw - 1) // 2
    B, H, W, _ = x.shape
    Ho = (H + 2 * ph - kh) // stride + 1
    Wo = (W + 2 * pw - kw) // stride + 1
    xp = x.astype(jnp.bfloat16)  # bf16 patches halve HBM traffic into the MXU
    if ph or pw:
        xp = jnp.pad(xp, ((0, 0), (ph, ph), (pw, pw), (0, 0)))
    if kh == 1 and kw == 1:
        patches = xp[:, ::stride, ::stride, :].reshape(B * Ho * Wo, cin)
    else:
        cols = []
        for dy in range(kh):
            for dx in range(kw):
                cols.append(xp[:, dy:dy + (Ho - 1) * stride + 1:stride,
                                  dx:dx + (Wo - 1) * stride + 1:stride, :])
        patches = jnp.concatenate(cols, axis=-1).reshape(
            B * Ho * Wo, kh * kw * cin)
    out, sum_c, sumsq_c = conv_gemm(patches, w.reshape(kh * kw * cin, cout))
    return out.reshape(B, Ho, Wo, cout), sum_c, sumsq_c


def bn_apply(x, sum_c, sumsq_c, g, b, eps=1e-5):
    """Training-mode BN (batch stats, biased variance) using the statistics
    produced by the conv GEMM epilogue; one fused XLA elementwise pass."""
    n = x.shape[0] * x.shape[1] * x.shape[2]
    mean = sum_c / n
    var = jnp.maximum(sumsq_c / n - mean * mean, 0.0)  # clamp fp cancellation
    scale = g * lax.rsqrt(var + eps)
    return x * scale + (b - mean * scale)


def basic_block(x, p, stride):
    h, s1, q1 = conv2d_gemm(x, p["conv1"], stride)
    h = jax.nn.relu(bn_apply(h, s1, q1, p["bn1_g"], p["bn1_b"]))
    h, s2, q2 = conv2d_gemm(h, p["conv2"], 1)
    h = bn_apply(h, s2, q2, p["bn2_g"], p["bn2_b"])
    if "conv_sc" in p:
        sc, s3, q3 = conv2d_gemm(x, p["conv_sc"], stride)
        sc = bn_apply(sc, s3, q3, p["bn_sc_g"], p["bn_sc_b"])
    else:
        sc = x
    return jax.nn.relu(h + sc)


def _conv_init(key, kh, kw, cin, cout):
    fan_in = kh * kw * cin
    return jax.random.normal(key, (kh, kw, cin, cout), jnp.float32) * (2.0 / fan_in) ** 0.5


def init_resnet_params(key, z_dim, base=16):
    keys = iter(jax.random.split(key, 64))
    params = {
        "conv1": _conv_init(next(keys), 3, 3, 3, base),
        "bn1_g": jnp.ones((base,), jnp.float32),
        "bn1_b": jnp.zeros((base,), jnp.float32),
    }
    cfg = [(base, 1), (2 * base, 2), (4 * base, 2), (8 * base, 2)]
    cin = base
    layers = []
    for cout, stride in cfg:
        blocks = []
        for bi in range(2):
            s = stride if bi == 0 else 1
            bp = {
                "conv1": _conv_init(next(keys), 3, 3, cin, cout),
                "bn1_g": jnp.ones((cout,), jnp.float32),
                "bn1_b": jnp.zeros((cout,), jnp.float32),
                "conv2": _conv_init(next(keys), 3, 3, cout, cout),
                "bn2_g": jnp.ones((cout,), jnp.float32),
                "bn2_b": jnp.zeros((cout,), jnp.float32),
            }
            if s != 1 or cin != cout:
                bp["conv_sc"] = _conv_init(next(keys), 1, 1, cin, cout)
                bp["bn_sc_g"] = jnp.ones((cout,), jnp.float32)
                bp["bn_sc_b"] = jnp.zeros((cout,), jnp.float32)
            blocks.append(bp)
            cin = cout
        layers.append(blocks)
    params["layers"] = layers
    params["fc_w"] = (
        jax.random.normal(next(keys), (8 * base, z_dim), jnp.float32)
        * (1.0 / (8 * base)) ** 0.5
    )
    params["fc_b"] = jnp.zeros((z_dim,), jnp.float32)
    return params


def resnet_forward(params, x_nchw):
    x = jnp.transpose(x_nchw, (0, 2, 3, 1))  # NCHW -> NHWC
    h, s0, q0 = conv2d_gemm(x, params["conv1"], 1)
    h = jax.nn.relu(bn_apply(h, s0, q0, params["bn1_g"], params["bn1_b"]))
    stage_strides = (1, 2, 2, 2)             # static (kept out of the pytree)
    for li, blocks in enumerate(params["layers"]):
        for bi, bp in enumerate(blocks):
            st = stage_strides[li] if bi == 0 else 1
            h = basic_block(h, bp, st)
    h = jnp.mean(h, axis=(1, 2))                          # global average pool
    # final fc: tiny (B, 8*base) x (8*base, z_dim) -> plain JAX (a sub-vreg
    # Pallas launch would be pure overhead).
    z = jnp.dot(h, params["fc_w"],
                preferred_element_type=jnp.float32) + params["fc_b"][None, :]
    return z


# ----------------------------------------------------------------------------
# DWAC head:
#   d_ij = ||z_i||^2 + ||z_j||^2 - 2 <z_i, z_j>;  k_ij = exp(-gamma d_ij), k_ii=0
#   class_dists = k @ one_hot(y) + eps;  probs = log(class_dists / row_sum)
# ----------------------------------------------------------------------------
def _dwac_kernel(z_ref, y1h_ref, probs_ref, *, gamma, eps):
    z = z_ref[...]                       # (B, D) f32
    y1h = y1h_ref[...]                   # (B, C) f32
    B = z.shape[0]

    zt = z.T                                                        # (D, B)
    gram = jnp.dot(z, zt, preferred_element_type=jnp.float32)       # (B, B)
    norm_col = jnp.sum(z * z, axis=1, keepdims=True)                # (B, 1)
    norm_row = jnp.sum(zt * zt, axis=0, keepdims=True)              # (1, B)

    dists = norm_col + norm_row - 2.0 * gram      # matches the torch formula
    kmat = jnp.exp(dists * (-gamma))              # gaussian kernel
    eye = (lax.broadcasted_iota(jnp.int32, (B, B), 0)
           == lax.broadcasted_iota(jnp.int32, (B, B), 1))
    kmat = jnp.where(eye, 0.0, kmat)              # mask self-distances

    class_dists = jnp.dot(kmat, y1h, preferred_element_type=jnp.float32) + eps
    denom = jnp.sum(class_dists, axis=1, keepdims=True)
    # log(a/b) = log(a) - log(b): divide moves off the VPU onto the EUP.
    probs_ref[...] = jnp.log(class_dists) - jnp.log(denom)


def _dwac_head_pallas(z, y1h, gamma, eps):
    B, D = z.shape
    C = y1h.shape[1]
    # Single-block fused head; working set ~20*B^2 bytes of f32 temporaries,
    # good to B ~= 1.2k under the 32 MiB VMEM budget below.
    # TODO(synk): flash-style key-blocked variant for larger B (v7x 64 MiB).
    return pl.pallas_call(
        functools.partial(_dwac_kernel, gamma=gamma, eps=eps),
        out_shape=jax.ShapeDtypeStruct((B, C), jnp.float32),
        grid=(1,),
        in_specs=[pl.BlockSpec((B, D), lambda i: (0, 0)),
                  pl.BlockSpec((B, C), lambda i: (0, 0))],
        out_specs=pl.BlockSpec((B, C), lambda i: (0, 0)),
        compiler_params=pltpu.CompilerParams(
            dimension_semantics=("arbitrary",),
            vmem_limit_bytes=32 * 1024 * 1024),
    )(z.astype(jnp.float32), y1h.astype(jnp.float32))


def _dwac_head_ref(z, y1h, gamma, eps):
    """Plain-JAX head (used below the Pallas batch threshold and as a check)."""
    norm = jnp.sum(z * z, axis=1, keepdims=True)
    gram = jnp.dot(z, z.T, preferred_element_type=jnp.float32)
    dists = norm + norm.T - 2.0 * gram
    kmat = jnp.exp(dists * (-gamma))
    kmat = kmat * (1.0 - jnp.eye(z.shape[0], dtype=jnp.float32))
    class_dists = jnp.dot(kmat, y1h, preferred_element_type=jnp.float32) + eps
    denom = jnp.sum(class_dists, axis=1, keepdims=True)
    return jnp.log(class_dists) - jnp.log(denom)


# Below this batch size the whole head is sub-vreg ((B,B) Gram < one (8,128)
# tile): the pallas_call launch + DMA dwarfs the math, so use plain JAX.
_DWAC_PALLAS_MIN_B = 256


def dwac_head(z, y1h, gamma, eps):
    B = z.shape[0]
    z = z.astype(jnp.float32)
    y1h = y1h.astype(jnp.float32)
    if B >= _DWAC_PALLAS_MIN_B and B % 8 == 0:
        probs = _dwac_head_pallas(z, y1h, gamma, eps)
    else:
        probs = _dwac_head_ref(z, y1h, gamma, eps)
    # NLLLoss(size_average=False): -sum_i log_prob[i, y_i]
    total_loss = -jnp.sum(probs * y1h)
    return probs, total_loss


# ----------------------------------------------------------------------------
# Full forward (== ResNetDwacModule.forward)
# ----------------------------------------------------------------------------
def dwac_forward(params, x, y, *, n_classes, gamma, eps):
    z = resnet_forward(params, x)                          # (B, z_dim)
    y1h = jax.nn.one_hot(y, n_classes, dtype=jnp.float32)  # scatter_ one-hot
    probs, total_loss = dwac_head(z, y1h, gamma, eps)
    return {
        "probs": probs,
        "loss": total_loss / x.shape[0],
        "total_loss": total_loss,
    }


if __name__ == "__main__":
    key = jax.random.PRNGKey(0)
    kx, ky, kp, kz, kyb = jax.random.split(key, 5)

    B, C_in, H, W = 4, 3, 16, 16
    base, z_dim, n_classes = 16, 32, 4
    gamma, eps = 1.0, 1e-4

    x = jax.random.normal(kx, (B, C_in, H, W), jnp.float32)  # NCHW like torch
    y = jax.random.randint(ky, (B,), 0, n_classes)

    params = init_resnet_params(kp, z_dim, base=base)

    fwd = jax.jit(functools.partial(
        dwac_forward, n_classes=n_classes, gamma=gamma, eps=eps))
    out = fwd(params, x, y)
    jax.block_until_ready(out["probs"])
    jax.block_until_ready(out["loss"])
    jax.block_until_ready(out["total_loss"])

    assert out["probs"].shape == (B, n_classes)
    assert out["loss"].shape == ()
    assert bool(jnp.isfinite(out["probs"]).all())
    assert bool(jnp.isfinite(out["loss"]))

    # Exercise the large-batch fused Pallas DWAC head against the JAX
    # reference (the B=4 forward above takes the plain-JAX path by design).
    Bh = 256
    z_big = 0.2 * jax.random.normal(kz, (Bh, z_dim), jnp.float32)
    y_big = jax.random.randint(kyb, (Bh,), 0, n_classes)
    y1h_big = jax.nn.one_hot(y_big, n_classes, dtype=jnp.float32)
    probs_pl = jax.jit(
        lambda zz, yy: _dwac_head_pallas(zz, yy, gamma, eps))(z_big, y1h_big)
    jax.block_until_ready(probs_pl)
    probs_ref = _dwac_head_ref(z_big, y1h_big, gamma, eps)
    assert bool(jnp.allclose(probs_pl, probs_ref, atol=1e-3, rtol=1e-3))

    print("KERNEL_OK")
</pallas_src>

<mosaic_0001>
module attributes {stable_mosaic.version = 11 : i64} {
  func.func @_conv_gemm_kernel(%arg0: i32, %arg1: i32, %arg2: memref<512x27xbf16, #tpu.memory_space<vmem>>, %arg3: memref<27x128xbf16, #tpu.memory_space<vmem>>, %arg4: memref<512x128xf32, #tpu.memory_space<vmem>>, %arg5: memref<8x128xf32, #tpu.memory_space<vmem>>, %arg6: memref<8x128xf32, #tpu.memory_space<vmem>>) attributes {dimension_semantics = [#tpu.dimension_semantics<parallel>, #tpu.dimension_semantics<parallel>], iteration_bounds = array<i64: 2, 1>, scalar_prefetch = 0 : i64, scratch_operands = 0 : i64, tpu.core_type = #tpu.core_type<tc>, window_params = [{transform_indices = @transform_0, window_bounds = array<i64: 512, 27>}, {transform_indices = @transform_1, window_bounds = array<i64: 27, 128>}, {transform_indices = @transform_2, window_bounds = array<i64: 512, 128>}, {transform_indices = @transform_3, window_bounds = array<i64: 8, 128>}, {transform_indices = @transform_4, window_bounds = array<i64: 8, 128>}]} {
    %c0 = arith.constant 0 : index
    %c0_0 = arith.constant 0 : index
    %0 = vector.load %arg2[%c0, %c0_0] : memref<512x27xbf16, #tpu.memory_space<vmem>>, vector<512x27xbf16>
    %c0_1 = arith.constant 0 : index
    %c0_2 = arith.constant 0 : index
    %1 = vector.load %arg3[%c0_1, %c0_2] : memref<27x128xbf16, #tpu.memory_space<vmem>>, vector<27x128xbf16>
    %cst = arith.constant dense<0.000000e+00> : vector<512x128xf32>
    %2 = tpu.matmul %0, %1, %cst {dimension_numbers = #tpu.dot_dimension_numbers<[1], [0], [0], [1], [0, 0, 1, 1], [], []>} : vector<512x27xbf16>, vector<27x128xbf16>, vector<512x128xf32> -> vector<512x128xf32>
    %c0_3 = arith.constant 0 : index
    %c0_4 = arith.constant 0 : index
    %3 = vector.load %arg4[%c0_3, %c0_4] : memref<512x128xf32, #tpu.memory_space<vmem>>, vector<512x128xf32>
    tpu.vector_store %arg4[%c0_3, %c0_4], %2 {strides = array<i32>} : memref<512x128xf32, #tpu.memory_space<vmem>>, vector<512x128xf32>,
    %cst_5 = arith.constant dense<0.000000e+00> : vector<128xf32>
    %4 = vector.multi_reduction <add>, %2, %cst_5 [0] : vector<512x128xf32> to vector<128xf32>
    %5 = vector.shape_cast %4 : vector<128xf32> to vector<1x128xf32>
    %6 = arith.mulf %2, %2 : vector<512x128xf32>
    %cst_6 = arith.constant dense<0.000000e+00> : vector<128xf32>
    %7 = vector.multi_reduction <add>, %6, %cst_6 [0] : vector<512x128xf32> to vector<128xf32>
    %8 = vector.shape_cast %7 : vector<128xf32> to vector<1x128xf32>
    %9 = vector.shape_cast %5 : vector<1x128xf32> to vector<1x128xf32>
    %10 = vector.broadcast %9 : vector<1x128xf32> to vector<8x128xf32>
    %c0_7 = arith.constant 0 : index
    %c0_8 = arith.constant 0 : index
    %11 = vector.load %arg5[%c0_7, %c0_8] : memref<8x128xf32, #tpu.memory_space<vmem>>, vector<8x128xf32>
    tpu.vector_store %arg5[%c0_7, %c0_8], %10 {strides = array<i32>} : memref<8x128xf32, #tpu.memory_space<vmem>>, vector<8x128xf32>,
    %12 = vector.shape_cast %8 : vector<1x128xf32> to vector<1x128xf32>
    %13 = vector.broadcast %12 : vector<1x128xf32> to vector<8x128xf32>
    %c0_9 = arith.constant 0 : index
    %c0_10 = arith.constant 0 : index
    %14 = vector.load %arg6[%c0_9, %c0_10] : memref<8x128xf32, #tpu.memory_space<vmem>>, vector<8x128xf32>
    tpu.vector_store %arg6[%c0_9, %c0_10], %13 {strides = array<i32>} : memref<8x128xf32, #tpu.memory_space<vmem>>, vector<8x128xf32>,
    return
  }
  func.func @transform_0(%arg0: i32, %arg1: i32) -> (i32, i32) {
    %c0_i32 = arith.constant 0 : i32
    %c0_i32_0 = arith.constant 0 : i32
    return %arg0, %c0_i32 : i32, i32
  }
  func.func @transform_1(%arg0: i32, %arg1: i32) -> (i32, i32) {
    %c0_i32 = arith.constant 0 : i32
    %c0_i32_0 = arith.constant 0 : i32
    return %c0_i32, %arg1 : i32, i32
  }
  func.func @transform_2(%arg0: i32, %arg1: i32) -> (i32, i32) {
    %c0_i32 = arith.constant 0 : i32
    return %arg0, %arg1 : i32, i32
  }
  func.func @transform_3(%arg0: i32, %arg1: i32) -> (i32, i32) {
    %c0_i32 = arith.constant 0 : i32
    return %arg0, %arg1 : i32, i32
  }
  func.func @transform_4(%arg0: i32, %arg1: i32) -> (i32, i32) {
    %c0_i32 = arith.constant 0 : i32
    return %arg0, %arg1 : i32, i32
  }
}

module attributes {stable_mosaic.version = 11 : i64} {
  func.func @_conv_gemm_kernel(%arg0: i32, %arg1: i32, %arg2: memref<512x144xbf16, #tpu.memory_space<vmem>>, %arg3: memref<144x128xbf16, #tpu.memory_space<vmem>>, %arg4: memref<512x128xf32, #tpu.memory_space<vmem>>, %arg5: memref<8x128xf32, #tpu.memory_space<vmem>>, %arg6: memref<8x128xf32, #tpu.memory_space<vmem>>) attributes {dimension_semantics = [#tpu.dimension_semantics<parallel>, #tpu.dimension_semantics<parallel>], iteration_bounds = array<i64: 2, 1>, scalar_prefetch = 0 : i64, scratch_operands = 0 : i64, tpu.core_type = #tpu.core_type<tc>, window_params = [{transform_indices = @transform_0, window_bounds = array<i64: 512, 144>}, {transform_indices = @transform_1, window_bounds = array<i64: 144, 128>}, {transform_indices = @transform_2, window_bounds = array<i64: 512, 128>}, {transform_indices = @transform_3, window_bounds = array<i64: 8, 128>}, {transform_indices = @transform_4, window_bounds = array<i64: 8, 128>}]} {
    %c0 = arith.constant 0 : index
    %c0_0 = arith.constant 0 : index
    %0 = vector.load %arg2[%c0, %c0_0] : memref<512x144xbf16, #tpu.memory_space<vmem>>, vector<512x144xbf16>
    %c0_1 = arith.constant 0 : index
    %c0_2 = arith.constant 0 : index
    %1 = vector.load %arg3[%c0_1, %c0_2] : memref<144x128xbf16, #tpu.memory_space<vmem>>, vector<144x128xbf16>
    %cst = arith.constant dense<0.000000e+00> : vector<512x128xf32>
    %2 = tpu.matmul %0, %1, %cst {dimension_numbers = #tpu.dot_dimension_numbers<[1], [0], [0], [1], [0, 0, 1, 1], [], []>} : vector<512x144xbf16>, vector<144x128xbf16>, vector<512x128xf32> -> vector<512x128xf32>
    %c0_3 = arith.constant 0 : index
    %c0_4 = arith.constant 0 : index
    %3 = vector.load %arg4[%c0_3, %c0_4] : memref<512x128xf32, #tpu.memory_space<vmem>>, vector<512x128xf32>
    tpu.vector_store %arg4[%c0_3, %c0_4], %2 {strides = array<i32>} : memref<512x128xf32, #tpu.memory_space<vmem>>, vector<512x128xf32>,
    %cst_5 = arith.constant dense<0.000000e+00> : vector<128xf32>
    %4 = vector.multi_reduction <add>, %2, %cst_5 [0] : vector<512x128xf32> to vector<128xf32>
    %5 = vector.shape_cast %4 : vector<128xf32> to vector<1x128xf32>
    %6 = arith.mulf %2, %2 : vector<512x128xf32>
    %cst_6 = arith.constant dense<0.000000e+00> : vector<128xf32>
    %7 = vector.multi_reduction <add>, %6, %cst_6 [0] : vector<512x128xf32> to vector<128xf32>
    %8 = vector.shape_cast %7 : vector<128xf32> to vector<1x128xf32>
    %9 = vector.shape_cast %5 : vector<1x128xf32> to vector<1x128xf32>
    %10 = vector.broadcast %9 : vector<1x128xf32> to vector<8x128xf32>
    %c0_7 = arith.constant 0 : index
    %c0_8 = arith.constant 0 : index
    %11 = vector.load %arg5[%c0_7, %c0_8] : memref<8x128xf32, #tpu.memory_space<vmem>>, vector<8x128xf32>
    tpu.vector_store %arg5[%c0_7, %c0_8], %10 {strides = array<i32>} : memref<8x128xf32, #tpu.memory_space<vmem>>, vector<8x128xf32>,
    %12 = vector.shape_cast %8 : vector<1x128xf32> to vector<1x128xf32>
    %13 = vector.broadcast %12 : vector<1x128xf32> to vector<8x128xf32>
    %c0_9 = arith.constant 0 : index
    %c0_10 = arith.constant 0 : index
    %14 = vector.load %arg6[%c0_9, %c0_10] : memref<8x128xf32, #tpu.memory_space<vmem>>, vector<8x128xf32>
    tpu.vector_store %arg6[%c0_9, %c0_10], %13 {strides = array<i32>} : memref<8x128xf32, #tpu.memory_space<vmem>>, vector<8x128xf32>,
    return
  }
  func.func @transform_0(%arg0: i32, %arg1: i32) -> (i32, i32) {
    %c0_i32 = arith.constant 0 : i32
    %c0_i32_0 = arith.constant 0 : i32
    return %arg0, %c0_i32 : i32, i32
  }
  func.func @transform_1(%arg0: i32, %arg1: i32) -> (i32, i32) {
    %c0_i32 = arith.constant 0 : i32
    %c0_i32_0 = arith.constant 0 : i32
    return %c0_i32, %arg1 : i32, i32
  }
  func.func @transform_2(%arg0: i32, %arg1: i32) -> (i32, i32) {
    %c0_i32 = arith.constant 0 : i32
    return %arg0, %arg1 : i32, i32
  }
  func.func @transform_3(%arg0: i32, %arg1: i32) -> (i32, i32) {
    %c0_i32 = arith.constant 0 : i32
    return %arg0, %arg1 : i32, i32
  }
  func.func @transform_4(%arg0: i32, %arg1: i32) -> (i32, i32) {
    %c0_i32 = arith.constant 0 : i32
    return %arg0, %arg1 : i32, i32
  }
}

module attributes {stable_mosaic.version = 11 : i64} {
  func.func @_conv_gemm_kernel(%arg0: i32, %arg1: i32, %arg2: memref<256x144xbf16, #tpu.memory_space<vmem>>, %arg3: memref<144x128xbf16, #tpu.memory_space<vmem>>, %arg4: memref<256x128xf32, #tpu.memory_space<vmem>>, %arg5: memref<8x128xf32, #tpu.memory_space<vmem>>, %arg6: memref<8x128xf32, #tpu.memory_space<vmem>>) attributes {dimension_semantics = [#tpu.dimension_semantics<parallel>, #tpu.dimension_semantics<parallel>], iteration_bounds = array<i64: 1, 1>, scalar_prefetch = 0 : i64, scratch_operands = 0 : i64, tpu.core_type = #tpu.core_type<tc>, window_params = [{transform_indices = @transform_0, window_bounds = array<i64: 256, 144>}, {transform_indices = @transform_1, window_bounds = array<i64: 144, 128>}, {transform_indices = @transform_2, window_bounds = array<i64: 256, 128>}, {transform_indices = @transform_3, window_bounds = array<i64: 8, 128>}, {transform_indices = @transform_4, window_bounds = array<i64: 8, 128>}]} {
    %c0 = arith.constant 0 : index
    %c0_0 = arith.constant 0 : index
    %0 = vector.load %arg2[%c0, %c0_0] : memref<256x144xbf16, #tpu.memory_space<vmem>>, vector<256x144xbf16>
    %c0_1 = arith.constant 0 : index
    %c0_2 = arith.constant 0 : index
    %1 = vector.load %arg3[%c0_1, %c0_2] : memref<144x128xbf16, #tpu.memory_space<vmem>>, vector<144x128xbf16>
    %cst = arith.constant dense<0.000000e+00> : vector<256x128xf32>
    %2 = tpu.matmul %0, %1, %cst {dimension_numbers = #tpu.dot_dimension_numbers<[1], [0], [0], [1], [0, 0, 1, 1], [], []>} : vector<256x144xbf16>, vector<144x128xbf16>, vector<256x128xf32> -> vector<256x128xf32>
    %c0_3 = arith.constant 0 : index
    %c0_4 = arith.constant 0 : index
    %3 = vector.load %arg4[%c0_3, %c0_4] : memref<256x128xf32, #tpu.memory_space<vmem>>, vector<256x128xf32>
    tpu.vector_store %arg4[%c0_3, %c0_4], %2 {strides = array<i32>} : memref<256x128xf32, #tpu.memory_space<vmem>>, vector<256x128xf32>,
    %cst_5 = arith.constant dense<0.000000e+00> : vector<128xf32>
    %4 = vector.multi_reduction <add>, %2, %cst_5 [0] : vector<256x128xf32> to vector<128xf32>
    %5 = vector.shape_cast %4 : vector<128xf32> to vector<1x128xf32>
    %6 = arith.mulf %2, %2 : vector<256x128xf32>
    %cst_6 = arith.constant dense<0.000000e+00> : vector<128xf32>
    %7 = vector.multi_reduction <add>, %6, %cst_6 [0] : vector<256x128xf32> to vector<128xf32>
    %8 = vector.shape_cast %7 : vector<128xf32> to vector<1x128xf32>
    %9 = vector.shape_cast %5 : vector<1x128xf32> to vector<1x128xf32>
    %10 = vector.broadcast %9 : vector<1x128xf32> to vector<8x128xf32>
    %c0_7 = arith.constant 0 : index
    %c0_8 = arith.constant 0 : index
    %11 = vector.load %arg5[%c0_7, %c0_8] : memref<8x128xf32, #tpu.memory_space<vmem>>, vector<8x128xf32>
    tpu.vector_store %arg5[%c0_7, %c0_8], %10 {strides = array<i32>} : memref<8x128xf32, #tpu.memory_space<vmem>>, vector<8x128xf32>,
    %12 = vector.shape_cast %8 : vector<1x128xf32> to vector<1x128xf32>
    %13 = vector.broadcast %12 : vector<1x128xf32> to vector<8x128xf32>
    %c0_9 = arith.constant 0 : index
    %c0_10 = arith.constant 0 : index
    %14 = vector.load %arg6[%c0_9, %c0_10] : memref<8x128xf32, #tpu.memory_space<vmem>>, vector<8x128xf32>
    tpu.vector_store %arg6[%c0_9, %c0_10], %13 {strides = array<i32>} : memref<8x128xf32, #tpu.memory_space<vmem>>, vector<8x128xf32>,
    return
  }
  func.func @transform_0(%arg0: i32, %arg1: i32) -> (i32, i32) {
    %c0_i32 = arith.constant 0 : i32
    %c0_i32_0 = arith.constant 0 : i32
    return %arg0, %c0_i32 : i32, i32
  }
  func.func @transform_1(%arg0: i32, %arg1: i32) -> (i32, i32) {
    %c0_i32 = arith.constant 0 : i32
    %c0_i32_0 = arith.constant 0 : i32
    return %c0_i32, %arg1 : i32, i32
  }
  func.func @transform_2(%arg0: i32, %arg1: i32) -> (i32, i32) {
    %c0_i32 = arith.constant 0 : i32
    return %arg0, %arg1 : i32, i32
  }
  func.func @transform_3(%arg0: i32, %arg1: i32) -> (i32, i32) {
    %c0_i32 = arith.constant 0 : i32
    return %arg0, %arg1 : i32, i32
  }
  func.func @transform_4(%arg0: i32, %arg1: i32) -> (i32, i32) {
    %c0_i32 = arith.constant 0 : i32
    return %arg0, %arg1 : i32, i32
  }
}

module attributes {stable_mosaic.version = 11 : i64} {
  func.func @_conv_gemm_kernel(%arg0: i32, %arg1: i32, %arg2: memref<256x288xbf16, #tpu.memory_space<vmem>>, %arg3: memref<288x128xbf16, #tpu.memory_space<vmem>>, %arg4: memref<256x128xf32, #tpu.memory_space<vmem>>, %arg5: memref<8x128xf32, #tpu.memory_space<vmem>>, %arg6: memref<8x128xf32, #tpu.memory_space<vmem>>) attributes {dimension_semantics = [#tpu.dimension_semantics<parallel>, #tpu.dimension_semantics<parallel>], iteration_bounds = array<i64: 1, 1>, scalar_prefetch = 0 : i64, scratch_operands = 0 : i64, tpu.core_type = #tpu.core_type<tc>, window_params = [{transform_indices = @transform_0, window_bounds = array<i64: 256, 288>}, {transform_indices = @transform_1, window_bounds = array<i64: 288, 128>}, {transform_indices = @transform_2, window_bounds = array<i64: 256, 128>}, {transform_indices = @transform_3, window_bounds = array<i64: 8, 128>}, {transform_indices = @transform_4, window_bounds = array<i64: 8, 128>}]} {
    %c0 = arith.constant 0 : index
    %c0_0 = arith.constant 0 : index
    %0 = vector.load %arg2[%c0, %c0_0] : memref<256x288xbf16, #tpu.memory_space<vmem>>, vector<256x288xbf16>
    %c0_1 = arith.constant 0 : index
    %c0_2 = arith.constant 0 : index
    %1 = vector.load %arg3[%c0_1, %c0_2] : memref<288x128xbf16, #tpu.memory_space<vmem>>, vector<288x128xbf16>
    %cst = arith.constant dense<0.000000e+00> : vector<256x128xf32>
    %2 = tpu.matmul %0, %1, %cst {dimension_numbers = #tpu.dot_dimension_numbers<[1], [0], [0], [1], [0, 0, 1, 1], [], []>} : vector<256x288xbf16>, vector<288x128xbf16>, vector<256x128xf32> -> vector<256x128xf32>
    %c0_3 = arith.constant 0 : index
    %c0_4 = arith.constant 0 : index
    %3 = vector.load %arg4[%c0_3, %c0_4] : memref<256x128xf32, #tpu.memory_space<vmem>>, vector<256x128xf32>
    tpu.vector_store %arg4[%c0_3, %c0_4], %2 {strides = array<i32>} : memref<256x128xf32, #tpu.memory_space<vmem>>, vector<256x128xf32>,
    %cst_5 = arith.constant dense<0.000000e+00> : vector<128xf32>
    %4 = vector.multi_reduction <add>, %2, %cst_5 [0] : vector<256x128xf32> to vector<128xf32>
    %5 = vector.shape_cast %4 : vector<128xf32> to vector<1x128xf32>
    %6 = arith.mulf %2, %2 : vector<256x128xf32>
    %cst_6 = arith.constant dense<0.000000e+00> : vector<128xf32>
    %7 = vector.multi_reduction <add>, %6, %cst_6 [0] : vector<256x128xf32> to vector<128xf32>
    %8 = vector.shape_cast %7 : vector<128xf32> to vector<1x128xf32>
    %9 = vector.shape_cast %5 : vector<1x128xf32> to vector<1x128xf32>
    %10 = vector.broadcast %9 : vector<1x128xf32> to vector<8x128xf32>
    %c0_7 = arith.constant 0 : index
    %c0_8 = arith.constant 0 : index
    %11 = vector.load %arg5[%c0_7, %c0_8] : memref<8x128xf32, #tpu.memory_space<vmem>>, vector<8x128xf32>
    tpu.vector_store %arg5[%c0_7, %c0_8], %10 {strides = array<i32>} : memref<8x128xf32, #tpu.memory_space<vmem>>, vector<8x128xf32>,
    %12 = vector.shape_cast %8 : vector<1x128xf32> to vector<1x128xf32>
    %13 = vector.broadcast %12 : vector<1x128xf32> to vector<8x128xf32>
    %c0_9 = arith.constant 0 : index
    %c0_10 = arith.constant 0 : index
    %14 = vector.load %arg6[%c0_9, %c0_10] : memref<8x128xf32, #tpu.memory_space<vmem>>, vector<8x128xf32>
    tpu.vector_store %arg6[%c0_9, %c0_10], %13 {strides = array<i32>} : memref<8x128xf32, #tpu.memory_space<vmem>>, vector<8x128xf32>,
    return
  }
  func.func @transform_0(%arg0: i32, %arg1: i32) -> (i32, i32) {
    %c0_i32 = arith.constant 0 : i32
    %c0_i32_0 = arith.constant 0 : i32
    return %arg0, %c0_i32 : i32, i32
  }
  func.func @transform_1(%arg0: i32, %arg1: i32) -> (i32, i32) {
    %c0_i32 = arith.constant 0 : i32
    %c0_i32_0 = arith.constant 0 : i32
    return %c0_i32, %arg1 : i32, i32
  }
  func.func @transform_2(%arg0: i32, %arg1: i32) -> (i32, i32) {
    %c0_i32 = arith.constant 0 : i32
    return %arg0, %arg1 : i32, i32
  }
  func.func @transform_3(%arg0: i32, %arg1: i32) -> (i32, i32) {
    %c0_i32 = arith.constant 0 : i32
    return %arg0, %arg1 : i32, i32
  }
  func.func @transform_4(%arg0: i32, %arg1: i32) -> (i32, i32) {
    %c0_i32 = arith.constant 0 : i32
    return %arg0, %arg1 : i32, i32
  }
}

module attributes {stable_mosaic.version = 11 : i64} {
  func.func @_conv_gemm_kernel(%arg0: i32, %arg1: i32, %arg2: memref<256x16xbf16, #tpu.memory_space<vmem>>, %arg3: memref<16x128xbf16, #tpu.memory_space<vmem>>, %arg4: memref<256x128xf32, #tpu.memory_space<vmem>>, %arg5: memref<8x128xf32, #tpu.memory_space<vmem>>, %arg6: memref<8x128xf32, #tpu.memory_space<vmem>>) attributes {dimension_semantics = [#tpu.dimension_semantics<parallel>, #tpu.dimension_semantics<parallel>], iteration_bounds = array<i64: 1, 1>, scalar_prefetch = 0 : i64, scratch_operands = 0 : i64, tpu.core_type = #tpu.core_type<tc>, window_params = [{transform_indices = @transform_0, window_bounds = array<i64: 256, 16>}, {transform_indices = @transform_1, window_bounds = array<i64: 16, 128>}, {transform_indices = @transform_2, window_bounds = array<i64: 256, 128>}, {transform_indices = @transform_3, window_bounds = array<i64: 8, 128>}, {transform_indices = @transform_4, window_bounds = array<i64: 8, 128>}]} {
    %c0 = arith.constant 0 : index
    %c0_0 = arith.constant 0 : index
    %0 = vector.load %arg2[%c0, %c0_0] : memref<256x16xbf16, #tpu.memory_space<vmem>>, vector<256x16xbf16>
    %c0_1 = arith.constant 0 : index
    %c0_2 = arith.constant 0 : index
    %1 = vector.load %arg3[%c0_1, %c0_2] : memref<16x128xbf16, #tpu.memory_space<vmem>>, vector<16x128xbf16>
    %cst = arith.constant dense<0.000000e+00> : vector<256x128xf32>
    %2 = tpu.matmul %0, %1, %cst {dimension_numbers = #tpu.dot_dimension_numbers<[1], [0], [0], [1], [0, 0, 1, 1], [], []>} : vector<256x16xbf16>, vector<16x128xbf16>, vector<256x128xf32> -> vector<256x128xf32>
    %c0_3 = arith.constant 0 : index
    %c0_4 = arith.constant 0 : index
    %3 = vector.load %arg4[%c0_3, %c0_4] : memref<256x128xf32, #tpu.memory_space<vmem>>, vector<256x128xf32>
    tpu.vector_store %arg4[%c0_3, %c0_4], %2 {strides = array<i32>} : memref<256x128xf32, #tpu.memory_space<vmem>>, vector<256x128xf32>,
    %cst_5 = arith.constant dense<0.000000e+00> : vector<128xf32>
    %4 = vector.multi_reduction <add>, %2, %cst_5 [0] : vector<256x128xf32> to vector<128xf32>
    %5 = vector.shape_cast %4 : vector<128xf32> to vector<1x128xf32>
    %6 = arith.mulf %2, %2 : vector<256x128xf32>
    %cst_6 = arith.constant dense<0.000000e+00> : vector<128xf32>
    %7 = vector.multi_reduction <add>, %6, %cst_6 [0] : vector<256x128xf32> to vector<128xf32>
    %8 = vector.shape_cast %7 : vector<128xf32> to vector<1x128xf32>
    %9 = vector.shape_cast %5 : vector<1x128xf32> to vector<1x128xf32>
    %10 = vector.broadcast %9 : vector<1x128xf32> to vector<8x128xf32>
    %c0_7 = arith.constant 0 : index
    %c0_8 = arith.constant 0 : index
    %11 = vector.load %arg5[%c0_7, %c0_8] : memref<8x128xf32, #tpu.memory_space<vmem>>, vector<8x128xf32>
    tpu.vector_store %arg5[%c0_7, %c0_8], %10 {strides = array<i32>} : memref<8x128xf32, #tpu.memory_space<vmem>>, vector<8x128xf32>,
    %12 = vector.shape_cast %8 : vector<1x128xf32> to vector<1x128xf32>
    %13 = vector.broadcast %12 : vector<1x128xf32> to vector<8x128xf32>
    %c0_9 = arith.constant 0 : index
    %c0_10 = arith.constant 0 : index
    %14 = vector.load %arg6[%c0_9, %c0_10] : memref<8x128xf32, #tpu.memory_space<vmem>>, vector<8x128xf32>
    tpu.vector_store %arg6[%c0_9, %c0_10], %13 {strides = array<i32>} : memref<8x128xf32, #tpu.memory_space<vmem>>, vector<8x128xf32>,
    return
  }
  func.func @transform_0(%arg0: i32, %arg1: i32) -> (i32, i32) {
    %c0_i32 = arith.constant 0 : i32
    %c0_i32_0 = arith.constant 0 : i32
    return %arg0, %c0_i32 : i32, i32
  }
  func.func @transform_1(%arg0: i32, %arg1: i32) -> (i32, i32) {
    %c0_i32 = arith.constant 0 : i32
    %c0_i32_0 = arith.constant 0 : i32
    return %c0_i32, %arg1 : i32, i32
  }
  func.func @transform_2(%arg0: i32, %arg1: i32) -> (i32, i32) {
    %c0_i32 = arith.constant 0 : i32
    return %arg0, %arg1 : i32, i32
  }
  func.func @transform_3(%arg0: i32, %arg1: i32) -> (i32, i32) {
    %c0_i32 = arith.constant 0 : i32
    return %arg0, %arg1 : i32, i32
  }
  func.func @transform_4(%arg0: i32, %arg1: i32) -> (i32, i32) {
    %c0_i32 = arith.constant 0 : i32
    return %arg0, %arg1 : i32, i32
  }
}

module attributes {stable_mosaic.version = 11 : i64} {
  func.func @_conv_gemm_kernel(%arg0: i32, %arg1: i32, %arg2: memref<64x288xbf16, #tpu.memory_space<vmem>>, %arg3: memref<288x128xbf16, #tpu.memory_space<vmem>>, %arg4: memref<64x128xf32, #tpu.memory_space<vmem>>, %arg5: memref<8x128xf32, #tpu.memory_space<vmem>>, %arg6: memref<8x128xf32, #tpu.memory_space<vmem>>) attributes {dimension_semantics = [#tpu.dimension_semantics<parallel>, #tpu.dimension_semantics<parallel>], iteration_bounds = array<i64: 1, 1>, scalar_prefetch = 0 : i64, scratch_operands = 0 : i64, tpu.core_type = #tpu.core_type<tc>, window_params = [{transform_indices = @transform_0, window_bounds = array<i64: 64, 288>}, {transform_indices = @transform_1, window_bounds = array<i64: 288, 128>}, {transform_indices = @transform_2, window_bounds = array<i64: 64, 128>}, {transform_indices = @transform_3, window_bounds = array<i64: 8, 128>}, {transform_indices = @transform_4, window_bounds = array<i64: 8, 128>}]} {
    %c0 = arith.constant 0 : index
    %c0_0 = arith.constant 0 : index
    %0 = vector.load %arg2[%c0, %c0_0] : memref<64x288xbf16, #tpu.memory_space<vmem>>, vector<64x288xbf16>
    %c0_1 = arith.constant 0 : index
    %c0_2 = arith.constant 0 : index
    %1 = vector.load %arg3[%c0_1, %c0_2] : memref<288x128xbf16, #tpu.memory_space<vmem>>, vector<288x128xbf16>
    %cst = arith.constant dense<0.000000e+00> : vector<64x128xf32>
    %2 = tpu.matmul %0, %1, %cst {dimension_numbers = #tpu.dot_dimension_numbers<[1], [0], [0], [1], [0, 0, 1, 1], [], []>} : vector<64x288xbf16>, vector<288x128xbf16>, vector<64x128xf32> -> vector<64x128xf32>
    %c0_3 = arith.constant 0 : index
    %c0_4 = arith.constant 0 : index
    %3 = vector.load %arg4[%c0_3, %c0_4] : memref<64x128xf32, #tpu.memory_space<vmem>>, vector<64x128xf32>
    tpu.vector_store %arg4[%c0_3, %c0_4], %2 {strides = array<i32>} : memref<64x128xf32, #tpu.memory_space<vmem>>, vector<64x128xf32>,
    %cst_5 = arith.constant dense<0.000000e+00> : vector<128xf32>
    %4 = vector.multi_reduction <add>, %2, %cst_5 [0] : vector<64x128xf32> to vector<128xf32>
    %5 = vector.shape_cast %4 : vector<128xf32> to vector<1x128xf32>
    %6 = arith.mulf %2, %2 : vector<64x128xf32>
    %cst_6 = arith.constant dense<0.000000e+00> : vector<128xf32>
    %7 = vector.multi_reduction <add>, %6, %cst_6 [0] : vector<64x128xf32> to vector<128xf32>
    %8 = vector.shape_cast %7 : vector<128xf32> to vector<1x128xf32>
    %9 = vector.shape_cast %5 : vector<1x128xf32> to vector<1x128xf32>
    %10 = vector.broadcast %9 : vector<1x128xf32> to vector<8x128xf32>
    %c0_7 = arith.constant 0 : index
    %c0_8 = arith.constant 0 : index
    %11 = vector.load %arg5[%c0_7, %c0_8] : memref<8x128xf32, #tpu.memory_space<vmem>>, vector<8x128xf32>
    tpu.vector_store %arg5[%c0_7, %c0_8], %10 {strides = array<i32>} : memref<8x128xf32, #tpu.memory_space<vmem>>, vector<8x128xf32>,
    %12 = vector.shape_cast %8 : vector<1x128xf32> to vector<1x128xf32>
    %13 = vector.broadcast %12 : vector<1x128xf32> to vector<8x128xf32>
    %c0_9 = arith.constant 0 : index
    %c0_10 = arith.constant 0 : index
    %14 = vector.load %arg6[%c0_9, %c0_10] : memref<8x128xf32, #tpu.memory_space<vmem>>, vector<8x128xf32>
    tpu.vector_store %arg6[%c0_9, %c0_10], %13 {strides = array<i32>} : memref<8x128xf32, #tpu.memory_space<vmem>>, vector<8x128xf32>,
    return
  }
  func.func @transform_0(%arg0: i32, %arg1: i32) -> (i32, i32) {
    %c0_i32 = arith.constant 0 : i32
    %c0_i32_0 = arith.constant 0 : i32
    return %arg0, %c0_i32 : i32, i32
  }
  func.func @transform_1(%arg0: i32, %arg1: i32) -> (i32, i32) {
    %c0_i32 = arith.constant 0 : i32
    %c0_i32_0 = arith.constant 0 : i32
    return %c0_i32, %arg1 : i32, i32
  }
  func.func @transform_2(%arg0: i32, %arg1: i32) -> (i32, i32) {
    %c0_i32 = arith.constant 0 : i32
    return %arg0, %arg1 : i32, i32
  }
  func.func @transform_3(%arg0: i32, %arg1: i32) -> (i32, i32) {
    %c0_i32 = arith.constant 0 : i32
    return %arg0, %arg1 : i32, i32
  }
  func.func @transform_4(%arg0: i32, %arg1: i32) -> (i32, i32) {
    %c0_i32 = arith.constant 0 : i32
    return %arg0, %arg1 : i32, i32
  }
}

module attributes {stable_mosaic.version = 11 : i64} {
  func.func @_conv_gemm_kernel(%arg0: i32, %arg1: i32, %arg2: memref<64x576xbf16, #tpu.memory_space<vmem>>, %arg3: memref<576x128xbf16, #tpu.memory_space<vmem>>, %arg4: memref<64x128xf32, #tpu.memory_space<vmem>>, %arg5: memref<8x128xf32, #tpu.memory_space<vmem>>, %arg6: memref<8x128xf32, #tpu.memory_space<vmem>>) attributes {dimension_semantics = [#tpu.dimension_semantics<parallel>, #tpu.dimension_semantics<parallel>], iteration_bounds = array<i64: 1, 1>, scalar_prefetch = 0 : i64, scratch_operands = 0 : i64, tpu.core_type = #tpu.core_type<tc>, window_params = [{transform_indices = @transform_0, window_bounds = array<i64: 64, 576>}, {transform_indices = @transform_1, window_bounds = array<i64: 576, 128>}, {transform_indices = @transform_2, window_bounds = array<i64: 64, 128>}, {transform_indices = @transform_3, window_bounds = array<i64: 8, 128>}, {transform_indices = @transform_4, window_bounds = array<i64: 8, 128>}]} {
    %c0 = arith.constant 0 : index
    %c0_0 = arith.constant 0 : index
    %0 = vector.load %arg2[%c0, %c0_0] : memref<64x576xbf16, #tpu.memory_space<vmem>>, vector<64x576xbf16>
    %c0_1 = arith.constant 0 : index
    %c0_2 = arith.constant 0 : index
    %1 = vector.load %arg3[%c0_1, %c0_2] : memref<576x128xbf16, #tpu.memory_space<vmem>>, vector<576x128xbf16>
    %cst = arith.constant dense<0.000000e+00> : vector<64x128xf32>
    %2 = tpu.matmul %0, %1, %cst {dimension_numbers = #tpu.dot_dimension_numbers<[1], [0], [0], [1], [0, 0, 1, 1], [], []>} : vector<64x576xbf16>, vector<576x128xbf16>, vector<64x128xf32> -> vector<64x128xf32>
    %c0_3 = arith.constant 0 : index
    %c0_4 = arith.constant 0 : index
    %3 = vector.load %arg4[%c0_3, %c0_4] : memref<64x128xf32, #tpu.memory_space<vmem>>, vector<64x128xf32>
    tpu.vector_store %arg4[%c0_3, %c0_4], %2 {strides = array<i32>} : memref<64x128xf32, #tpu.memory_space<vmem>>, vector<64x128xf32>,
    %cst_5 = arith.constant dense<0.000000e+00> : vector<128xf32>
    %4 = vector.multi_reduction <add>, %2, %cst_5 [0] : vector<64x128xf32> to vector<128xf32>
    %5 = vector.shape_cast %4 : vector<128xf32> to vector<1x128xf32>
    %6 = arith.mulf %2, %2 : vector<64x128xf32>
    %cst_6 = arith.constant dense<0.000000e+00> : vector<128xf32>
    %7 = vector.multi_reduction <add>, %6, %cst_6 [0] : vector<64x128xf32> to vector<128xf32>
    %8 = vector.shape_cast %7 : vector<128xf32> to vector<1x128xf32>
    %9 = vector.shape_cast %5 : vector<1x128xf32> to vector<1x128xf32>
    %10 = vector.broadcast %9 : vector<1x128xf32> to vector<8x128xf32>
    %c0_7 = arith.constant 0 : index
    %c0_8 = arith.constant 0 : index
    %11 = vector.load %arg5[%c0_7, %c0_8] : memref<8x128xf32, #tpu.memory_space<vmem>>, vector<8x128xf32>
    tpu.vector_store %arg5[%c0_7, %c0_8], %10 {strides = array<i32>} : memref<8x128xf32, #tpu.memory_space<vmem>>, vector<8x128xf32>,
    %12 = vector.shape_cast %8 : vector<1x128xf32> to vector<1x128xf32>
    %13 = vector.broadcast %12 : vector<1x128xf32> to vector<8x128xf32>
    %c0_9 = arith.constant 0 : index
    %c0_10 = arith.constant 0 : index
    %14 = vector.load %arg6[%c0_9, %c0_10] : memref<8x128xf32, #tpu.memory_space<vmem>>, vector<8x128xf32>
    tpu.vector_store %arg6[%c0_9, %c0_10], %13 {strides = array<i32>} : memref<8x128xf32, #tpu.memory_space<vmem>>, vector<8x128xf32>,
    return
  }
  func.func @transform_0(%arg0: i32, %arg1: i32) -> (i32, i32) {
    %c0_i32 = arith.constant 0 : i32
    %c0_i32_0 = arith.constant 0 : i32
    return %arg0, %c0_i32 : i32, i32
  }
  func.func @transform_1(%arg0: i32, %arg1: i32) -> (i32, i32) {
    %c0_i32 = arith.constant 0 : i32
    %c0_i32_0 = arith.constant 0 : i32
    return %c0_i32, %arg1 : i32, i32
  }
  func.func @transform_2(%arg0: i32, %arg1: i32) -> (i32, i32) {
    %c0_i32 = arith.constant 0 : i32
    return %arg0, %arg1 : i32, i32
  }
  func.func @transform_3(%arg0: i32, %arg1: i32) -> (i32, i32) {
    %c0_i32 = arith.constant 0 : i32
    return %arg0, %arg1 : i32, i32
  }
  func.func @transform_4(%arg0: i32, %arg1: i32) -> (i32, i32) {
    %c0_i32 = arith.constant 0 : i32
    return %arg0, %arg1 : i32, i32
  }
}

module attributes {stable_mosaic.version = 11 : i64} {
  func.func @_conv_gemm_kernel(%arg0: i32, %arg1: i32, %arg2: memref<64x32xbf16, #tpu.memory_space<vmem>>, %arg3: memref<32x128xbf16, #tpu.memory_space<vmem>>, %arg4: memref<64x128xf32, #tpu.memory_space<vmem>>, %arg5: memref<8x128xf32, #tpu.memory_space<vmem>>, %arg6: memref<8x128xf32, #tpu.memory_space<vmem>>) attributes {dimension_semantics = [#tpu.dimension_semantics<parallel>, #tpu.dimension_semantics<parallel>], iteration_bounds = array<i64: 1, 1>, scalar_prefetch = 0 : i64, scratch_operands = 0 : i64, tpu.core_type = #tpu.core_type<tc>, window_params = [{transform_indices = @transform_0, window_bounds = array<i64: 64, 32>}, {transform_indices = @transform_1, window_bounds = array<i64: 32, 128>}, {transform_indices = @transform_2, window_bounds = array<i64: 64, 128>}, {transform_indices = @transform_3, window_bounds = array<i64: 8, 128>}, {transform_indices = @transform_4, window_bounds = array<i64: 8, 128>}]} {
    %c0 = arith.constant 0 : index
    %c0_0 = arith.constant 0 : index
    %0 = vector.load %arg2[%c0, %c0_0] : memref<64x32xbf16, #tpu.memory_space<vmem>>, vector<64x32xbf16>
    %c0_1 = arith.constant 0 : index
    %c0_2 = arith.constant 0 : index
    %1 = vector.load %arg3[%c0_1, %c0_2] : memref<32x128xbf16, #tpu.memory_space<vmem>>, vector<32x128xbf16>
    %cst = arith.constant dense<0.000000e+00> : vector<64x128xf32>
    %2 = tpu.matmul %0, %1, %cst {dimension_numbers = #tpu.dot_dimension_numbers<[1], [0], [0], [1], [0, 0, 1, 1], [], []>} : vector<64x32xbf16>, vector<32x128xbf16>, vector<64x128xf32> -> vector<64x128xf32>
    %c0_3 = arith.constant 0 : index
    %c0_4 = arith.constant 0 : index
    %3 = vector.load %arg4[%c0_3, %c0_4] : memref<64x128xf32, #tpu.memory_space<vmem>>, vector<64x128xf32>
    tpu.vector_store %arg4[%c0_3, %c0_4], %2 {strides = array<i32>} : memref<64x128xf32, #tpu.memory_space<vmem>>, vector<64x128xf32>,
    %cst_5 = arith.constant dense<0.000000e+00> : vector<128xf32>
    %4 = vector.multi_reduction <add>, %2, %cst_5 [0] : vector<64x128xf32> to vector<128xf32>
    %5 = vector.shape_cast %4 : vector<128xf32> to vector<1x128xf32>
    %6 = arith.mulf %2, %2 : vector<64x128xf32>
    %cst_6 = arith.constant dense<0.000000e+00> : vector<128xf32>
    %7 = vector.multi_reduction <add>, %6, %cst_6 [0] : vector<64x128xf32> to vector<128xf32>
    %8 = vector.shape_cast %7 : vector<128xf32> to vector<1x128xf32>
    %9 = vector.shape_cast %5 : vector<1x128xf32> to vector<1x128xf32>
    %10 = vector.broadcast %9 : vector<1x128xf32> to vector<8x128xf32>
    %c0_7 = arith.constant 0 : index
    %c0_8 = arith.constant 0 : index
    %11 = vector.load %arg5[%c0_7, %c0_8] : memref<8x128xf32, #tpu.memory_space<vmem>>, vector<8x128xf32>
    tpu.vector_store %arg5[%c0_7, %c0_8], %10 {strides = array<i32>} : memref<8x128xf32, #tpu.memory_space<vmem>>, vector<8x128xf32>,
    %12 = vector.shape_cast %8 : vector<1x128xf32> to vector<1x128xf32>
    %13 = vector.broadcast %12 : vector<1x128xf32> to vector<8x128xf32>
    %c0_9 = arith.constant 0 : index
    %c0_10 = arith.constant 0 : index
    %14 = vector.load %arg6[%c0_9, %c0_10] : memref<8x128xf32, #tpu.memory_space<vmem>>, vector<8x128xf32>
    tpu.vector_store %arg6[%c0_9, %c0_10], %13 {strides = array<i32>} : memref<8x128xf32, #tpu.memory_space<vmem>>, vector<8x128xf32>,
    return
  }
  func.func @transform_0(%arg0: i32, %arg1: i32) -> (i32, i32) {
    %c0_i32 = arith.constant 0 : i32
    %c0_i32_0 = arith.constant 0 : i32
    return %arg0, %c0_i32 : i32, i32
  }
  func.func @transform_1(%arg0: i32, %arg1: i32) -> (i32, i32) {
    %c0_i32 = arith.constant 0 : i32
    %c0_i32_0 = arith.constant 0 : i32
    return %c0_i32, %arg1 : i32, i32
  }
  func.func @transform_2(%arg0: i32, %arg1: i32) -> (i32, i32) {
    %c0_i32 = arith.constant 0 : i32
    return %arg0, %arg1 : i32, i32
  }
  func.func @transform_3(%arg0: i32, %arg1: i32) -> (i32, i32) {
    %c0_i32 = arith.constant 0 : i32
    return %arg0, %arg1 : i32, i32
  }
  func.func @transform_4(%arg0: i32, %arg1: i32) -> (i32, i32) {
    %c0_i32 = arith.constant 0 : i32
    return %arg0, %arg1 : i32, i32
  }
}

module attributes {stable_mosaic.version = 11 : i64} {
  func.func @_conv_gemm_kernel(%arg0: i32, %arg1: i32, %arg2: memref<16x576xbf16, #tpu.memory_space<vmem>>, %arg3: memref<576x128xbf16, #tpu.memory_space<vmem>>, %arg4: memref<16x128xf32, #tpu.memory_space<vmem>>, %arg5: memref<8x128xf32, #tpu.memory_space<vmem>>, %arg6: memref<8x128xf32, #tpu.memory_space<vmem>>) attributes {dimension_semantics = [#tpu.dimension_semantics<parallel>, #tpu.dimension_semantics<parallel>], iteration_bounds = array<i64: 1, 1>, scalar_prefetch = 0 : i64, scratch_operands = 0 : i64, tpu.core_type = #tpu.core_type<tc>, window_params = [{transform_indices = @transform_0, window_bounds = array<i64: 16, 576>}, {transform_indices = @transform_1, window_bounds = array<i64: 576, 128>}, {transform_indices = @transform_2, window_bounds = array<i64: 16, 128>}, {transform_indices = @transform_3, window_bounds = array<i64: 8, 128>}, {transform_indices = @transform_4, window_bounds = array<i64: 8, 128>}]} {
    %c0 = arith.constant 0 : index
    %c0_0 = arith.constant 0 : index
    %0 = vector.load %arg2[%c0, %c0_0] : memref<16x576xbf16, #tpu.memory_space<vmem>>, vector<16x576xbf16>
    %c0_1 = arith.constant 0 : index
    %c0_2 = arith.constant 0 : index
    %1 = vector.load %arg3[%c0_1, %c0_2] : memref<576x128xbf16, #tpu.memory_space<vmem>>, vector<576x128xbf16>
    %cst = arith.constant dense<0.000000e+00> : vector<16x128xf32>
    %2 = tpu.matmul %0, %1, %cst {dimension_numbers = #tpu.dot_dimension_numbers<[1], [0], [0], [1], [0, 0, 1, 1], [], []>} : vector<16x576xbf16>, vector<576x128xbf16>, vector<16x128xf32> -> vector<16x128xf32>
    %c0_3 = arith.constant 0 : index
    %c0_4 = arith.constant 0 : index
    %3 = vector.load %arg4[%c0_3, %c0_4] : memref<16x128xf32, #tpu.memory_space<vmem>>, vector<16x128xf32>
    tpu.vector_store %arg4[%c0_3, %c0_4], %2 {strides = array<i32>} : memref<16x128xf32, #tpu.memory_space<vmem>>, vector<16x128xf32>,
    %cst_5 = arith.constant dense<0.000000e+00> : vector<128xf32>
    %4 = vector.multi_reduction <add>, %2, %cst_5 [0] : vector<16x128xf32> to vector<128xf32>
    %5 = vector.shape_cast %4 : vector<128xf32> to vector<1x128xf32>
    %6 = arith.mulf %2, %2 : vector<16x128xf32>
    %cst_6 = arith.constant dense<0.000000e+00> : vector<128xf32>
    %7 = vector.multi_reduction <add>, %6, %cst_6 [0] : vector<16x128xf32> to vector<128xf32>
    %8 = vector.shape_cast %7 : vector<128xf32> to vector<1x128xf32>
    %9 = vector.shape_cast %5 : vector<1x128xf32> to vector<1x128xf32>
    %10 = vector.broadcast %9 : vector<1x128xf32> to vector<8x128xf32>
    %c0_7 = arith.constant 0 : index
    %c0_8 = arith.constant 0 : index
    %11 = vector.load %arg5[%c0_7, %c0_8] : memref<8x128xf32, #tpu.memory_space<vmem>>, vector<8x128xf32>
    tpu.vector_store %arg5[%c0_7, %c0_8], %10 {strides = array<i32>} : memref<8x128xf32, #tpu.memory_space<vmem>>, vector<8x128xf32>,
    %12 = vector.shape_cast %8 : vector<1x128xf32> to vector<1x128xf32>
    %13 = vector.broadcast %12 : vector<1x128xf32> to vector<8x128xf32>
    %c0_9 = arith.constant 0 : index
    %c0_10 = arith.constant 0 : index
    %14 = vector.load %arg6[%c0_9, %c0_10] : memref<8x128xf32, #tpu.memory_space<vmem>>, vector<8x128xf32>
    tpu.vector_store %arg6[%c0_9, %c0_10], %13 {strides = array<i32>} : memref<8x128xf32, #tpu.memory_space<vmem>>, vector<8x128xf32>,
    return
  }
  func.func @transform_0(%arg0: i32, %arg1: i32) -> (i32, i32) {
    %c0_i32 = arith.constant 0 : i32
    %c0_i32_0 = arith.constant 0 : i32
    return %arg0, %c0_i32 : i32, i32
  }
  func.func @transform_1(%arg0: i32, %arg1: i32) -> (i32, i32) {
    %c0_i32 = arith.constant 0 : i32
    %c0_i32_0 = arith.constant 0 : i32
    return %c0_i32, %arg1 : i32, i32
  }
  func.func @transform_2(%arg0: i32, %arg1: i32) -> (i32, i32) {
    %c0_i32 = arith.constant 0 : i32
    return %arg0, %arg1 : i32, i32
  }
  func.func @transform_3(%arg0: i32, %arg1: i32) -> (i32, i32) {
    %c0_i32 = arith.constant 0 : i32
    return %arg0, %arg1 : i32, i32
  }
  func.func @transform_4(%arg0: i32, %arg1: i32) -> (i32, i32) {
    %c0_i32 = arith.constant 0 : i32
    return %arg0, %arg1 : i32, i32
  }
}

module attributes {stable_mosaic.version = 11 : i64} {
  func.func @_conv_gemm_kernel(%arg0: i32, %arg1: i32, %arg2: memref<16x1152xbf16, #tpu.memory_space<vmem>>, %arg3: memref<1152x128xbf16, #tpu.memory_space<vmem>>, %arg4: memref<16x128xf32, #tpu.memory_space<vmem>>, %arg5: memref<8x128xf32, #tpu.memory_space<vmem>>, %arg6: memref<8x128xf32, #tpu.memory_space<vmem>>) attributes {dimension_semantics = [#tpu.dimension_semantics<parallel>, #tpu.dimension_semantics<parallel>], iteration_bounds = array<i64: 1, 1>, scalar_prefetch = 0 : i64, scratch_operands = 0 : i64, tpu.core_type = #tpu.core_type<tc>, window_params = [{transform_indices = @transform_0, window_bounds = array<i64: 16, 1152>}, {transform_indices = @transform_1, window_bounds = array<i64: 1152, 128>}, {transform_indices = @transform_2, window_bounds = array<i64: 16, 128>}, {transform_indices = @transform_3, window_bounds = array<i64: 8, 128>}, {transform_indices = @transform_4, window_bounds = array<i64: 8, 128>}]} {
    %c0 = arith.constant 0 : index
    %c0_0 = arith.constant 0 : index
    %0 = vector.load %arg2[%c0, %c0_0] : memref<16x1152xbf16, #tpu.memory_space<vmem>>, vector<16x1152xbf16>
    %c0_1 = arith.constant 0 : index
    %c0_2 = arith.constant 0 : index
    %1 = vector.load %arg3[%c0_1, %c0_2] : memref<1152x128xbf16, #tpu.memory_space<vmem>>, vector<1152x128xbf16>
    %cst = arith.constant dense<0.000000e+00> : vector<16x128xf32>
    %2 = tpu.matmul %0, %1, %cst {dimension_numbers = #tpu.dot_dimension_numbers<[1], [0], [0], [1], [0, 0, 1, 1], [], []>} : vector<16x1152xbf16>, vector<1152x128xbf16>, vector<16x128xf32> -> vector<16x128xf32>
    %c0_3 = arith.constant 0 : index
    %c0_4 = arith.constant 0 : index
    %3 = vector.load %arg4[%c0_3, %c0_4] : memref<16x128xf32, #tpu.memory_space<vmem>>, vector<16x128xf32>
    tpu.vector_store %arg4[%c0_3, %c0_4], %2 {strides = array<i32>} : memref<16x128xf32, #tpu.memory_space<vmem>>, vector<16x128xf32>,
    %cst_5 = arith.constant dense<0.000000e+00> : vector<128xf32>
    %4 = vector.multi_reduction <add>, %2, %cst_5 [0] : vector<16x128xf32> to vector<128xf32>
    %5 = vector.shape_cast %4 : vector<128xf32> to vector<1x128xf32>
    %6 = arith.mulf %2, %2 : vector<16x128xf32>
    %cst_6 = arith.constant dense<0.000000e+00> : vector<128xf32>
    %7 = vector.multi_reduction <add>, %6, %cst_6 [0] : vector<16x128xf32> to vector<128xf32>
    %8 = vector.shape_cast %7 : vector<128xf32> to vector<1x128xf32>
    %9 = vector.shape_cast %5 : vector<1x128xf32> to vector<1x128xf32>
    %10 = vector.broadcast %9 : vector<1x128xf32> to vector<8x128xf32>
    %c0_7 = arith.constant 0 : index
    %c0_8 = arith.constant 0 : index
    %11 = vector.load %arg5[%c0_7, %c0_8] : memref<8x128xf32, #tpu.memory_space<vmem>>, vector<8x128xf32>
    tpu.vector_store %arg5[%c0_7, %c0_8], %10 {strides = array<i32>} : memref<8x128xf32, #tpu.memory_space<vmem>>, vector<8x128xf32>,
    %12 = vector.shape_cast %8 : vector<1x128xf32> to vector<1x128xf32>
    %13 = vector.broadcast %12 : vector<1x128xf32> to vector<8x128xf32>
    %c0_9 = arith.constant 0 : index
    %c0_10 = arith.constant 0 : index
    %14 = vector.load %arg6[%c0_9, %c0_10] : memref<8x128xf32, #tpu.memory_space<vmem>>, vector<8x128xf32>
    tpu.vector_store %arg6[%c0_9, %c0_10], %13 {strides = array<i32>} : memref<8x128xf32, #tpu.memory_space<vmem>>, vector<8x128xf32>,
    return
  }
  func.func @transform_0(%arg0: i32, %arg1: i32) -> (i32, i32) {
    %c0_i32 = arith.constant 0 : i32
    %c0_i32_0 = arith.constant 0 : i32
    return %arg0, %c0_i32 : i32, i32
  }
  func.func @transform_1(%arg0: i32, %arg1: i32) -> (i32, i32) {
    %c0_i32 = arith.constant 0 : i32
    %c0_i32_0 = arith.constant 0 : i32
    return %c0_i32, %arg1 : i32, i32
  }
  func.func @transform_2(%arg0: i32, %arg1: i32) -> (i32, i32) {
    %c0_i32 = arith.constant 0 : i32
    return %arg0, %arg1 : i32, i32
  }
  func.func @transform_3(%arg0: i32, %arg1: i32) -> (i32, i32) {
    %c0_i32 = arith.constant 0 : i32
    return %arg0, %arg1 : i32, i32
  }
  func.func @transform_4(%arg0: i32, %arg1: i32) -> (i32, i32) {
    %c0_i32 = arith.constant 0 : i32
    return %arg0, %arg1 : i32, i32
  }
}

module attributes {stable_mosaic.version = 11 : i64} {
  func.func @_conv_gemm_kernel(%arg0: i32, %arg1: i32, %arg2: memref<16x64xbf16, #tpu.memory_space<vmem>>, %arg3: memref<64x128xbf16, #tpu.memory_space<vmem>>, %arg4: memref<16x128xf32, #tpu.memory_space<vmem>>, %arg5: memref<8x128xf32, #tpu.memory_space<vmem>>, %arg6: memref<8x128xf32, #tpu.memory_space<vmem>>) attributes {dimension_semantics = [#tpu.dimension_semantics<parallel>, #tpu.dimension_semantics<parallel>], iteration_bounds = array<i64: 1, 1>, scalar_prefetch = 0 : i64, scratch_operands = 0 : i64, tpu.core_type = #tpu.core_type<tc>, window_params = [{transform_indices = @transform_0, window_bounds = array<i64: 16, 64>}, {transform_indices = @transform_1, window_bounds = array<i64: 64, 128>}, {transform_indices = @transform_2, window_bounds = array<i64: 16, 128>}, {transform_indices = @transform_3, window_bounds = array<i64: 8, 128>}, {transform_indices = @transform_4, window_bounds = array<i64: 8, 128>}]} {
    %c0 = arith.constant 0 : index
    %c0_0 = arith.constant 0 : index
    %0 = vector.load %arg2[%c0, %c0_0] : memref<16x64xbf16, #tpu.memory_space<vmem>>, vector<16x64xbf16>
    %c0_1 = arith.constant 0 : index
    %c0_2 = arith.constant 0 : index
    %1 = vector.load %arg3[%c0_1, %c0_2] : memref<64x128xbf16, #tpu.memory_space<vmem>>, vector<64x128xbf16>
    %cst = arith.constant dense<0.000000e+00> : vector<16x128xf32>
    %2 = tpu.matmul %0, %1, %cst {dimension_numbers = #tpu.dot_dimension_numbers<[1], [0], [0], [1], [0, 0, 1, 1], [], []>} : vector<16x64xbf16>, vector<64x128xbf16>, vector<16x128xf32> -> vector<16x128xf32>
    %c0_3 = arith.constant 0 : index
    %c0_4 = arith.constant 0 : index
    %3 = vector.load %arg4[%c0_3, %c0_4] : memref<16x128xf32, #tpu.memory_space<vmem>>, vector<16x128xf32>
    tpu.vector_store %arg4[%c0_3, %c0_4], %2 {strides = array<i32>} : memref<16x128xf32, #tpu.memory_space<vmem>>, vector<16x128xf32>,
    %cst_5 = arith.constant dense<0.000000e+00> : vector<128xf32>
    %4 = vector.multi_reduction <add>, %2, %cst_5 [0] : vector<16x128xf32> to vector<128xf32>
    %5 = vector.shape_cast %4 : vector<128xf32> to vector<1x128xf32>
    %6 = arith.mulf %2, %2 : vector<16x128xf32>
    %cst_6 = arith.constant dense<0.000000e+00> : vector<128xf32>
    %7 = vector.multi_reduction <add>, %6, %cst_6 [0] : vector<16x128xf32> to vector<128xf32>
    %8 = vector.shape_cast %7 : vector<128xf32> to vector<1x128xf32>
    %9 = vector.shape_cast %5 : vector<1x128xf32> to vector<1x128xf32>
    %10 = vector.broadcast %9 : vector<1x128xf32> to vector<8x128xf32>
    %c0_7 = arith.constant 0 : index
    %c0_8 = arith.constant 0 : index
    %11 = vector.load %arg5[%c0_7, %c0_8] : memref<8x128xf32, #tpu.memory_space<vmem>>, vector<8x128xf32>
    tpu.vector_store %arg5[%c0_7, %c0_8], %10 {strides = array<i32>} : memref<8x128xf32, #tpu.memory_space<vmem>>, vector<8x128xf32>,
    %12 = vector.shape_cast %8 : vector<1x128xf32> to vector<1x128xf32>
    %13 = vector.broadcast %12 : vector<1x128xf32> to vector<8x128xf32>
    %c0_9 = arith.constant 0 : index
    %c0_10 = arith.constant 0 : index
    %14 = vector.load %arg6[%c0_9, %c0_10] : memref<8x128xf32, #tpu.memory_space<vmem>>, vector<8x128xf32>
    tpu.vector_store %arg6[%c0_9, %c0_10], %13 {strides = array<i32>} : memref<8x128xf32, #tpu.memory_space<vmem>>, vector<8x128xf32>,
    return
  }
  func.func @transform_0(%arg0: i32, %arg1: i32) -> (i32, i32) {
    %c0_i32 = arith.constant 0 : i32
    %c0_i32_0 = arith.constant 0 : i32
    return %arg0, %c0_i32 : i32, i32
  }
  func.func @transform_1(%arg0: i32, %arg1: i32) -> (i32, i32) {
    %c0_i32 = arith.constant 0 : i32
    %c0_i32_0 = arith.constant 0 : i32
    return %c0_i32, %arg1 : i32, i32
  }
  func.func @transform_2(%arg0: i32, %arg1: i32) -> (i32, i32) {
    %c0_i32 = arith.constant 0 : i32
    return %arg0, %arg1 : i32, i32
  }
  func.func @transform_3(%arg0: i32, %arg1: i32) -> (i32, i32) {
    %c0_i32 = arith.constant 0 : i32
    return %arg0, %arg1 : i32, i32
  }
  func.func @transform_4(%arg0: i32, %arg1: i32) -> (i32, i32) {
    %c0_i32 = arith.constant 0 : i32
    return %arg0, %arg1 : i32, i32
  }
}

</mosaic_0001>

<bundles_post_ra>
// kernel: dwac_forward.20
= control target key start
LH: loop header
LB: loop body
LE: loop exit
PB: predicated region body
PF: predicated region fallthrough
CT: control target
= control target key end

     0   :  { %s1643_s15 = smov 0   ;;  %s1645_s16 = smov 0   ;;  %s2021_s0 = inlined_call_operand.vmem [shape: bf16[1024,27], index: 0, kind: input, shape index: {}]   ;;  %s2022_s1 = inlined_call_operand.vmem [shape: bf16[27,128], index: 1, kind: input, shape index: {}]   ;;  %s2023_s2 = inlined_call_operand.vmem [shape: f32[1024,128], index: 2, kind: output, shape index: {0}]   ;;  %s2024_s3 = inlined_call_operand.vmem [shape: f32[16,128], index: 3, kind: output, shape index: {1}]   ;;  %s2025_s4 = inlined_call_operand.vmem [shape: f32[16,128], index: 4, kind: output, shape index: {2}]  }
   0x1   :  { %s1647_s17 = smov 0  }
   0x2 LB: > { %s27_s18 = sadd.s32 1, %s1611_s16  ;;  %p1353_p0 = scmp.ge.s32.totalorder %s1615_s17, 1  ;;  %s1615_s17 = sphi %s1647_s17, %s15_s17   ;;  %s1611_s16 = sphi %s1645_s16, %s2027_s16   ;;  %s1607_s15 = sphi %s1643_s15, %s2026_s15  }
   0x3   : > { %p29_p1 = scmp.ge.s32.totalorder %s27_s18, 2  ;;  %p195_p2 = scmp.lt.s32.totalorder %s1615_s17, 3 }
   0x5   : > { %s2029_s18 = smov (%p29_p1, %s27_s18), 0  ;;  %p196_p3 = pnand %p1353_p0, %p195_p2 }
   0x6   : > { %s1354_s21 = sshll.u32 (!%p196_p3), %s1607_s15, 6  ;;  %p261_p5 = scmp.lt.s32.totalorder (!%p196_p3), %s1607_s15, 1 }
   0x7   : > { %199 = sbr.rel (%p196_p3) target bundleno = 365 (0x16d), region = 28  ;;  %p243_p4 = scmp.lt.s32.totalorder (!%p196_p3), %s1354_s21, 127 }
   0xc   : > { %v1559_v0 = vld [vmem:[%s2022_s1 + $0x8] sm:$0x3f]   ;;  %vm612_vm0 = vcmask 1044480   ;;  %vm613_vm1 = vcmask 1045504   ;;  %v1617_v1 = vmov 65535   ;;  %v1560_v5 = vld [vmem:[%s2022_s1] sm:$0xff]  }
   0xd   : > { %v614_v2 = vsel %vm612_vm0, 4294967295, %v1617_v1  ;;  %s2031_s21 = smov (!%p243_p4, %s1354_s21), 127  ;;  %vm515_vm2 = vcmask 220160   ;;  %s2033_s15 = smov (!%p261_p5, %s1607_s15), 1 }
   0xe   : > { %v615_v3 = vsel %vm613_vm1, %v614_v2, 0  ;;  %s1355_s24 = sshll.u32 %s2031_s21, 2  ;;  %s1357_s28 = sshll.u32 %s2031_s21, 3 }
   0xf   : > { %v617_v4 = vand.u32 %v1559_v0, %v615_v3  ;;  %s1676_s27 = scalar_lea.vmem %s2021_s0, %s1355_s24  ;;  %s1746_s5 = scalar_lea.vmem %s2023_s2, %s1357_s28 }
  0x10   : > { %v1561_v6 = vld [vmem:[%s1676_s27] sm:$0xff]   ;;  %v1562_v7 = vld [vmem:[%s1676_s27 + $0x8] sm:$0xff]   ;;  %v1563_v8 = vld [vmem:[%s1676_s27 + $0x10] sm:$0xff]   ;;  %s1358_s6 = sshll.u32 %s2033_s15, 3 }
  0x11   : > { %1462 = vmatprep.subr.bf16.mxu0 %v617_v4  ;;  %1530 = vmatprep.subr.bf16.mxu1 %v617_v4  ;;  %v1564_v9 = vld [vmem:[%s1676_s27 + $0x18] sm:$0xff]   ;;  %v1565_v10 = vld [vmem:[%s1676_s27 + $0x20] sm:$0xff]   ;;  %v1566_v11 = vld [vmem:[%s1676_s27 + $0x28] sm:$0xff]   ;;  %s267_s9 = scalar_lea.vmem %s2024_s3, %s1358_s6  ;;  %s274_s12 = scalar_lea.vmem %s2025_s4, %s1358_s6 }
  0x12   : > { %1463 = vmatpush3.bf16.msra.mxu0 %v617_v4  ;;  %1532 = vmatpush3.bf16.msra.mxu1 %v617_v4  ;;  %v1567_v12 = vld [vmem:[%s1676_s27 + $0x30] sm:$0xff]   ;;  %v1577_v13 = vld [vmem:[%s1676_s27 + $0x80] sm:$0xff]   ;;  %v1578_v14 = vld [vmem:[%s1676_s27 + $0x88] sm:$0xff]  }
  0x13   : > { %1464 = vmatprep.subr.bf16.mxu0 %v1560_v5  ;;  %1531 = vmatprep.subr.bf16.mxu1 %v1560_v5  ;;  %v1579_v15 = vld [vmem:[%s1676_s27 + $0x90] sm:$0xff]   ;;  %v1580_v16 = vld [vmem:[%s1676_s27 + $0x98] sm:$0xff]   ;;  %v1581_v17 = vld [vmem:[%s1676_s27 + $0xa0] sm:$0xff]  }
  0x14   : > { %1466 = vmatprep.mubr.msk.bf16.mxu0 %vm515_vm2, %v1561_v6  ;;  %1498 = vmatprep.mubr.msk.bf16.mxu1 %vm515_vm2, %v1577_v13  ;;  %v1568_v18 = vld [vmem:[%s1676_s27 + $0x38] sm:$0xff]   ;;  %v1569_v19 = vld [vmem:[%s1676_s27 + $0x40] sm:$0xff]   ;;  %v1582_v20 = vld [vmem:[%s1676_s27 + $0xa8] sm:$0xff]  }
  0x15   : > { %v1583_v21 = vld [vmem:[%s1676_s27 + $0xb0] sm:$0xff]   ;;  %v1570_v22 = vld [vmem:[%s1676_s27 + $0x48] sm:$0xff]   ;;  %v1584_v24 = vld [vmem:[%s1676_s27 + $0xb8] sm:$0xff]  }
  0x16   : > { %1465 = vmatpush3.bf16.msra.mxu0 %v1560_v5  ;;  %1533 = vmatpush3.bf16.msra.mxu1 %v1560_v5  ;;  %v1571_v23 = vld [vmem:[%s1676_s27 + $0x50] sm:$0xff]   ;;  %v1585_v25 = vld [vmem:[%s1676_s27 + $0xc0] sm:$0xff]   ;;  %v1572_v26 = vld [vmem:[%s1676_s27 + $0x58] sm:$0xff]  }
  0x17   : > { %v1573_v27 = vld [vmem:[%s1676_s27 + $0x60] sm:$0xff]   ;;  %v1586_v28 = vld [vmem:[%s1676_s27 + $0xc8] sm:$0xff]   ;;  %v1587_v29 = vld [vmem:[%s1676_s27 + $0xd0] sm:$0xff]  }
  0x18   : > { %v1574_v30 = vld [vmem:[%s1676_s27 + $0x68] sm:$0xff]   ;;  %v1575_v31 = vld [vmem:[%s1676_s27 + $0x70] sm:$0xff]   ;;  %v1588_v32 = vld [vmem:[%s1676_s27 + $0xd8] sm:$0xff]  }
  0x19   : > { %1467 = vmatmul.mubr.msk.bf16.vlgmr.msra.gmra.mxu0 %vm515_vm2, %v1562_v7  ;;  %1499 = vmatmul.mubr.msk.bf16.vlgmr.msra.gmra.mxu1 %vm515_vm2, %v1578_v14  ;;  %v1589_v33 = vld [vmem:[%s1676_s27 + $0xe0] sm:$0xff]   ;;  %v1576_v34 = vld [vmem:[%s1676_s27 + $0x78] sm:$0xff]   ;;  %v1590_v35 = vld [vmem:[%s1676_s27 + $0xe8] sm:$0xff]  }
  0x1a   : > { %1470 = vmatprep.mubr.msk.bf16.mxu0 %vm515_vm2, %v1563_v8  ;;  %1502 = vmatprep.mubr.msk.bf16.mxu1 %vm515_vm2, %v1579_v15  ;;  %v1591_v36 = vld [vmem:[%s1676_s27 + $0xf0] sm:$0xff]   ;;  %v1592_v37 = vld [vmem:[%s1676_s27 + $0xf8] sm:$0xff]  }
  0x21   : > { %1471 = vmatmul.mubr.msk.bf16.gmra.mxu0 %vm515_vm2, %v1564_v9  ;;  %1503 = vmatmul.mubr.msk.bf16.gmra.mxu1 %vm515_vm2, %v1580_v16 }
  0x22   : > { %1474 = vmatprep.mubr.msk.bf16.mxu0 %vm515_vm2, %v1565_v10  ;;  %1506 = vmatprep.mubr.msk.bf16.mxu1 %vm515_vm2, %v1581_v17 }
  0x29   : > { %1475 = vmatmul.mubr.msk.bf16.gmra.mxu0 %vm515_vm2, %v1566_v11  ;;  %1507 = vmatmul.mubr.msk.bf16.gmra.mxu1 %vm515_vm2, %v1582_v20 }
  0x2a   : > { %1478 = vmatprep.mubr.msk.bf16.mxu0 %vm515_vm2, %v1567_v12  ;;  %1510 = vmatprep.mubr.msk.bf16.mxu1 %vm515_vm2, %v1583_v21 }
  0x31   : > { %1479 = vmatmul.mubr.msk.bf16.gmra.mxu0 %vm515_vm2, %v1568_v18  ;;  %1511 = vmatmul.mubr.msk.bf16.gmra.mxu1 %vm515_vm2, %v1584_v24 }
  0x32   : > { %1482 = vmatprep.mubr.msk.bf16.mxu0 %vm515_vm2, %v1569_v19  ;;  %1514 = vmatprep.mubr.msk.bf16.mxu1 %vm515_vm2, %v1585_v25 }
  0x39   : > { %1483 = vmatmul.mubr.msk.bf16.gmra.mxu0 %vm515_vm2, %v1570_v22  ;;  %1515 = vmatmul.mubr.msk.bf16.gmra.mxu1 %vm515_vm2, %v1586_v28 }
  0x3a   : > { %1486 = vmatprep.mubr.msk.bf16.mxu0 %vm515_vm2, %v1571_v23  ;;  %1518 = vmatprep.mubr.msk.bf16.mxu1 %vm515_vm2, %v1587_v29 }
  0x41   : > { %1487 = vmatmul.mubr.msk.bf16.gmra.mxu0 %vm515_vm2, %v1572_v26  ;;  %1519 = vmatmul.mubr.msk.bf16.gmra.mxu1 %vm515_vm2, %v1588_v32 }
  0x42   : > { %1490 = vmatprep.mubr.msk.bf16.mxu0 %vm515_vm2, %v1573_v27  ;;  %1522 = vmatprep.mubr.msk.bf16.mxu1 %vm515_vm2, %v1589_v33 }
  0x49   : > { %1491 = vmatmul.mubr.msk.bf16.gmra.mxu0 %vm515_vm2, %v1574_v30  ;;  %1523 = vmatmul.mubr.msk.bf16.gmra.mxu1 %vm515_vm2, %v1590_v35 }
  0x4a   : > { %1494 = vmatprep.mubr.msk.bf16.mxu0 %vm515_vm2, %v1575_v31  ;;  %1526 = vmatprep.mubr.msk.bf16.mxu1 %vm515_vm2, %v1591_v36 }
  0x51   : > { %1495 = vmatmul.mubr.msk.bf16.gmra.mxu0 %vm515_vm2, %v1576_v34  ;;  %1527 = vmatmul.mubr.msk.bf16.gmra.mxu1 %vm515_vm2, %v1592_v37 }
  0xd9   : > { %v1468_v38 = vpop.f32.mrf.mxu0  ;;  %v1755_v58 = vpop.f32.mrf.mxu1 }
  0xda   : > { %910 = vst [vmem:[%s1746_s5 + $0x10] sm:$0xff] %v1468_v38  ;;  %v1043_v46 = vmul.f32 %v1468_v38, %v1468_v38  ;;  %942 = vst [vmem:[%s1746_s5 + $0x110] sm:$0xff] %v1755_v58 }
  0xdb   : > { %v653_v39 = vpop.f32.mrf.mxu0  ;;  %v1760_v63 = vpop.f32.mrf.mxu1 }
  0xdc   : > { %908 = vst [vmem:[%s1746_s5] sm:$0xff] %v653_v39  ;;  %v1041_v42 = vmul.f32 %v653_v39, %v653_v39  ;;  %940 = vst [vmem:[%s1746_s5 + $0x100] sm:$0xff] %v1760_v63 }
  0xdd   : > { %v1469_v40 = vpop.f32.mrf.mxu0  ;;  %v1765_v4 = vpop.f32.mrf.mxu1 }
  0xde   : > { %911 = vst [vmem:[%s1746_s5 + $0x18] sm:$0xff] %v1469_v40  ;;  %v1044_v50 = vmul.f32 %v1469_v40, %v1469_v40  ;;  %943 = vst [vmem:[%s1746_s5 + $0x118] sm:$0xff] %v1765_v4 }
  0xdf   : > { %v656_v41 = vpop.f32.mrf.mxu0  ;;  %v1770_v9 = vpop.f32.mrf.mxu1 }
  0xe0   : > { %909 = vst [vmem:[%s1746_s5 + $0x8] sm:$0xff] %v656_v41  ;;  %v972_v43 = vadd.f32 %v656_v41, %v653_v39  ;;  %v1042_v44 = vmul.f32 %v656_v41, %v656_v41  ;;  %941 = vst [vmem:[%s1746_s5 + $0x108] sm:$0xff] %v1770_v9 }
  0xe1   : > { %v1472_v45 = vpop.f32.mrf.mxu0  ;;  %v1775_v14 = vpop.f32.mrf.mxu1 }
  0xe2   : > { %v973_v47 = vadd.f32 %v1468_v38, %v972_v43  ;;  %v1105_v48 = vadd.f32 %v1042_v44, %v1041_v42  ;;  %914 = vst [vmem:[%s1746_s5 + $0x30] sm:$0xff] %v1472_v45  ;;  %v1047_v0 = vmul.f32 %v1472_v45, %v1472_v45  ;;  %946 = vst [vmem:[%s1746_s5 + $0x130] sm:$0xff] %v1775_v14 }
  0xe3   : > { %v669_v49 = vpop.f32.mrf.mxu0  ;;  %v1780_v19 = vpop.f32.mrf.mxu1 }
  0xe4   : > { %v1106_v51 = vadd.f32 %v1105_v48, %v1043_v46  ;;  %912 = vst [vmem:[%s1746_s5 + $0x20] sm:$0xff] %v669_v49  ;;  %v974_v52 = vadd.f32 %v1469_v40, %v973_v47  ;;  %v1045_v55 = vmul.f32 %v669_v49, %v669_v49  ;;  %944 = vst [vmem:[%s1746_s5 + $0x120] sm:$0xff] %v1780_v19 }
  0xe5   : > { %v1473_v53 = vpop.f32.mrf.mxu0  ;;  %v1785_v24 = vpop.f32.mrf.mxu1 }
  0xe6   : > { %v975_v54 = vadd.f32 %v974_v52, %v669_v49  ;;  %v1107_v56 = vadd.f32 %v1106_v51, %v1044_v50  ;;  %915 = vst [vmem:[%s1746_s5 + $0x38] sm:$0xff] %v1473_v53  ;;  %v1048_v5 = vmul.f32 %v1473_v53, %v1473_v53  ;;  %947 = vst [vmem:[%s1746_s5 + $0x138] sm:$0xff] %v1785_v24 }
  0xe7   : > { %v672_v57 = vpop.f32.mrf.mxu0  ;;  %v1790_v29 = vpop.f32.mrf.mxu1 }
  0xe8   : > { %v1108_v59 = vadd.f32 %v1107_v56, %v1045_v55  ;;  %913 = vst [vmem:[%s1746_s5 + $0x28] sm:$0xff] %v672_v57  ;;  %v976_v60 = vadd.f32 %v975_v54, %v672_v57  ;;  %v1046_v61 = vmul.f32 %v672_v57, %v672_v57  ;;  %945 = vst [vmem:[%s1746_s5 + $0x128] sm:$0xff] %v1790_v29 }
  0xe9   : > { %v1476_v62 = vpop.f32.mrf.mxu0  ;;  %v1795_v34 = vpop.f32.mrf.mxu1 }
  0xea   : > { %v977_v1 = vadd.f32 %v1472_v45, %v976_v60  ;;  %v1109_v2 = vadd.f32 %v1108_v59, %v1046_v61  ;;  %918 = vst [vmem:[%s1746_s5 + $0x50] sm:$0xff] %v1476_v62  ;;  %v1051_v20 = vmul.f32 %v1476_v62, %v1476_v62  ;;  %950 = vst [vmem:[%s1746_s5 + $0x150] sm:$0xff] %v1795_v34 }
  0xeb   : > { %v685_v3 = vpop.f32.mrf.mxu0  ;;  %v1800_v39 = vpop.f32.mrf.mxu1 }
  0xec   : > { %v1110_v6 = vadd.f32 %v1109_v2, %v1047_v0  ;;  %916 = vst [vmem:[%s1746_s5 + $0x40] sm:$0xff] %v685_v3  ;;  %v978_v7 = vadd.f32 %v1473_v53, %v977_v1  ;;  %v1049_v11 = vmul.f32 %v685_v3, %v685_v3  ;;  %948 = vst [vmem:[%s1746_s5 + $0x140] sm:$0xff] %v1800_v39 }
  0xed   : > { %v1477_v8 = vpop.f32.mrf.mxu0  ;;  %v1805_v44 = vpop.f32.mrf.mxu1 }
  0xee   : > { %v979_v10 = vadd.f32 %v978_v7, %v685_v3  ;;  %v1111_v12 = vadd.f32 %v1110_v6, %v1048_v5  ;;  %919 = vst [vmem:[%s1746_s5 + $0x58] sm:$0xff] %v1477_v8  ;;  %v1052_v25 = vmul.f32 %v1477_v8, %v1477_v8  ;;  %951 = vst [vmem:[%s1746_s5 + $0x158] sm:$0xff] %v1805_v44 }
  0xef   : > { %v688_v13 = vpop.f32.mrf.mxu0  ;;  %v1810_v49 = vpop.f32.mrf.mxu1 }
  0xf0   : > { %v1112_v15 = vadd.f32 %v1111_v12, %v1049_v11  ;;  %917 = vst [vmem:[%s1746_s5 + $0x48] sm:$0xff] %v688_v13  ;;  %v980_v16 = vadd.f32 %v979_v10, %v688_v13  ;;  %v1050_v17 = vmul.f32 %v688_v13, %v688_v13  ;;  %949 = vst [vmem:[%s1746_s5 + $0x148] sm:$0xff] %v1810_v49 }
  0xf1   : > { %v1480_v18 = vpop.f32.mrf.mxu0  ;;  %v1815_v54 = vpop.f32.mrf.mxu1 }
  0xf2   : > { %v981_v21 = vadd.f32 %v1476_v62, %v980_v16  ;;  %v1113_v22 = vadd.f32 %v1112_v15, %v1050_v17  ;;  %922 = vst [vmem:[%s1746_s5 + $0x70] sm:$0xff] %v1480_v18  ;;  %v1055_v40 = vmul.f32 %v1480_v18, %v1480_v18  ;;  %954 = vst [vmem:[%s1746_s5 + $0x170] sm:$0xff] %v1815_v54 }
  0xf3   : > { %v701_v23 = vpop.f32.mrf.mxu0  ;;  %v1820_v60 = vpop.f32.mrf.mxu1 }
  0xf4   : > { %v1114_v26 = vadd.f32 %v1113_v22, %v1051_v20  ;;  %920 = vst [vmem:[%s1746_s5 + $0x60] sm:$0xff] %v701_v23  ;;  %v982_v27 = vadd.f32 %v1477_v8, %v981_v21  ;;  %v1053_v31 = vmul.f32 %v701_v23, %v701_v23  ;;  %952 = vst [vmem:[%s1746_s5 + $0x160] sm:$0xff] %v1820_v60 }
  0xf5   : > { %v1481_v28 = vpop.f32.mrf.mxu0  ;;  %v1825_v2 = vpop.f32.mrf.mxu1 }
  0xf6   : > { %v983_v30 = vadd.f32 %v982_v27, %v701_v23  ;;  %v1115_v32 = vadd.f32 %v1114_v26, %v1052_v25  ;;  %923 = vst [vmem:[%s1746_s5 + $0x78] sm:$0xff] %v1481_v28  ;;  %v1056_v45 = vmul.f32 %v1481_v28, %v1481_v28  ;;  %955 = vst [vmem:[%s1746_s5 + $0x178] sm:$0xff] %v1825_v2 }
  0xf7   : > { %v704_v33 = vpop.f32.mrf.mxu0  ;;  %v1830_v8 = vpop.f32.mrf.mxu1 }
  0xf8   : > { %v1116_v35 = vadd.f32 %v1115_v32, %v1053_v31  ;;  %921 = vst [vmem:[%s1746_s5 + $0x68] sm:$0xff] %v704_v33  ;;  %v984_v36 = vadd.f32 %v983_v30, %v704_v33  ;;  %v1054_v37 = vmul.f32 %v704_v33, %v704_v33  ;;  %953 = vst [vmem:[%s1746_s5 + $0x168] sm:$0xff] %v1830_v8 }
  0xf9   : > { %v1484_v38 = vpop.f32.mrf.mxu0  ;;  %v1835_v15 = vpop.f32.mrf.mxu1 }
  0xfa   : > { %v985_v41 = vadd.f32 %v1480_v18, %v984_v36  ;;  %v1117_v42 = vadd.f32 %v1116_v35, %v1054_v37  ;;  %926 = vst [vmem:[%s1746_s5 + $0x90] sm:$0xff] %v1484_v38  ;;  %v1059_v61 = vmul.f32 %v1484_v38, %v1484_v38  ;;  %958 = vst [vmem:[%s1746_s5 + $0x190] sm:$0xff] %v1835_v15 }
  0xfb   : > { %v717_v43 = vpop.f32.mrf.mxu0  ;;  %v1840_v21 = vpop.f32.mrf.mxu1 }
  0xfc   : > { %v1118_v46 = vadd.f32 %v1117_v42, %v1055_v40  ;;  %924 = vst [vmem:[%s1746_s5 + $0x80] sm:$0xff] %v717_v43  ;;  %v986_v47 = vadd.f32 %v1481_v28, %v985_v41  ;;  %v1057_v51 = vmul.f32 %v717_v43, %v717_v43  ;;  %956 = vst [vmem:[%s1746_s5 + $0x180] sm:$0xff] %v1840_v21 }
  0xfd   : > { %v1485_v48 = vpop.f32.mrf.mxu0  ;;  %v1845_v27 = vpop.f32.mrf.mxu1 }
  0xfe   : > { %v987_v50 = vadd.f32 %v986_v47, %v717_v43  ;;  %v1119_v52 = vadd.f32 %v1118_v46, %v1056_v45  ;;  %927 = vst [vmem:[%s1746_s5 + $0x98] sm:$0xff] %v1485_v48  ;;  %v1060_v3 = vmul.f32 %v1485_v48, %v1485_v48  ;;  %959 = vst [vmem:[%s1746_s5 + $0x198] sm:$0xff] %v1845_v27 }
  0xff   : > { %v720_v53 = vpop.f32.mrf.mxu0  ;;  %v1850_v33 = vpop.f32.mrf.mxu1 }
 0x100   : > { %v1120_v55 = vadd.f32 %v1119_v52, %v1057_v51  ;;  %925 = vst [vmem:[%s1746_s5 + $0x88] sm:$0xff] %v720_v53  ;;  %v988_v56 = vadd.f32 %v987_v50, %v720_v53  ;;  %v1058_v57 = vmul.f32 %v720_v53, %v720_v53  ;;  %957 = vst [vmem:[%s1746_s5 + $0x188] sm:$0xff] %v1850_v33 }
 0x101   : > { %v1488_v59 = vpop.f32.mrf.mxu0  ;;  %v1855_v40 = vpop.f32.mrf.mxu1 }
 0x102   : > { %v989_v62 = vadd.f32 %v1484_v38, %v988_v56  ;;  %v1121_v0 = vadd.f32 %v1120_v55, %v1058_v57  ;;  %930 = vst [vmem:[%s1746_s5 + $0xb0] sm:$0xff] %v1488_v59  ;;  %v1063_v22 = vmul.f32 %v1488_v59, %v1488_v59  ;;  %962 = vst [vmem:[%s1746_s5 + $0x1b0] sm:$0xff] %v1855_v40 }
 0x103   : > { %v733_v1 = vpop.f32.mrf.mxu0  ;;  %v1860_v46 = vpop.f32.mrf.mxu1 }
 0x104   : > { %v1122_v5 = vadd.f32 %v1121_v0, %v1059_v61  ;;  %928 = vst [vmem:[%s1746_s5 + $0xa0] sm:$0xff] %v733_v1  ;;  %v990_v6 = vadd.f32 %v1485_v48, %v989_v62  ;;  %v1061_v11 = vmul.f32 %v733_v1, %v733_v1  ;;  %960 = vst [vmem:[%s1746_s5 + $0x1a0] sm:$0xff] %v1860_v46 }
 0x105   : > { %v1489_v7 = vpop.f32.mrf.mxu0  ;;  %v1865_v52 = vpop.f32.mrf.mxu1 }
 0x106   : > { %v991_v10 = vadd.f32 %v990_v6, %v733_v1  ;;  %v1123_v12 = vadd.f32 %v1122_v5, %v1060_v3  ;;  %931 = vst [vmem:[%s1746_s5 + $0xb8] sm:$0xff] %v1489_v7  ;;  %v1064_v28 = vmul.f32 %v1489_v7, %v1489_v7  ;;  %963 = vst [vmem:[%s1746_s5 + $0x1b8] sm:$0xff] %v1865_v52 }
 0x107   : > { %v736_v13 = vpop.f32.mrf.mxu0 }
 0x108   : > { %v1124_v16 = vadd.f32 %v1123_v12, %v1061_v11  ;;  %929 = vst [vmem:[%s1746_s5 + $0xa8] sm:$0xff] %v736_v13  ;;  %v992_v17 = vadd.f32 %v991_v10, %v736_v13  ;;  %v1062_v18 = vmul.f32 %v736_v13, %v736_v13 }
 0x109   : > { %v1492_v20 = vpop.f32.mrf.mxu0 }
 0x10a   : > { %v993_v23 = vadd.f32 %v1488_v59, %v992_v17  ;;  %v1125_v25 = vadd.f32 %v1124_v16, %v1062_v18  ;;  %934 = vst [vmem:[%s1746_s5 + $0xd0] sm:$0xff] %v1492_v20  ;;  %v1067_v47 = vmul.f32 %v1492_v20, %v1492_v20  ;;  %v1870_v59 = vpop.f32.mrf.mxu1 }
 0x10b   : > { %v749_v26 = vpop.f32.mrf.mxu0  ;;  %961 = vst [vmem:[%s1746_s5 + $0x1a8] sm:$0xff] %v1870_v59 }
 0x10c   : > { %v1126_v30 = vadd.f32 %v1125_v25, %v1063_v22  ;;  %932 = vst [vmem:[%s1746_s5 + $0xc0] sm:$0xff] %v749_v26  ;;  %v994_v31 = vadd.f32 %v1489_v7, %v993_v23  ;;  %v1065_v36 = vmul.f32 %v749_v26, %v749_v26  ;;  %v1875_v3 = vpop.f32.mrf.mxu1  ;;  %v1073_v23 = vmul.f32 %v1760_v63, %v1760_v63 }
 0x10d   : > { %v1493_v32 = vpop.f32.mrf.mxu0  ;;  %966 = vst [vmem:[%s1746_s5 + $0x1d0] sm:$0xff] %v1875_v3 }
 0x10e   : > { %v995_v35 = vadd.f32 %v994_v31, %v749_v26  ;;  %v1127_v37 = vadd.f32 %v1126_v30, %v1064_v28  ;;  %935 = vst [vmem:[%s1746_s5 + $0xd8] sm:$0xff] %v1493_v32  ;;  %v1068_v53 = vmul.f32 %v1493_v32, %v1493_v32  ;;  %v1880_v10 = vpop.f32.mrf.mxu1  ;;  %v1074_v31 = vmul.f32 %v1770_v9, %v1770_v9 }
 0x10f   : > { %v752_v38 = vpop.f32.mrf.mxu0  ;;  %964 = vst [vmem:[%s1746_s5 + $0x1c0] sm:$0xff] %v1880_v10 }
 0x110   : > { %v1128_v41 = vadd.f32 %v1127_v37, %v1065_v36  ;;  %933 = vst [vmem:[%s1746_s5 + $0xc8] sm:$0xff] %v752_v38  ;;  %v996_v42 = vadd.f32 %v995_v35, %v752_v38  ;;  %v1066_v43 = vmul.f32 %v752_v38, %v752_v38  ;;  %v1884_v16 = vpop.f32.mrf.mxu1  ;;  %v1075_v36 = vmul.f32 %v1755_v58, %v1755_v58 }
 0x111   : > { %v1496_v45 = vpop.f32.mrf.mxu0  ;;  %967 = vst [vmem:[%s1746_s5 + $0x1d8] sm:$0xff] %v1884_v16 }
 0x112   : > { %v997_v48 = vadd.f32 %v1492_v20, %v996_v42  ;;  %v1129_v50 = vadd.f32 %v1128_v41, %v1066_v43  ;;  %938 = vst [vmem:[%s1746_s5 + $0xf0] sm:$0xff] %v1496_v45  ;;  %v1071_v11 = vmul.f32 %v1496_v45, %v1496_v45  ;;  %v1888_v22 = vpop.f32.mrf.mxu1  ;;  %v1076_v41 = vmul.f32 %v1765_v4, %v1765_v4 }
 0x113   : > { %v765_v51 = vpop.f32.mrf.mxu0  ;;  %965 = vst [vmem:[%s1746_s5 + $0x1c8] sm:$0xff] %v1888_v22 }
 0x114   : > { %v1130_v55 = vadd.f32 %v1129_v50, %v1067_v47  ;;  %936 = vst [vmem:[%s1746_s5 + $0xe0] sm:$0xff] %v765_v51  ;;  %v998_v56 = vadd.f32 %v1493_v32, %v997_v48  ;;  %v1069_v62 = vmul.f32 %v765_v51, %v765_v51  ;;  %v1895_v28 = vpop.f32.mrf.mxu1 }
 0x115   : > { %v1497_v57 = vpop.f32.mrf.mxu0  ;;  %970 = vst [vmem:[%s1746_s5 + $0x1f0] sm:$0xff] %v1895_v28 }
 0x116   : > { %v999_v61 = vadd.f32 %v998_v56, %v765_v51  ;;  %v1131_v0 = vadd.f32 %v1130_v55, %v1068_v53  ;;  %939 = vst [vmem:[%s1746_s5 + $0xf8] sm:$0xff] %v1497_v57  ;;  %v1072_v17 = vmul.f32 %v1497_v57, %v1497_v57  ;;  %v1902_v35 = vpop.f32.mrf.mxu1  ;;  %v1078_v51 = vmul.f32 %v1790_v29, %v1790_v29 }
 0x117   : > { %v768_v1 = vpop.f32.mrf.mxu0  ;;  %968 = vst [vmem:[%s1746_s5 + $0x1e0] sm:$0xff] %v1902_v35  ;;  %v1080_v56 = vmul.f32 %v1785_v24, %v1785_v24 }
 0x118   : > { %v1132_v5 = vadd.f32 %v1131_v0, %v1069_v62  ;;  %937 = vst [vmem:[%s1746_s5 + $0xe8] sm:$0xff] %v768_v1  ;;  %v1000_v6 = vadd.f32 %v999_v61, %v768_v1  ;;  %v1070_v7 = vmul.f32 %v768_v1, %v768_v1  ;;  %v1909_v38 = vpop.f32.mrf.mxu1  ;;  %v1081_v62 = vmul.f32 %v1800_v39, %v1800_v39 }
 0x119   : > { %971 = vst [vmem:[%s1746_s5 + $0x1f8] sm:$0xff] %v1909_v38 }
 0x11a   : > { %v1001_v12 = vadd.f32 %v1496_v45, %v1000_v6  ;;  %v1133_v13 = vadd.f32 %v1132_v5, %v1070_v7  ;;  %v1916_v43 = vpop.f32.mrf.mxu1  ;;  %v1082_v5 = vmul.f32 %v1810_v49, %v1810_v49 }
 0x11b   : > { %969 = vst [vmem:[%s1746_s5 + $0x1e8] sm:$0xff] %v1916_v43 }
 0x11c   : > { %v1002_v18 = vadd.f32 %v1497_v57, %v1001_v12  ;;  %v1134_v20 = vadd.f32 %v1133_v13, %v1071_v11  ;;  %v1085_v13 = vmul.f32 %v1820_v60, %v1820_v60 }
 0x11e   : > { %v1135_v25 = vadd.f32 %v1134_v20, %v1072_v17  ;;  %v1003_v26 = vadd.f32 %v1002_v18, %v1760_v63  ;;  %v1086_v20 = vmul.f32 %v1830_v8, %v1830_v8 }
 0x120   : > { %v1004_v30 = vadd.f32 %v1003_v26, %v1770_v9  ;;  %v1136_v32 = vadd.f32 %v1135_v25, %v1073_v23 }
 0x122   : > { %v1005_v63 = vadd.f32 %v1755_v58, %v1004_v30  ;;  %v1137_v37 = vadd.f32 %v1136_v32, %v1074_v31  ;;  %v1077_v58 = vmul.f32 %v1780_v19, %v1780_v19  ;;  %v1089_v31 = vmul.f32 %v1840_v21, %v1840_v21 }
 0x124   : > { %v1138_v9 = vadd.f32 %v1137_v37, %v1075_v36  ;;  %v1006_v42 = vadd.f32 %v1765_v4, %v1005_v63  ;;  %v1079_v4 = vmul.f32 %v1775_v14, %v1775_v14  ;;  %v1090_v63 = vmul.f32 %v1850_v33, %v1850_v33 }
 0x126   : > { %v1007_v45 = vadd.f32 %v1006_v42, %v1780_v19  ;;  %v1139_v47 = vadd.f32 %v1138_v9, %v1076_v41 }
 0x128   : > { %v1140_v48 = vadd.f32 %v1139_v47, %v1077_v58  ;;  %v1008_v50 = vadd.f32 %v1007_v45, %v1790_v29  ;;  %v1093_v45 = vmul.f32 %v1860_v46, %v1860_v46 }
 0x12a   : > { %v1009_v53 = vadd.f32 %v1775_v14, %v1008_v50  ;;  %v1141_v55 = vadd.f32 %v1140_v48, %v1078_v51  ;;  %v1083_v14 = vmul.f32 %v1795_v34, %v1795_v34  ;;  %v1094_v48 = vmul.f32 %v1870_v59, %v1870_v59 }
 0x12c   : > { %v1142_v57 = vadd.f32 %v1141_v55, %v1079_v4  ;;  %v1010_v19 = vadd.f32 %v1785_v24, %v1009_v53  ;;  %v1084_v24 = vmul.f32 %v1805_v44, %v1805_v44  ;;  %v1097_v55 = vmul.f32 %v1880_v10, %v1880_v10 }
 0x12e   : > { %v1011_v61 = vadd.f32 %v1010_v19, %v1800_v39  ;;  %v1143_v0 = vadd.f32 %v1142_v57, %v1080_v56  ;;  %v1098_v19 = vmul.f32 %v1888_v22, %v1888_v22 }
 0x130   : > { %v1144_v1 = vadd.f32 %v1143_v0, %v1081_v62  ;;  %v1012_v29 = vadd.f32 %v1011_v61, %v1810_v49 }
 0x132   : > { %v1013_v6 = vadd.f32 %v1795_v34, %v1012_v29  ;;  %v1145_v7 = vadd.f32 %v1144_v1, %v1082_v5  ;;  %v1087_v34 = vmul.f32 %v1815_v54, %v1815_v54  ;;  %v1101_v29 = vmul.f32 %v1902_v35, %v1902_v35 }
 0x134   : > { %v1146_v11 = vadd.f32 %v1145_v7, %v1083_v14  ;;  %v1014_v12 = vadd.f32 %v1805_v44, %v1013_v6  ;;  %v1088_v44 = vmul.f32 %v1825_v2, %v1825_v2  ;;  %v1103_v6 = vmul.f32 %v1895_v28, %v1895_v28 }
 0x136   : > { %v1015_v39 = vadd.f32 %v1014_v12, %v1820_v60  ;;  %v1147_v17 = vadd.f32 %v1146_v11, %v1084_v24 }
 0x138   : > { %v1148_v18 = vadd.f32 %v1147_v17, %v1085_v13  ;;  %v1016_v49 = vadd.f32 %v1015_v39, %v1830_v8 }
 0x13a   : > { %v1017_v23 = vadd.f32 %v1815_v54, %v1016_v49  ;;  %v1149_v25 = vadd.f32 %v1148_v18, %v1086_v20  ;;  %v1091_v54 = vmul.f32 %v1835_v15, %v1835_v15 }
 0x13c   : > { %v1150_v26 = vadd.f32 %v1149_v25, %v1087_v34  ;;  %v1018_v30 = vadd.f32 %v1825_v2, %v1017_v23  ;;  %v1092_v2 = vmul.f32 %v1845_v27, %v1845_v27 }
 0x13e   : > { %v1019_v60 = vadd.f32 %v1018_v30, %v1840_v21  ;;  %v1151_v32 = vadd.f32 %v1150_v26, %v1088_v44 }
 0x140   : > { %v1152_v36 = vadd.f32 %v1151_v32, %v1089_v31  ;;  %v1020_v8 = vadd.f32 %v1019_v60, %v1850_v33 }
 0x142   : > { %v1021_v37 = vadd.f32 %v1835_v15, %v1020_v8  ;;  %v1153_v41 = vadd.f32 %v1152_v36, %v1090_v63  ;;  %v1095_v15 = vmul.f32 %v1855_v40, %v1855_v40 }
 0x144   : > { %v1154_v9 = vadd.f32 %v1153_v41, %v1091_v54  ;;  %v1022_v42 = vadd.f32 %v1845_v27, %v1021_v37  ;;  %v1096_v27 = vmul.f32 %v1865_v52, %v1865_v52 }
 0x146   : > { %v1023_v21 = vadd.f32 %v1022_v42, %v1860_v46  ;;  %v1155_v58 = vadd.f32 %v1154_v9, %v1092_v2 }
 0x148   : > { %v1156_v47 = vadd.f32 %v1155_v58, %v1093_v45  ;;  %v1024_v33 = vadd.f32 %v1023_v21, %v1870_v59 }
 0x14a   : > { %v1025_v50 = vadd.f32 %v1855_v40, %v1024_v33  ;;  %v1157_v51 = vadd.f32 %v1156_v47, %v1094_v48  ;;  %v1099_v40 = vmul.f32 %v1875_v3, %v1875_v3 }
 0x14c   : > { %v1158_v4 = vadd.f32 %v1157_v51, %v1095_v15  ;;  %v1026_v53 = vadd.f32 %v1865_v52, %v1025_v50  ;;  %v1100_v52 = vmul.f32 %v1884_v16, %v1884_v16 }
 0x14e   : > { %v1027_v46 = vadd.f32 %v1026_v53, %v1880_v10  ;;  %v1159_v56 = vadd.f32 %v1158_v4, %v1096_v27 }
 0x150   : > { %v1160_v57 = vadd.f32 %v1159_v56, %v1097_v55  ;;  %v1028_v59 = vadd.f32 %v1027_v46, %v1888_v22 }
 0x152   : > { %v1029_v61 = vadd.f32 %v1875_v3, %v1028_v59  ;;  %v1161_v62 = vadd.f32 %v1160_v57, %v1098_v19  ;;  %v1102_v3 = vmul.f32 %v1916_v43, %v1916_v43 }
 0x154   : > { %v1162_v0 = vadd.f32 %v1161_v62, %v1099_v40  ;;  %v1030_v10 = vadd.f32 %v1884_v16, %v1029_v61  ;;  %v1104_v16 = vmul.f32 %v1909_v38, %v1909_v38 }
 0x156   : > { %v1031_v1 = vadd.f32 %v1030_v10, %v1902_v35  ;;  %v1163_v22 = vadd.f32 %v1162_v0, %v1100_v52 }
 0x158   : > { %v1164_v5 = vadd.f32 %v1163_v22, %v1101_v29  ;;  %v1032_v14 = vadd.f32 %v1031_v1, %v1916_v43 }
 0x15a   : > { %v1033_v7 = vadd.f32 %v1895_v28, %v1032_v14  ;;  %v1165_v24 = vadd.f32 %v1164_v5, %v1102_v3 }
 0x15c   : > { %v1034_v11 = vadd.f32 %v1909_v38, %v1033_v7  ;;  %v1166_v35 = vadd.f32 %v1165_v24, %v1103_v6 }
 0x15e   : > { %v1035_v12 = vrot.slane %v1034_v11, 4  ;;  %v1167_v39 = vadd.f32 %v1166_v35, %v1104_v16 }
 0x160   : > { %v1036_v13 = vadd.f32 %v1035_v12, %v1034_v11  ;;  %v1168_v17 = vrot.slane %v1167_v39, 4 }
 0x162   : > { %v1037_v18 = vrot.slane %v1036_v13, 2  ;;  %v1169_v43 = vadd.f32 %v1168_v17, %v1167_v39 }
 0x164   : > { %v1038_v49 = vadd.f32 %v1037_v18, %v1036_v13  ;;  %v1170_v20 = vrot.slane %v1169_v43, 2 }
 0x166   : > { %v1039_v34 = vrot.slane %v1038_v49, 1  ;;  %v1171_v28 = vadd.f32 %v1170_v20, %v1169_v43 }
 0x168   : > { %v1040_v23 = vadd.f32 %v1039_v34, %v1038_v49  ;;  %v1172_v25 = vrot.slane %v1171_v28, 1 }
 0x16a   : > { %v1173_v38 = vadd.f32 %v1172_v25, %v1171_v28  ;;  %1174 = vst [vmem:[%s267_s9] sm:$0xff] %v1040_v23 }
 0x16c   : > { %1175 = vst [vmem:[%s274_s12] sm:$0xff] %v1173_v38 }
 0x16d PF: > { %s15_s17 = sadd.s32 1, %s1615_s17   ;;  %s2026_s15 = smov %s1611_s16 }
 0x16e   : > { %p12_p6 = scmp.ge.s32.totalorder %s15_s17, 4   ;;  %s2027_s16 = smov %s2029_s18 }
 0x170   :  { %14 = sbr.rel (!%p12_p6) target bundleno = 2 (0x2), region = 85 }

// kernel: dwac_forward.21
= control target key start
LH: loop header
LB: loop body
LE: loop exit
PB: predicated region body
PF: predicated region fallthrough
CT: control target
= control target key end

     0   :  { %s1848_s15 = smov 0   ;;  %s1850_s16 = smov 0   ;;  %s2414_s0 = inlined_call_operand.vmem [shape: bf16[1024,144], index: 0, kind: input, shape index: {}]   ;;  %s2415_s1 = inlined_call_operand.vmem [shape: bf16[144,128], index: 1, kind: input, shape index: {}]   ;;  %s2416_s2 = inlined_call_operand.vmem [shape: f32[1024,128], index: 2, kind: output, shape index: {0}]   ;;  %s2417_s3 = inlined_call_operand.vmem [shape: f32[16,128], index: 3, kind: output, shape index: {1}]   ;;  %s2418_s4 = inlined_call_operand.vmem [shape: f32[16,128], index: 4, kind: output, shape index: {2}]  }
   0x1   :  { %s1852_s17 = smov 0  }
   0x2 LB: > { %s27_s18 = sadd.s32 1, %s1816_s16  ;;  %p1534_p0 = scmp.ge.s32.totalorder %s1820_s17, 1  ;;  %s1820_s17 = sphi %s1852_s17, %s15_s17   ;;  %s1816_s16 = sphi %s1850_s16, %s2420_s16   ;;  %s1812_s15 = sphi %s1848_s15, %s2419_s15  }
   0x3   : > { %p29_p1 = scmp.ge.s32.totalorder %s27_s18, 2  ;;  %p196_p2 = scmp.lt.s32.totalorder %s1820_s17, 3 }
   0x5   : > { %s2422_s18 = smov (%p29_p1, %s27_s18), 0  ;;  %p197_p3 = pnand %p1534_p0, %p196_p2 }
   0x6   : > { %s1535_s21 = sshll.u32 (!%p197_p3), %s1812_s15, 6  ;;  %p264_p5 = scmp.lt.s32.totalorder (!%p197_p3), %s1812_s15, 1 }
   0x7   : > { %200 = sbr.rel (%p197_p3) target bundleno = 447 (0x1bf), region = 28  ;;  %p245_p4 = scmp.lt.s32.totalorder (!%p197_p3), %s1535_s21, 127 }
   0xc   : > { %v1693_v0 = vld [vmem:[%s2415_s1 + $0x38] sm:$0xff]   ;;  %v1822_v1 = vmov 0   ;;  %v1694_v2 = vld [vmem:[%s2415_s1 + $0x30] sm:$0xff]   ;;  %s2424_s21 = smov (!%p245_p4, %s1535_s21), 127  ;;  %v1695_v3 = vld [vmem:[%s2415_s1 + $0x28] sm:$0xff]   ;;  %vm703_vm0 = vcmask 130048  }
   0xd   : > { %800 = vmatprep.subr.bf16.mxu0 %v1822_v1  ;;  %1650 = vmatprep.subr.bf16.mxu1 %v1822_v1  ;;  %s1649_s26 = sshll.u32 %s2424_s21, 3  ;;  %v1696_v4 = vld [vmem:[%s2415_s1 + $0x20] sm:$0xff]   ;;  %v1697_v6 = vld [vmem:[%s2415_s1 + $0x18] sm:$0xff]   ;;  %v1698_v7 = vld [vmem:[%s2415_s1 + $0x10] sm:$0xff]   ;;  %s2426_s15 = smov (!%p264_p5, %s1812_s15), 1 }
   0xe   : > { %801 = vmatpush1.bf16.msra.mxu0 %v1693_v0  ;;  %1659 = vmatpush1.bf16.msra.mxu1 %v1693_v0  ;;  %s1886_s29 = scalar_lea.vmem %s2414_s0, %s1649_s26  ;;  %v1699_v9 = vld [vmem:[%s2415_s1 + $0x8] sm:$0xff]   ;;  %v1700_v10 = vld [vmem:[%s2415_s1] sm:$0xff]   ;;  %s2007_s23 = scalar_lea.vmem %s2416_s2, %s1649_s26 }
   0xf   : > { %802 = vmatprep.subr.bf16.mxu0 %v1822_v1  ;;  %1651 = vmatprep.subr.bf16.mxu1 %v1822_v1  ;;  %v1704_v5 = vld [vmem:[%s1886_s29 + $0x4] ss:$8 sps:$4 sm:$0xff]   ;;  %v1702_v12 = vld [vmem:[%s1886_s29] ss:$8 sps:$4 sm:$0xff]   ;;  %v1705_v13 = vld [vmem:[%s1886_s29 + $0x14] ss:$8 sps:$4 sm:$0xff]  }
  0x10   : > { %1615 = vmatprep.mubr.msk.bf16.mxu0 %vm703_vm0, %v1704_v5  ;;  %v1728_v8 = vld [vmem:[%s1886_s29 + $0x104] ss:$8 sps:$4 sm:$0xff]   ;;  %v1726_v14 = vld [vmem:[%s1886_s29 + $0x100] ss:$8 sps:$4 sm:$0xff]   ;;  %v1732_v15 = vld [vmem:[%s1886_s29 + $0x114] ss:$8 sps:$4 sm:$0xff]  }
  0x11   : > { %1631 = vmatprep.mubr.msk.bf16.mxu1 %vm703_vm0, %v1728_v8  ;;  %v1701_v11 = vld [vmem:[%s2415_s1 + $0x40] sm:$0xff]   ;;  %v1707_v16 = vld [vmem:[%s1886_s29 + $0x10] ss:$8 sps:$4 sm:$0xff]   ;;  %v1711_v21 = vld [vmem:[%s1886_s29 + $0x34] ss:$8 sps:$4 sm:$0xff]   ;;  %s1540_s21 = sshll.u32 %s2426_s15, 3 }
  0x12   : > { %803 = vmatpush1.bf16.msra.mxu0 %v1694_v2  ;;  %1660 = vmatpush1.bf16.msra.mxu1 %v1694_v2  ;;  %v1708_v17 = vld [vmem:[%s1886_s29 + $0x24] ss:$8 sps:$4 sm:$0xff]   ;;  %v1734_v18 = vld [vmem:[%s1886_s29 + $0x110] ss:$8 sps:$4 sm:$0xff]   ;;  %v1710_v20 = vld [vmem:[%s1886_s29 + $0x20] ss:$8 sps:$4 sm:$0xff]   ;;  %s270_s26 = scalar_lea.vmem %s2417_s3, %s1540_s21 }
  0x13   : > { %804 = vmatprep.subr.bf16.mxu0 %v1822_v1  ;;  %1652 = vmatprep.subr.bf16.mxu1 %v1822_v1  ;;  %v1738_v19 = vld [vmem:[%s1886_s29 + $0x124] ss:$8 sps:$4 sm:$0xff]   ;;  %v1740_v22 = vld [vmem:[%s1886_s29 + $0x120] ss:$8 sps:$4 sm:$0xff]   ;;  %v1744_v23 = vld [vmem:[%s1886_s29 + $0x134] ss:$8 sps:$4 sm:$0xff]  }
  0x14   : > { %v1713_v24 = vld [vmem:[%s1886_s29 + $0x30] ss:$8 sps:$4 sm:$0xff]   ;;  %v1714_v26 = vld [vmem:[%s1886_s29 + $0x44] ss:$8 sps:$4 sm:$0xff]   ;;  %v1716_v28 = vld [vmem:[%s1886_s29 + $0x40] ss:$8 sps:$4 sm:$0xff]  }
  0x15   : > { %v1746_v25 = vld [vmem:[%s1886_s29 + $0x130] ss:$8 sps:$4 sm:$0xff]   ;;  %v1750_v27 = vld [vmem:[%s1886_s29 + $0x144] ss:$8 sps:$4 sm:$0xff]   ;;  %v1752_v29 = vld [vmem:[%s1886_s29 + $0x140] ss:$8 sps:$4 sm:$0xff]  }
  0x16   : > { %805 = vmatpush1.bf16.msra.mxu0 %v1695_v3  ;;  %1661 = vmatpush1.bf16.msra.mxu1 %v1695_v3  ;;  %v1717_v30 = vld [vmem:[%s1886_s29 + $0x54] ss:$8 sps:$4 sm:$0xff]   ;;  %v1719_v32 = vld [vmem:[%s1886_s29 + $0x50] ss:$8 sps:$4 sm:$0xff]   ;;  %v1720_v34 = vld [vmem:[%s1886_s29 + $0x64] ss:$8 sps:$4 sm:$0xff]  }
  0x17   : > { %806 = vmatprep.subr.bf16.mxu0 %v1822_v1  ;;  %1653 = vmatprep.subr.bf16.mxu1 %v1822_v1  ;;  %v1756_v31 = vld [vmem:[%s1886_s29 + $0x154] ss:$8 sps:$4 sm:$0xff]   ;;  %v1758_v33 = vld [vmem:[%s1886_s29 + $0x150] ss:$8 sps:$4 sm:$0xff]   ;;  %v1762_v35 = vld [vmem:[%s1886_s29 + $0x164] ss:$8 sps:$4 sm:$0xff]  }
  0x18   : > { %v1722_v36 = vld [vmem:[%s1886_s29 + $0x60] ss:$8 sps:$4 sm:$0xff]   ;;  %v1723_v38 = vld [vmem:[%s1886_s29 + $0x74] ss:$8 sps:$4 sm:$0xff]   ;;  %v1725_v40 = vld [vmem:[%s1886_s29 + $0x70] ss:$8 sps:$4 sm:$0xff]  }
  0x19   : > { %v1764_v37 = vld [vmem:[%s1886_s29 + $0x160] ss:$8 sps:$4 sm:$0xff]   ;;  %v1768_v39 = vld [vmem:[%s1886_s29 + $0x174] ss:$8 sps:$4 sm:$0xff]   ;;  %v1770_v41 = vld [vmem:[%s1886_s29 + $0x170] ss:$8 sps:$4 sm:$0xff]  }
  0x1a   : > { %807 = vmatpush1.bf16.msra.mxu0 %v1696_v4  ;;  %1662 = vmatpush1.bf16.msra.mxu1 %v1696_v4  ;;  %v1729_v42 = vld [vmem:[%s1886_s29 + $0x84] ss:$8 sps:$4 sm:$0xff]   ;;  %v1731_v44 = vld [vmem:[%s1886_s29 + $0x80] ss:$8 sps:$4 sm:$0xff]   ;;  %v1735_v46 = vld [vmem:[%s1886_s29 + $0x94] ss:$8 sps:$4 sm:$0xff]  }
  0x1b   : > { %808 = vmatprep.subr.bf16.mxu0 %v1822_v1  ;;  %1654 = vmatprep.subr.bf16.mxu1 %v1822_v1  ;;  %v1774_v43 = vld [vmem:[%s1886_s29 + $0x184] ss:$8 sps:$4 sm:$0xff]   ;;  %v1776_v45 = vld [vmem:[%s1886_s29 + $0x180] ss:$8 sps:$4 sm:$0xff]   ;;  %v1777_v47 = vld [vmem:[%s1886_s29 + $0x194] ss:$8 sps:$4 sm:$0xff]  }
  0x1c   : > { %v1737_v48 = vld [vmem:[%s1886_s29 + $0x90] ss:$8 sps:$4 sm:$0xff]   ;;  %v1741_v50 = vld [vmem:[%s1886_s29 + $0xa4] ss:$8 sps:$4 sm:$0xff]   ;;  %v1743_v52 = vld [vmem:[%s1886_s29 + $0xa0] ss:$8 sps:$4 sm:$0xff]  }
  0x1d   : > { %v1779_v49 = vld [vmem:[%s1886_s29 + $0x190] ss:$8 sps:$4 sm:$0xff]   ;;  %v1780_v51 = vld [vmem:[%s1886_s29 + $0x1a4] ss:$8 sps:$4 sm:$0xff]   ;;  %v1782_v53 = vld [vmem:[%s1886_s29 + $0x1a0] ss:$8 sps:$4 sm:$0xff]  }
  0x1e   : > { %809 = vmatpush1.bf16.msra.mxu0 %v1697_v6  ;;  %1663 = vmatpush1.bf16.msra.mxu1 %v1697_v6  ;;  %v1747_v54 = vld [vmem:[%s1886_s29 + $0xb4] ss:$8 sps:$4 sm:$0xff]   ;;  %v1749_v56 = vld [vmem:[%s1886_s29 + $0xb0] ss:$8 sps:$4 sm:$0xff]   ;;  %v1753_v58 = vld [vmem:[%s1886_s29 + $0xc4] ss:$8 sps:$4 sm:$0xff]  }
  0x1f   : > { %810 = vmatprep.subr.bf16.mxu0 %v1822_v1  ;;  %1655 = vmatprep.subr.bf16.mxu1 %v1822_v1  ;;  %v1783_v55 = vld [vmem:[%s1886_s29 + $0x1b4] ss:$8 sps:$4 sm:$0xff]   ;;  %v1785_v57 = vld [vmem:[%s1886_s29 + $0x1b0] ss:$8 sps:$4 sm:$0xff]   ;;  %v1786_v59 = vld [vmem:[%s1886_s29 + $0x1c4] ss:$8 sps:$4 sm:$0xff]  }
  0x20   : > { %v1755_v60 = vld [vmem:[%s1886_s29 + $0xc0] ss:$8 sps:$4 sm:$0xff]   ;;  %v1759_v62 = vld [vmem:[%s1886_s29 + $0xd4] ss:$8 sps:$4 sm:$0xff]   ;;  %v1761_v0 = vld [vmem:[%s1886_s29 + $0xd0] ss:$8 sps:$4 sm:$0xff]  }
  0x21   : > { %v1788_v61 = vld [vmem:[%s1886_s29 + $0x1c0] ss:$8 sps:$4 sm:$0xff]   ;;  %v1789_v63 = vld [vmem:[%s1886_s29 + $0x1d4] ss:$8 sps:$4 sm:$0xff]   ;;  %v1765_v2 = vld [vmem:[%s1886_s29 + $0xe4] ss:$8 sps:$4 sm:$0xff]  }
  0x22   : > { %811 = vmatpush1.bf16.msra.mxu0 %v1698_v7  ;;  %1664 = vmatpush1.bf16.msra.mxu1 %v1698_v7  ;;  %v1792_v3 = vld [vmem:[%s1886_s29 + $0x1e4] ss:$8 sps:$4 sm:$0xff]   ;;  %v1767_v4 = vld [vmem:[%s1886_s29 + $0xe0] ss:$8 sps:$4 sm:$0xff]   ;;  %v1771_v6 = vld [vmem:[%s1886_s29 + $0xf4] ss:$8 sps:$4 sm:$0xff]  }
  0x23   : > { %812 = vmatprep.subr.bf16.mxu0 %v1822_v1  ;;  %1656 = vmatprep.subr.bf16.mxu1 %v1822_v1  ;;  %v1794_v5 = vld [vmem:[%s1886_s29 + $0x1e0] ss:$8 sps:$4 sm:$0xff]   ;;  %v1795_v7 = vld [vmem:[%s1886_s29 + $0x1f4] ss:$8 sps:$4 sm:$0xff]   ;;  %v1773_v8 = vld [vmem:[%s1886_s29 + $0xf0] ss:$8 sps:$4 sm:$0xff]  }
  0x26   : > { %813 = vmatpush1.bf16.msra.mxu0 %v1699_v9  ;;  %1665 = vmatpush1.bf16.msra.mxu1 %v1699_v9  ;;  %v1797_v9 = vld [vmem:[%s1886_s29 + $0x1f0] ss:$8 sps:$4 sm:$0xff]  }
  0x27   : > { %814 = vmatprep.subr.bf16.mxu0 %v1822_v1  ;;  %1657 = vmatprep.subr.bf16.mxu1 %v1822_v1 }
  0x2a   : > { %815 = vmatpush1.bf16.msra.mxu0 %v1700_v10  ;;  %1666 = vmatpush1.bf16.msra.mxu1 %v1700_v10 }
  0x2b   : > { %830 = vmatprep.subr.bf16.mxu0 %v1822_v1  ;;  %1658 = vmatprep.subr.bf16.mxu1 %v1822_v1  ;;  %v1791_v1 = vld [vmem:[%s1886_s29 + $0x1d0] ss:$8 sps:$4 sm:$0xff]   ;;  %s277_s29 = scalar_lea.vmem %s2418_s4, %s1540_s21 }
  0x2e   : > { %831 = vmatpush2.bf16.msra.mxu0 %v1701_v11  ;;  %1667 = vmatpush2.bf16.msra.mxu1 %v1701_v11 }
  0x31   : > { %833 = vmatmul.mubr.bf16.vlgmr.msra.gmra.mxu0 %v1702_v12  ;;  %961 = vmatmul.mubr.bf16.vlgmr.msra.gmra.mxu1 %v1726_v14 }
  0x32   : > { %1616 = vmatprep.mubr.msk.bf16.mxu0 %vm703_vm0, %v1705_v13  ;;  %1632 = vmatprep.mubr.msk.bf16.mxu1 %vm703_vm0, %v1732_v15 }
  0x39   : > { %841 = vmatmul.mubr.bf16.gmra.mxu0 %v1707_v16  ;;  %969 = vmatmul.mubr.bf16.gmra.mxu1 %v1734_v18 }
  0x3a   : > { %1617 = vmatprep.mubr.msk.bf16.mxu0 %vm703_vm0, %v1708_v17  ;;  %1633 = vmatprep.mubr.msk.bf16.mxu1 %vm703_vm0, %v1738_v19 }
  0x41   : > { %849 = vmatmul.mubr.bf16.gmra.mxu0 %v1710_v20  ;;  %977 = vmatmul.mubr.bf16.gmra.mxu1 %v1740_v22 }
  0x42   : > { %1618 = vmatprep.mubr.msk.bf16.mxu0 %vm703_vm0, %v1711_v21  ;;  %1634 = vmatprep.mubr.msk.bf16.mxu1 %vm703_vm0, %v1744_v23 }
  0x49   : > { %857 = vmatmul.mubr.bf16.gmra.mxu0 %v1713_v24  ;;  %985 = vmatmul.mubr.bf16.gmra.mxu1 %v1746_v25 }
  0x4a   : > { %1619 = vmatprep.mubr.msk.bf16.mxu0 %vm703_vm0, %v1714_v26  ;;  %1635 = vmatprep.mubr.msk.bf16.mxu1 %vm703_vm0, %v1750_v27 }
  0x51   : > { %865 = vmatmul.mubr.bf16.gmra.mxu0 %v1716_v28  ;;  %993 = vmatmul.mubr.bf16.gmra.mxu1 %v1752_v29 }
  0x52   : > { %1620 = vmatprep.mubr.msk.bf16.mxu0 %vm703_vm0, %v1717_v30  ;;  %1636 = vmatprep.mubr.msk.bf16.mxu1 %vm703_vm0, %v1756_v31 }
  0x59   : > { %873 = vmatmul.mubr.bf16.gmra.mxu0 %v1719_v32  ;;  %1001 = vmatmul.mubr.bf16.gmra.mxu1 %v1758_v33 }
  0x5a   : > { %1621 = vmatprep.mubr.msk.bf16.mxu0 %vm703_vm0, %v1720_v34  ;;  %1637 = vmatprep.mubr.msk.bf16.mxu1 %vm703_vm0, %v1762_v35 }
  0x61   : > { %881 = vmatmul.mubr.bf16.gmra.mxu0 %v1722_v36  ;;  %1009 = vmatmul.mubr.bf16.gmra.mxu1 %v1764_v37 }
  0x62   : > { %1622 = vmatprep.mubr.msk.bf16.mxu0 %vm703_vm0, %v1723_v38  ;;  %1638 = vmatprep.mubr.msk.bf16.mxu1 %vm703_vm0, %v1768_v39 }
  0x69   : > { %889 = vmatmul.mubr.bf16.gmra.mxu0 %v1725_v40  ;;  %1017 = vmatmul.mubr.bf16.gmra.mxu1 %v1770_v41 }
  0x6a   : > { %1623 = vmatprep.mubr.msk.bf16.mxu0 %vm703_vm0, %v1729_v42  ;;  %1639 = vmatprep.mubr.msk.bf16.mxu1 %vm703_vm0, %v1774_v43 }
  0x71   : > { %897 = vmatmul.mubr.bf16.gmra.mxu0 %v1731_v44  ;;  %1025 = vmatmul.mubr.bf16.gmra.mxu1 %v1776_v45 }
  0x72   : > { %1624 = vmatprep.mubr.msk.bf16.mxu0 %vm703_vm0, %v1735_v46  ;;  %1640 = vmatprep.mubr.msk.bf16.mxu1 %vm703_vm0, %v1777_v47 }
  0x79   : > { %905 = vmatmul.mubr.bf16.gmra.mxu0 %v1737_v48  ;;  %1033 = vmatmul.mubr.bf16.gmra.mxu1 %v1779_v49 }
  0x7a   : > { %1625 = vmatprep.mubr.msk.bf16.mxu0 %vm703_vm0, %v1741_v50  ;;  %1641 = vmatprep.mubr.msk.bf16.mxu1 %vm703_vm0, %v1780_v51 }
  0x81   : > { %913 = vmatmul.mubr.bf16.gmra.mxu0 %v1743_v52  ;;  %1041 = vmatmul.mubr.bf16.gmra.mxu1 %v1782_v53 }
  0x82   : > { %1626 = vmatprep.mubr.msk.bf16.mxu0 %vm703_vm0, %v1747_v54  ;;  %1642 = vmatprep.mubr.msk.bf16.mxu1 %vm703_vm0, %v1783_v55 }
  0x89   : > { %921 = vmatmul.mubr.bf16.gmra.mxu0 %v1749_v56  ;;  %1049 = vmatmul.mubr.bf16.gmra.mxu1 %v1785_v57 }
  0x8a   : > { %1627 = vmatprep.mubr.msk.bf16.mxu0 %vm703_vm0, %v1753_v58  ;;  %1643 = vmatprep.mubr.msk.bf16.mxu1 %vm703_vm0, %v1786_v59 }
  0x91   : > { %929 = vmatmul.mubr.bf16.gmra.mxu0 %v1755_v60  ;;  %1057 = vmatmul.mubr.bf16.gmra.mxu1 %v1788_v61 }
  0x92   : > { %1628 = vmatprep.mubr.msk.bf16.mxu0 %vm703_vm0, %v1759_v62  ;;  %1644 = vmatprep.mubr.msk.bf16.mxu1 %vm703_vm0, %v1789_v63 }
  0x99   : > { %937 = vmatmul.mubr.bf16.gmra.mxu0 %v1761_v0  ;;  %1065 = vmatmul.mubr.bf16.gmra.mxu1 %v1791_v1 }
  0x9a   : > { %1629 = vmatprep.mubr.msk.bf16.mxu0 %vm703_vm0, %v1765_v2  ;;  %1645 = vmatprep.mubr.msk.bf16.mxu1 %vm703_vm0, %v1792_v3 }
  0xa1   : > { %945 = vmatmul.mubr.bf16.gmra.mxu0 %v1767_v4  ;;  %1073 = vmatmul.mubr.bf16.gmra.mxu1 %v1794_v5 }
  0xa2   : > { %1630 = vmatprep.mubr.msk.bf16.mxu0 %vm703_vm0, %v1771_v6  ;;  %1646 = vmatprep.mubr.msk.bf16.mxu1 %vm703_vm0, %v1795_v7 }
  0xa9   : > { %953 = vmatmul.mubr.bf16.gmra.mxu0 %v1773_v8  ;;  %1081 = vmatmul.mubr.bf16.gmra.mxu1 %v1797_v9 }
  0xf1   : > { %v2009_v10 = vpop.f32.mrf.mxu0  ;;  %v2011_v11 = vpop.f32.mrf.mxu1 }
  0xf2   : > { %1089 = vst [vmem:[%s2007_s23] sm:$0xff] %v2009_v10  ;;  %1121 = vst [vmem:[%s2007_s23 + $0x100] sm:$0xff] %v2011_v11 }
  0xf3   : > { %v836_v12 = vpop.f32.mrf.mxu0  ;;  %v964_v13 = vpop.f32.mrf.mxu1 }
  0xf5   : > { %v2017_v14 = vpop.f32.mrf.mxu0  ;;  %v2019_v15 = vpop.f32.mrf.mxu1 }
  0xf6   : > { %1090 = vst [vmem:[%s2007_s23 + $0x8] sm:$0xff] %v2017_v14  ;;  %1122 = vst [vmem:[%s2007_s23 + $0x108] sm:$0xff] %v2019_v15  ;;  %v1223_v12 = vmul.f32 %v2017_v14, %v2017_v14 }
  0xf7   : > { %v839_v16 = vpop.f32.mrf.mxu0  ;;  %v967_v17 = vpop.f32.mrf.mxu1 }
  0xf8   : > { %v1222_v17 = vmul.f32 %v2009_v10, %v2009_v10 }
  0xf9   : > { %v2025_v18 = vpop.f32.mrf.mxu0  ;;  %v2027_v19 = vpop.f32.mrf.mxu1 }
  0xfa   : > { %1091 = vst [vmem:[%s2007_s23 + $0x10] sm:$0xff] %v2025_v18  ;;  %1123 = vst [vmem:[%s2007_s23 + $0x110] sm:$0xff] %v2027_v19 }
  0xfb   : > { %v844_v20 = vpop.f32.mrf.mxu0  ;;  %v972_v21 = vpop.f32.mrf.mxu1 }
  0xfc   : > { %v1153_v20 = vadd.f32 %v2017_v14, %v2009_v10  ;;  %v1224_v21 = vmul.f32 %v2025_v18, %v2025_v18 }
  0xfd   : > { %v2033_v22 = vpop.f32.mrf.mxu0  ;;  %v2035_v23 = vpop.f32.mrf.mxu1 }
  0xfe   : > { %1092 = vst [vmem:[%s2007_s23 + $0x18] sm:$0xff] %v2033_v22  ;;  %1124 = vst [vmem:[%s2007_s23 + $0x118] sm:$0xff] %v2035_v23 }
  0xff   : > { %v847_v24 = vpop.f32.mrf.mxu0  ;;  %v975_v25 = vpop.f32.mrf.mxu1 }
 0x101   : > { %v2041_v26 = vpop.f32.mrf.mxu0  ;;  %v2043_v27 = vpop.f32.mrf.mxu1 }
 0x102   : > { %1093 = vst [vmem:[%s2007_s23 + $0x20] sm:$0xff] %v2041_v26  ;;  %1125 = vst [vmem:[%s2007_s23 + $0x120] sm:$0xff] %v2043_v27 }
 0x103   : > { %v852_v28 = vpop.f32.mrf.mxu0  ;;  %v980_v29 = vpop.f32.mrf.mxu1 }
 0x104   : > { %v1286_v28 = vadd.f32 %v1223_v12, %v1222_v17  ;;  %v1154_v29 = vadd.f32 %v1153_v20, %v2025_v18 }
 0x105   : > { %v2049_v30 = vpop.f32.mrf.mxu0  ;;  %v2051_v31 = vpop.f32.mrf.mxu1 }
 0x106   : > { %1094 = vst [vmem:[%s2007_s23 + $0x28] sm:$0xff] %v2049_v30  ;;  %1126 = vst [vmem:[%s2007_s23 + $0x128] sm:$0xff] %v2051_v31  ;;  %v1287_v10 = vadd.f32 %v1286_v28, %v1224_v21  ;;  %v1155_v14 = vadd.f32 %v1154_v29, %v2033_v22 }
 0x107   : > { %v855_v32 = vpop.f32.mrf.mxu0  ;;  %v983_v33 = vpop.f32.mrf.mxu1 }
 0x108   : > { %v1225_v32 = vmul.f32 %v2033_v22, %v2033_v22 }
 0x109   : > { %v2057_v34 = vpop.f32.mrf.mxu0  ;;  %v2059_v35 = vpop.f32.mrf.mxu1 }
 0x10a   : > { %1095 = vst [vmem:[%s2007_s23 + $0x30] sm:$0xff] %v2057_v34  ;;  %1127 = vst [vmem:[%s2007_s23 + $0x130] sm:$0xff] %v2059_v35 }
 0x10b   : > { %v860_v36 = vpop.f32.mrf.mxu0  ;;  %v988_v37 = vpop.f32.mrf.mxu1 }
 0x10c   : > { %v1226_v37 = vmul.f32 %v2041_v26, %v2041_v26 }
 0x10d   : > { %v2065_v38 = vpop.f32.mrf.mxu0  ;;  %v2067_v39 = vpop.f32.mrf.mxu1 }
 0x10e   : > { %1096 = vst [vmem:[%s2007_s23 + $0x38] sm:$0xff] %v2065_v38  ;;  %1128 = vst [vmem:[%s2007_s23 + $0x138] sm:$0xff] %v2067_v39 }
 0x10f   : > { %v863_v40 = vpop.f32.mrf.mxu0  ;;  %v991_v41 = vpop.f32.mrf.mxu1 }
 0x110   : > { %v1288_v41 = vadd.f32 %v1287_v10, %v1225_v32 }
 0x111   : > { %v2073_v42 = vpop.f32.mrf.mxu0  ;;  %v2075_v43 = vpop.f32.mrf.mxu1 }
 0x112   : > { %1097 = vst [vmem:[%s2007_s23 + $0x40] sm:$0xff] %v2073_v42  ;;  %1129 = vst [vmem:[%s2007_s23 + $0x140] sm:$0xff] %v2075_v43  ;;  %v1289_v22 = vadd.f32 %v1288_v41, %v1226_v37 }
 0x113   : > { %v868_v44 = vpop.f32.mrf.mxu0  ;;  %v996_v45 = vpop.f32.mrf.mxu1 }
 0x114   : > { %v1156_v44 = vadd.f32 %v1155_v14, %v2041_v26  ;;  %v1227_v45 = vmul.f32 %v2049_v30, %v2049_v30 }
 0x115   : > { %v2081_v46 = vpop.f32.mrf.mxu0  ;;  %v2083_v47 = vpop.f32.mrf.mxu1 }
 0x116   : > { %1098 = vst [vmem:[%s2007_s23 + $0x48] sm:$0xff] %v2081_v46  ;;  %1130 = vst [vmem:[%s2007_s23 + $0x148] sm:$0xff] %v2083_v47  ;;  %v1231_v17 = vmul.f32 %v2081_v46, %v2081_v46 }
 0x117   : > { %v871_v48 = vpop.f32.mrf.mxu0  ;;  %v999_v49 = vpop.f32.mrf.mxu1 }
 0x119   : > { %v2089_v50 = vpop.f32.mrf.mxu0  ;;  %v2091_v51 = vpop.f32.mrf.mxu1 }
 0x11a   : > { %1099 = vst [vmem:[%s2007_s23 + $0x50] sm:$0xff] %v2089_v50  ;;  %1131 = vst [vmem:[%s2007_s23 + $0x150] sm:$0xff] %v2091_v51 }
 0x11b   : > { %v876_v52 = vpop.f32.mrf.mxu0  ;;  %v1004_v53 = vpop.f32.mrf.mxu1 }
 0x11c   : > { %v1157_v52 = vadd.f32 %v1156_v44, %v2049_v30  ;;  %v1228_v53 = vmul.f32 %v2057_v34, %v2057_v34 }
 0x11d   : > { %v2097_v54 = vpop.f32.mrf.mxu0  ;;  %v2099_v55 = vpop.f32.mrf.mxu1 }
 0x11e   : > { %1100 = vst [vmem:[%s2007_s23 + $0x58] sm:$0xff] %v2097_v54  ;;  %1132 = vst [vmem:[%s2007_s23 + $0x158] sm:$0xff] %v2099_v55  ;;  %v1233_v10 = vmul.f32 %v2097_v54, %v2097_v54 }
 0x11f   : > { %v879_v56 = vpop.f32.mrf.mxu0  ;;  %v1007_v57 = vpop.f32.mrf.mxu1 }
 0x120   : > { %v1290_v57 = vadd.f32 %v1289_v22, %v1227_v45 }
 0x121   : > { %v2105_v58 = vpop.f32.mrf.mxu0  ;;  %v2107_v59 = vpop.f32.mrf.mxu1 }
 0x122   : > { %1101 = vst [vmem:[%s2007_s23 + $0x60] sm:$0xff] %v2105_v58  ;;  %1133 = vst [vmem:[%s2007_s23 + $0x160] sm:$0xff] %v2107_v59  ;;  %v1291_v30 = vadd.f32 %v1290_v57, %v1228_v53 }
 0x123   : > { %v884_v60 = vpop.f32.mrf.mxu0  ;;  %v1012_v61 = vpop.f32.mrf.mxu1 }
 0x124   : > { %v1158_v60 = vadd.f32 %v1157_v52, %v2057_v34  ;;  %v1229_v61 = vmul.f32 %v2065_v38, %v2065_v38 }
 0x125   : > { %v2113_v62 = vpop.f32.mrf.mxu0  ;;  %v2115_v63 = vpop.f32.mrf.mxu1 }
 0x126   : > { %1102 = vst [vmem:[%s2007_s23 + $0x68] sm:$0xff] %v2113_v62  ;;  %1134 = vst [vmem:[%s2007_s23 + $0x168] sm:$0xff] %v2115_v63  ;;  %v1235_v22 = vmul.f32 %v2113_v62, %v2113_v62 }
 0x127   : > { %v887_v0 = vpop.f32.mrf.mxu0  ;;  %v1015_v1 = vpop.f32.mrf.mxu1 }
 0x129   : > { %v2121_v2 = vpop.f32.mrf.mxu0  ;;  %v2123_v3 = vpop.f32.mrf.mxu1 }
 0x12a   : > { %1103 = vst [vmem:[%s2007_s23 + $0x70] sm:$0xff] %v2121_v2  ;;  %1135 = vst [vmem:[%s2007_s23 + $0x170] sm:$0xff] %v2123_v3 }
 0x12b   : > { %v892_v4 = vpop.f32.mrf.mxu0  ;;  %v1020_v5 = vpop.f32.mrf.mxu1 }
 0x12c   : > { %v1159_v4 = vadd.f32 %v1158_v60, %v2065_v38  ;;  %v1230_v5 = vmul.f32 %v2073_v42, %v2073_v42 }
 0x12d   : > { %v2129_v6 = vpop.f32.mrf.mxu0  ;;  %v2131_v7 = vpop.f32.mrf.mxu1 }
 0x12e   : > { %1104 = vst [vmem:[%s2007_s23 + $0x78] sm:$0xff] %v2129_v6  ;;  %1136 = vst [vmem:[%s2007_s23 + $0x178] sm:$0xff] %v2131_v7  ;;  %v1160_v12 = vadd.f32 %v1159_v4, %v2073_v42 }
 0x12f   : > { %v895_v8 = vpop.f32.mrf.mxu0  ;;  %v1023_v9 = vpop.f32.mrf.mxu1 }
 0x130   : > { %v1292_v9 = vadd.f32 %v1291_v30, %v1229_v61  ;;  %v1237_v30 = vmul.f32 %v2129_v6, %v2129_v6 }
 0x131   : > { %v2139_v13 = vpop.f32.mrf.mxu0  ;;  %v2141_v16 = vpop.f32.mrf.mxu1 }
 0x132   : > { %1105 = vst [vmem:[%s2007_s23 + $0x80] sm:$0xff] %v2139_v13  ;;  %1137 = vst [vmem:[%s2007_s23 + $0x180] sm:$0xff] %v2141_v16  ;;  %v1293_v38 = vadd.f32 %v1292_v9, %v1230_v5 }
 0x133   : > { %v900_v24 = vpop.f32.mrf.mxu0  ;;  %v1028_v25 = vpop.f32.mrf.mxu1 }
 0x134   : > { %v1161_v24 = vadd.f32 %v1160_v12, %v2081_v46  ;;  %v1232_v25 = vmul.f32 %v2089_v50, %v2089_v50  ;;  %v1294_v29 = vadd.f32 %v1293_v38, %v1231_v17 }
 0x135   : > { %v2156_v33 = vpop.f32.mrf.mxu0  ;;  %v2158_v36 = vpop.f32.mrf.mxu1 }
 0x136   : > { %1106 = vst [vmem:[%s2007_s23 + $0x88] sm:$0xff] %v2156_v33  ;;  %1138 = vst [vmem:[%s2007_s23 + $0x188] sm:$0xff] %v2158_v36  ;;  %v1162_v32 = vadd.f32 %v1161_v24, %v2089_v50  ;;  %v1295_v46 = vadd.f32 %v1294_v29, %v1232_v25  ;;  %v1239_v38 = vmul.f32 %v2156_v33, %v2156_v33 }
 0x137   : > { %v903_v18 = vpop.f32.mrf.mxu0  ;;  %v1031_v40 = vpop.f32.mrf.mxu1 }
 0x138   : > { %v1163_v18 = vadd.f32 %v1162_v32, %v2097_v54  ;;  %v1234_v40 = vmul.f32 %v2105_v58, %v2105_v58  ;;  %v1296_v44 = vadd.f32 %v1295_v46, %v1233_v10 }
 0x139   : > { %v2170_v48 = vpop.f32.mrf.mxu0  ;;  %v2172_v49 = vpop.f32.mrf.mxu1 }
 0x13a   : > { %1107 = vst [vmem:[%s2007_s23 + $0x90] sm:$0xff] %v2170_v48  ;;  %1139 = vst [vmem:[%s2007_s23 + $0x190] sm:$0xff] %v2172_v49  ;;  %v1164_v45 = vadd.f32 %v1163_v18, %v2105_v58  ;;  %v1297_v54 = vadd.f32 %v1296_v44, %v1234_v40 }
 0x13b   : > { %v908_v26 = vpop.f32.mrf.mxu0  ;;  %v1036_v56 = vpop.f32.mrf.mxu1 }
 0x13c   : > { %v1165_v26 = vadd.f32 %v1164_v45, %v2113_v62  ;;  %v1236_v56 = vmul.f32 %v2121_v2, %v2121_v2  ;;  %v1298_v58 = vadd.f32 %v1297_v54, %v1235_v22 }
 0x13d   : > { %v2184_v0 = vpop.f32.mrf.mxu0  ;;  %v2186_v1 = vpop.f32.mrf.mxu1 }
 0x13e   : > { %1108 = vst [vmem:[%s2007_s23 + $0x98] sm:$0xff] %v2184_v0  ;;  %1140 = vst [vmem:[%s2007_s23 + $0x198] sm:$0xff] %v2186_v1  ;;  %v1166_v61 = vadd.f32 %v1165_v26, %v2121_v2  ;;  %v1241_v46 = vmul.f32 %v2184_v0, %v2184_v0 }
 0x13f   : > { %v911_v34 = vpop.f32.mrf.mxu0  ;;  %v1039_v8 = vpop.f32.mrf.mxu1 }
 0x140   : > { %v1299_v34 = vadd.f32 %v1298_v58, %v1236_v56  ;;  %v1167_v62 = vadd.f32 %v1166_v61, %v2129_v6  ;;  %v1238_v8 = vmul.f32 %v2139_v13, %v2139_v13 }
 0x141   : > { %v2198_v20 = vpop.f32.mrf.mxu0  ;;  %v2200_v21 = vpop.f32.mrf.mxu1 }
 0x142   : > { %1109 = vst [vmem:[%s2007_s23 + $0xa0] sm:$0xff] %v2198_v20  ;;  %1141 = vst [vmem:[%s2007_s23 + $0x1a0] sm:$0xff] %v2200_v21  ;;  %v1300_v2 = vadd.f32 %v1299_v34, %v1237_v30  ;;  %v1168_v17 = vadd.f32 %v1167_v62, %v2139_v13 }
 0x143   : > { %v916_v42 = vpop.f32.mrf.mxu0  ;;  %v1044_v28 = vpop.f32.mrf.mxu1 }
 0x144   : > { %v1301_v42 = vadd.f32 %v1300_v2, %v1238_v8  ;;  %v1169_v6 = vadd.f32 %v1168_v17, %v2156_v33  ;;  %v1240_v28 = vmul.f32 %v2170_v48, %v2170_v48 }
 0x145   : > { %v2212_v14 = vpop.f32.mrf.mxu0  ;;  %v2214_v37 = vpop.f32.mrf.mxu1 }
 0x146   : > { %1110 = vst [vmem:[%s2007_s23 + $0xa8] sm:$0xff] %v2212_v14  ;;  %1142 = vst [vmem:[%s2007_s23 + $0x1a8] sm:$0xff] %v2214_v37  ;;  %v1302_v13 = vadd.f32 %v1301_v42, %v1239_v38  ;;  %v1170_v10 = vadd.f32 %v1169_v6, %v2170_v48  ;;  %v1243_v54 = vmul.f32 %v2212_v14, %v2212_v14 }
 0x147   : > { %v919_v50 = vpop.f32.mrf.mxu0  ;;  %v1047_v41 = vpop.f32.mrf.mxu1 }
 0x148   : > { %v1303_v50 = vadd.f32 %v1302_v13, %v1240_v28  ;;  %v1171_v33 = vadd.f32 %v1170_v10, %v2184_v0  ;;  %v1242_v41 = vmul.f32 %v2198_v20, %v2198_v20 }
 0x149   : > { %v922_v52 = vpop.f32.mrf.mxu0  ;;  %v2226_v53 = vpop.f32.mrf.mxu1 }
 0x14a   : > { %1111 = vst [vmem:[%s2007_s23 + $0xb0] sm:$0xff] %v922_v52  ;;  %1143 = vst [vmem:[%s2007_s23 + $0x1b0] sm:$0xff] %v2226_v53  ;;  %v1304_v48 = vadd.f32 %v1303_v50, %v1241_v46  ;;  %v1172_v22 = vadd.f32 %v1171_v33, %v2198_v20 }
 0x14b   : > { %v924_v57 = vpop.f32.mrf.mxu0  ;;  %v1052_v60 = vpop.f32.mrf.mxu1 }
 0x14c   : > { %v1305_v57 = vadd.f32 %v1304_v48, %v1242_v41  ;;  %v1173_v0 = vadd.f32 %v1172_v22, %v2212_v14  ;;  %v1244_v60 = vmul.f32 %v922_v52, %v922_v52 }
 0x14d   : > { %v925_v4 = vpop.f32.mrf.mxu0  ;;  %v2237_v5 = vpop.f32.mrf.mxu1 }
 0x14e   : > { %1112 = vst [vmem:[%s2007_s23 + $0xb8] sm:$0xff] %v925_v4  ;;  %1144 = vst [vmem:[%s2007_s23 + $0x1b8] sm:$0xff] %v2237_v5  ;;  %v1306_v30 = vadd.f32 %v1305_v57, %v1243_v54  ;;  %v1174_v34 = vadd.f32 %v1173_v0, %v922_v52  ;;  %v1245_v20 = vmul.f32 %v925_v4, %v925_v4 }
 0x14f   : > { %v927_v9 = vpop.f32.mrf.mxu0  ;;  %v1055_v12 = vpop.f32.mrf.mxu1 }
 0x150   : > { %v1307_v9 = vadd.f32 %v1306_v30, %v1244_v60  ;;  %v1175_v12 = vadd.f32 %v1174_v34, %v925_v4 }
 0x151   : > { %v930_v24 = vpop.f32.mrf.mxu0  ;;  %v2248_v25 = vpop.f32.mrf.mxu1 }
 0x152   : > { %1113 = vst [vmem:[%s2007_s23 + $0xc0] sm:$0xff] %v930_v24  ;;  %1145 = vst [vmem:[%s2007_s23 + $0x1c0] sm:$0xff] %v2248_v25  ;;  %v1246_v2 = vmul.f32 %v930_v24, %v930_v24  ;;  %v1308_v38 = vadd.f32 %v1307_v9, %v1245_v20  ;;  %v1176_v42 = vadd.f32 %v1175_v12, %v930_v24 }
 0x153   : > { %v932_v29 = vpop.f32.mrf.mxu0  ;;  %v1060_v32 = vpop.f32.mrf.mxu1 }
 0x154   : > { %v1309_v52 = vadd.f32 %v1308_v38, %v1246_v2 }
 0x155   : > { %v933_v18 = vpop.f32.mrf.mxu0  ;;  %v2259_v40 = vpop.f32.mrf.mxu1 }
 0x156   : > { %1114 = vst [vmem:[%s2007_s23 + $0xc8] sm:$0xff] %v933_v18  ;;  %1146 = vst [vmem:[%s2007_s23 + $0x1c8] sm:$0xff] %v2259_v40  ;;  %v1247_v6 = vmul.f32 %v933_v18, %v933_v18  ;;  %v1177_v32 = vadd.f32 %v1176_v42, %v933_v18 }
 0x157   : > { %v935_v44 = vpop.f32.mrf.mxu0  ;;  %v1063_v45 = vpop.f32.mrf.mxu1 }
 0x158   : > { %v1310_v46 = vadd.f32 %v1309_v52, %v1247_v6 }
 0x159   : > { %v938_v26 = vpop.f32.mrf.mxu0  ;;  %v2270_v56 = vpop.f32.mrf.mxu1 }
 0x15a   : > { %1115 = vst [vmem:[%s2007_s23 + $0xd0] sm:$0xff] %v938_v26  ;;  %1147 = vst [vmem:[%s2007_s23 + $0x1d0] sm:$0xff] %v2270_v56  ;;  %v1248_v13 = vmul.f32 %v938_v26, %v938_v26  ;;  %v1178_v50 = vadd.f32 %v1177_v32, %v938_v26 }
 0x15b   : > { %v940_v58 = vpop.f32.mrf.mxu0  ;;  %v1068_v61 = vpop.f32.mrf.mxu1 }
 0x15c   : > { %v1311_v44 = vadd.f32 %v1310_v46, %v1248_v13  ;;  %v1255_v13 = vmul.f32 %v2019_v15, %v2019_v15  ;;  %v1256_v46 = vmul.f32 %v2027_v19, %v2027_v19 }
 0x15d   : > { %v941_v62 = vpop.f32.mrf.mxu0  ;;  %v2276_v8 = vpop.f32.mrf.mxu1 }
 0x15e   : > { %1116 = vst [vmem:[%s2007_s23 + $0xd8] sm:$0xff] %v941_v62  ;;  %1148 = vst [vmem:[%s2007_s23 + $0x1d8] sm:$0xff] %v2276_v8  ;;  %v1249_v33 = vmul.f32 %v941_v62, %v941_v62  ;;  %v1179_v45 = vadd.f32 %v1178_v50, %v941_v62 }
 0x15f   : > { %v943_v14 = vpop.f32.mrf.mxu0  ;;  %v1071_v17 = vpop.f32.mrf.mxu1 }
 0x160   : > { %v1312_v54 = vadd.f32 %v1311_v44, %v1249_v33 }
 0x161   : > { %v946_v28 = vpop.f32.mrf.mxu0  ;;  %v2281_v29 = vpop.f32.mrf.mxu1 }
 0x162   : > { %1117 = vst [vmem:[%s2007_s23 + $0xe0] sm:$0xff] %v946_v28  ;;  %1149 = vst [vmem:[%s2007_s23 + $0x1e0] sm:$0xff] %v2281_v29  ;;  %v1250_v48 = vmul.f32 %v946_v28, %v946_v28  ;;  %v1180_v57 = vadd.f32 %v1179_v45, %v946_v28  ;;  %v1254_v28 = vmul.f32 %v2011_v11, %v2011_v11 }
 0x163   : > { %v948_v4 = vpop.f32.mrf.mxu0  ;;  %v1076_v10 = vpop.f32.mrf.mxu1 }
 0x164   : > { %v1313_v58 = vadd.f32 %v1312_v54, %v1250_v48 }
 0x165   : > { %v949_v41 = vpop.f32.mrf.mxu0  ;;  %v2286_v24 = vpop.f32.mrf.mxu1 }
 0x166   : > { %1118 = vst [vmem:[%s2007_s23 + $0xe8] sm:$0xff] %v949_v41  ;;  %1150 = vst [vmem:[%s2007_s23 + $0x1e8] sm:$0xff] %v2286_v24  ;;  %v1251_v0 = vmul.f32 %v949_v41, %v949_v41  ;;  %v1181_v61 = vadd.f32 %v1180_v57, %v949_v41  ;;  %v1257_v41 = vmul.f32 %v2035_v23, %v2035_v23 }
 0x167   : > { %v951_v18 = vpop.f32.mrf.mxu0  ;;  %v1079_v22 = vpop.f32.mrf.mxu1 }
 0x168   : > { %v1314_v62 = vadd.f32 %v1313_v58, %v1251_v0 }
 0x169   : > { %v954_v60 = vpop.f32.mrf.mxu0  ;;  %v2291_v26 = vpop.f32.mrf.mxu1 }
 0x16a   : > { %1119 = vst [vmem:[%s2007_s23 + $0xf0] sm:$0xff] %v954_v60  ;;  %v1252_v30 = vmul.f32 %v954_v60, %v954_v60  ;;  %1151 = vst [vmem:[%s2007_s23 + $0x1f0] sm:$0xff] %v2291_v26  ;;  %v1182_v9 = vadd.f32 %v1181_v61, %v954_v60 }
 0x16b   : > { %v956_v34 = vpop.f32.mrf.mxu0  ;;  %v1084_v20 = vpop.f32.mrf.mxu1 }
 0x16c   : > { %v1315_v14 = vadd.f32 %v1314_v62, %v1252_v30 }
 0x16d   : > { %v957_v12 = vpop.f32.mrf.mxu0  ;;  %v2296_v2 = vpop.f32.mrf.mxu1 }
 0x16e   : > { %1120 = vst [vmem:[%s2007_s23 + $0xf8] sm:$0xff] %v957_v12  ;;  %v1183_v17 = vadd.f32 %v1182_v9, %v957_v12  ;;  %v1253_v38 = vmul.f32 %v957_v12, %v957_v12  ;;  %1152 = vst [vmem:[%s2007_s23 + $0x1f8] sm:$0xff] %v2296_v2 }
 0x16f   : > { %v959_v42 = vpop.f32.mrf.mxu0  ;;  %v1087_v6 = vpop.f32.mrf.mxu1 }
 0x170   : > { %v1184_v52 = vadd.f32 %v1183_v17, %v2011_v11  ;;  %v1316_v32 = vadd.f32 %v1315_v14, %v1253_v38  ;;  %v1258_v11 = vmul.f32 %v2043_v27, %v2043_v27 }
 0x172   : > { %v1185_v4 = vadd.f32 %v1184_v52, %v2019_v15  ;;  %v1317_v10 = vadd.f32 %v1316_v32, %v1254_v28  ;;  %v1259_v15 = vmul.f32 %v2051_v31, %v2051_v31 }
 0x174   : > { %v1186_v50 = vadd.f32 %v1185_v4, %v2027_v19  ;;  %v1318_v33 = vadd.f32 %v1317_v10, %v1255_v13  ;;  %v1260_v19 = vmul.f32 %v2059_v35, %v2059_v35 }
 0x176   : > { %v1187_v44 = vadd.f32 %v1186_v50, %v2035_v23  ;;  %v1319_v45 = vadd.f32 %v1318_v33, %v1256_v46  ;;  %v1261_v23 = vmul.f32 %v2067_v39, %v2067_v39  ;;  %v1271_v46 = vmul.f32 %v2158_v36, %v2158_v36 }
 0x178   : > { %v1188_v48 = vadd.f32 %v1187_v44, %v2043_v27  ;;  %v1320_v18 = vadd.f32 %v1319_v45, %v1257_v41  ;;  %v1262_v27 = vmul.f32 %v2075_v43, %v2075_v43  ;;  %v1272_v41 = vmul.f32 %v2172_v49, %v2172_v49 }
 0x179   : > { %v1273_v45 = vmul.f32 %v2186_v1, %v2186_v1 }
 0x17a   : > { %v1189_v22 = vadd.f32 %v1188_v48, %v2051_v31  ;;  %v1321_v54 = vadd.f32 %v1320_v18, %v1258_v11  ;;  %v1263_v31 = vmul.f32 %v2083_v47, %v2083_v47  ;;  %v1274_v48 = vmul.f32 %v2200_v21, %v2200_v21 }
 0x17c   : > { %v1190_v57 = vadd.f32 %v1189_v22, %v2059_v35  ;;  %v1322_v0 = vadd.f32 %v1321_v54, %v1259_v15  ;;  %v1264_v35 = vmul.f32 %v2091_v51, %v2091_v51  ;;  %v1275_v15 = vmul.f32 %v2214_v37, %v2214_v37 }
 0x17d   : > { %v1276_v54 = vmul.f32 %v2226_v53, %v2226_v53 }
 0x17e   : > { %v1191_v60 = vadd.f32 %v1190_v57, %v2067_v39  ;;  %v1323_v58 = vadd.f32 %v1322_v0, %v1260_v19  ;;  %v1265_v39 = vmul.f32 %v2099_v55, %v2099_v55  ;;  %v1277_v57 = vmul.f32 %v2237_v5, %v2237_v5 }
 0x180   : > { %v1324_v61 = vadd.f32 %v1323_v58, %v1261_v23  ;;  %v1192_v30 = vadd.f32 %v1191_v60, %v2075_v43  ;;  %v1266_v43 = vmul.f32 %v2107_v59, %v2107_v59  ;;  %v1278_v23 = vmul.f32 %v2248_v25, %v2248_v25 }
 0x181   : > { %v1279_v58 = vmul.f32 %v2259_v40, %v2259_v40 }
 0x182   : > { %v1193_v34 = vadd.f32 %v1192_v30, %v2083_v47  ;;  %v1325_v20 = vadd.f32 %v1324_v61, %v1262_v27  ;;  %v1267_v47 = vmul.f32 %v2115_v63, %v2115_v63  ;;  %v1280_v61 = vmul.f32 %v2270_v56, %v2270_v56 }
 0x184   : > { %v1194_v62 = vadd.f32 %v1193_v34, %v2091_v51  ;;  %v1326_v9 = vadd.f32 %v1325_v20, %v1263_v31  ;;  %v1268_v51 = vmul.f32 %v2123_v3, %v2123_v3  ;;  %v1281_v31 = vmul.f32 %v2276_v8, %v2276_v8 }
 0x186   : > { %v1195_v12 = vadd.f32 %v1194_v62, %v2099_v55  ;;  %v1327_v14 = vadd.f32 %v1326_v9, %v1264_v35  ;;  %v1269_v55 = vmul.f32 %v2131_v7, %v2131_v7  ;;  %v1283_v62 = vmul.f32 %v2286_v24, %v2286_v24 }
 0x188   : > { %v1196_v17 = vadd.f32 %v1195_v12, %v2107_v59  ;;  %v1328_v38 = vadd.f32 %v1327_v14, %v1265_v39  ;;  %v1270_v59 = vmul.f32 %v2141_v16, %v2141_v16  ;;  %v1284_v39 = vmul.f32 %v2291_v26, %v2291_v26 }
 0x189   : > { %v1285_v14 = vmul.f32 %v2296_v2, %v2296_v2 }
 0x18a   : > { %v1197_v42 = vadd.f32 %v1196_v17, %v2115_v63  ;;  %v1329_v6 = vadd.f32 %v1328_v38, %v1266_v43 }
 0x18c   : > { %v1198_v28 = vadd.f32 %v1197_v42, %v2123_v3  ;;  %v1330_v52 = vadd.f32 %v1329_v6, %v1267_v47 }
 0x18e   : > { %v1199_v32 = vadd.f32 %v1198_v28, %v2131_v7  ;;  %v1331_v13 = vadd.f32 %v1330_v52, %v1268_v51 }
 0x190   : > { %v1200_v4 = vadd.f32 %v1199_v32, %v2141_v16  ;;  %v1332_v10 = vadd.f32 %v1331_v13, %v1269_v55 }
 0x192   : > { %v1201_v63 = vadd.f32 %v1200_v4, %v2158_v36  ;;  %v1333_v50 = vadd.f32 %v1332_v10, %v1270_v59 }
 0x194   : > { %v1334_v3 = vadd.f32 %v1333_v50, %v1271_v46  ;;  %v1202_v33 = vadd.f32 %v1201_v63, %v2172_v49 }
 0x196   : > { %v1335_v7 = vadd.f32 %v1334_v3, %v1272_v41  ;;  %v1203_v44 = vadd.f32 %v1202_v33, %v2186_v1 }
 0x198   : > { %v1336_v16 = vadd.f32 %v1335_v7, %v1273_v45  ;;  %v1204_v11 = vadd.f32 %v1203_v44, %v2200_v21 }
 0x19a   : > { %v1337_v36 = vadd.f32 %v1336_v16, %v1274_v48  ;;  %v1205_v18 = vadd.f32 %v1204_v11, %v2214_v37 }
 0x19c   : > { %v1338_v22 = vadd.f32 %v1337_v36, %v1275_v15  ;;  %v1206_v49 = vadd.f32 %v1205_v18, %v2226_v53 }
 0x19e   : > { %v1339_v19 = vadd.f32 %v1338_v22, %v1276_v54  ;;  %v1207_v1 = vadd.f32 %v1206_v49, %v2237_v5 }
 0x1a0   : > { %v1340_v0 = vadd.f32 %v1339_v19, %v1277_v57  ;;  %v1208_v21 = vadd.f32 %v1207_v1, %v2248_v25 }
 0x1a2   : > { %v1341_v60 = vadd.f32 %v1340_v0, %v1278_v23  ;;  %v1209_v37 = vadd.f32 %v1208_v21, %v2259_v40  ;;  %v1282_v40 = vmul.f32 %v2281_v29, %v2281_v29 }
 0x1a4   : > { %v1342_v27 = vadd.f32 %v1341_v60, %v1279_v58  ;;  %v1210_v53 = vadd.f32 %v1209_v37, %v2270_v56 }
 0x1a6   : > { %v1343_v5 = vadd.f32 %v1342_v27, %v1280_v61  ;;  %v1211_v30 = vadd.f32 %v1210_v53, %v2276_v8 }
 0x1a8   : > { %v1344_v25 = vadd.f32 %v1343_v5, %v1281_v31  ;;  %v1212_v34 = vadd.f32 %v1211_v30, %v2281_v29 }
 0x1aa   : > { %v1345_v20 = vadd.f32 %v1344_v25, %v1282_v40  ;;  %v1213_v35 = vadd.f32 %v1212_v34, %v2286_v24 }
 0x1ac   : > { %v1346_v56 = vadd.f32 %v1345_v20, %v1283_v62  ;;  %v1214_v9 = vadd.f32 %v1213_v35, %v2291_v26 }
 0x1ae   : > { %v1347_v8 = vadd.f32 %v1346_v56, %v1284_v39  ;;  %v1215_v12 = vadd.f32 %v1214_v9, %v2296_v2 }
 0x1b0   : > { %v1216_v29 = vrot.slane %v1215_v12, 4  ;;  %v1348_v43 = vadd.f32 %v1347_v8, %v1285_v14 }
 0x1b2   : > { %v1217_v17 = vadd.f32 %v1216_v29, %v1215_v12  ;;  %v1349_v38 = vrot.slane %v1348_v43, 4 }
 0x1b4   : > { %v1218_v47 = vrot.slane %v1217_v17, 2  ;;  %v1350_v24 = vadd.f32 %v1349_v38, %v1348_v43 }
 0x1b6   : > { %v1219_v42 = vadd.f32 %v1218_v47, %v1217_v17  ;;  %v1351_v6 = vrot.slane %v1350_v24, 2 }
 0x1b8   : > { %v1220_v51 = vrot.slane %v1219_v42, 1  ;;  %v1352_v28 = vadd.f32 %v1351_v6, %v1350_v24 }
 0x1ba   : > { %v1221_v26 = vadd.f32 %v1220_v51, %v1219_v42  ;;  %v1353_v52 = vrot.slane %v1352_v28, 1 }
 0x1bc   : > { %v1354_v2 = vadd.f32 %v1353_v52, %v1352_v28  ;;  %1355 = vst [vmem:[%s270_s26] sm:$0xff] %v1221_v26 }
 0x1be   : > { %1356 = vst [vmem:[%s277_s29] sm:$0xff] %v1354_v2 }
 0x1bf PF: > { %s15_s17 = sadd.s32 1, %s1820_s17   ;;  %s2419_s15 = smov %s1816_s16 }
 0x1c0   : > { %p12_p6 = scmp.ge.s32.totalorder %s15_s17, 4   ;;  %s2420_s16 = smov %s2422_s18 }
 0x1c2   :  { %14 = sbr.rel (!%p12_p6) target bundleno = 2 (0x2), region = 85 }

// kernel: dwac_forward.25
= control target key start
LH: loop header
LB: loop body
LE: loop exit
PB: predicated region body
PF: predicated region fallthrough
CT: control target
= control target key end

     0   :  { %v758_v0 = vmov 0   ;;  %vm263_vm0 = vcmask 130048   ;;  %s1109_s1 = inlined_call_operand.vmem [shape: bf16[144,128], index: 1, kind: input, shape index: {}]   ;;  %s1110_s0 = inlined_call_operand.vmem [shape: bf16[256,144], index: 0, kind: input, shape index: {}]   ;;  %s1111_s2 = inlined_call_operand.vmem [shape: f32[256,128], index: 2, kind: output, shape index: {0}]   ;;  %s1112_s3 = inlined_call_operand.vmem [shape: f32[8,128], index: 3, kind: output, shape index: {1}]   ;;  %s1113_s4 = inlined_call_operand.vmem [shape: f32[8,128], index: 4, kind: output, shape index: {2}]  }
   0x1   :  { %312 = vmatprep.subr.bf16.mxu0 %v758_v0  ;;  %v701_v1 = vld [vmem:[%s1109_s1 + $0x38] sm:$0xff]   ;;  %682 = vmatprep.subr.bf16.mxu1 %v758_v0  ;;  %v702_v2 = vld [vmem:[%s1109_s1 + $0x30] sm:$0xff]   ;;  %v703_v3 = vld [vmem:[%s1109_s1 + $0x28] sm:$0xff]  }
   0x2   :  { %313 = vmatpush1.bf16.msra.mxu0 %v701_v1  ;;  %691 = vmatpush1.bf16.msra.mxu1 %v701_v1  ;;  %v704_v4 = vld [vmem:[%s1109_s1 + $0x20] sm:$0xff]   ;;  %v705_v6 = vld [vmem:[%s1109_s1 + $0x18] sm:$0xff]   ;;  %v706_v8 = vld [vmem:[%s1109_s1 + $0x10] sm:$0xff]  }
   0x3   :  { %314 = vmatprep.subr.bf16.mxu0 %v758_v0  ;;  %683 = vmatprep.subr.bf16.mxu1 %v758_v0  ;;  %v712_v5 = vld [vmem:[%s1110_s0 + $0x4] ss:$8 sps:$4 sm:$0xff]   ;;  %v710_v12 = vld [vmem:[%s1110_s0] ss:$8 sps:$4 sm:$0xff]   ;;  %v713_v14 = vld [vmem:[%s1110_s0 + $0x14] ss:$8 sps:$4 sm:$0xff]  }
   0x4   :  { %666 = vmatprep.mubr.msk.bf16.mxu0 %vm263_vm0, %v712_v5  ;;  %v724_v7 = vld [vmem:[%s1110_s0 + $0x84] ss:$8 sps:$4 sm:$0xff]   ;;  %v722_v13 = vld [vmem:[%s1110_s0 + $0x80] ss:$8 sps:$4 sm:$0xff]   ;;  %v728_v15 = vld [vmem:[%s1110_s0 + $0x94] ss:$8 sps:$4 sm:$0xff]  }
   0x5   :  { %674 = vmatprep.mubr.msk.bf16.mxu1 %vm263_vm0, %v724_v7  ;;  %v707_v9 = vld [vmem:[%s1109_s1 + $0x8] sm:$0xff]   ;;  %v708_v10 = vld [vmem:[%s1109_s1] sm:$0xff]   ;;  %v715_v16 = vld [vmem:[%s1110_s0 + $0x10] ss:$8 sps:$4 sm:$0xff]  }
   0x6   :  { %315 = vmatpush1.bf16.msra.mxu0 %v702_v2  ;;  %692 = vmatpush1.bf16.msra.mxu1 %v702_v2  ;;  %v709_v11 = vld [vmem:[%s1109_s1 + $0x40] sm:$0xff]   ;;  %v730_v17 = vld [vmem:[%s1110_s0 + $0x90] ss:$8 sps:$4 sm:$0xff]   ;;  %v719_v22 = vld [vmem:[%s1110_s0 + $0x34] ss:$8 sps:$4 sm:$0xff]  }
   0x7   :  { %316 = vmatprep.subr.bf16.mxu0 %v758_v0  ;;  %684 = vmatprep.subr.bf16.mxu1 %v758_v0  ;;  %v716_v18 = vld [vmem:[%s1110_s0 + $0x24] ss:$8 sps:$4 sm:$0xff]   ;;  %v718_v20 = vld [vmem:[%s1110_s0 + $0x20] ss:$8 sps:$4 sm:$0xff]   ;;  %v740_v23 = vld [vmem:[%s1110_s0 + $0xb4] ss:$8 sps:$4 sm:$0xff]  }
   0x8   :  { %v734_v19 = vld [vmem:[%s1110_s0 + $0xa4] ss:$8 sps:$4 sm:$0xff]   ;;  %v736_v21 = vld [vmem:[%s1110_s0 + $0xa0] ss:$8 sps:$4 sm:$0xff]   ;;  %v721_v24 = vld [vmem:[%s1110_s0 + $0x30] ss:$8 sps:$4 sm:$0xff]  }
   0x9   :  { %v742_v25 = vld [vmem:[%s1110_s0 + $0xb0] ss:$8 sps:$4 sm:$0xff]   ;;  %v725_v26 = vld [vmem:[%s1110_s0 + $0x44] ss:$8 sps:$4 sm:$0xff]   ;;  %v727_v28 = vld [vmem:[%s1110_s0 + $0x40] ss:$8 sps:$4 sm:$0xff]  }
   0xa   :  { %317 = vmatpush1.bf16.msra.mxu0 %v703_v3  ;;  %693 = vmatpush1.bf16.msra.mxu1 %v703_v3  ;;  %v746_v27 = vld [vmem:[%s1110_s0 + $0xc4] ss:$8 sps:$4 sm:$0xff]   ;;  %v748_v29 = vld [vmem:[%s1110_s0 + $0xc0] ss:$8 sps:$4 sm:$0xff]   ;;  %v731_v30 = vld [vmem:[%s1110_s0 + $0x54] ss:$8 sps:$4 sm:$0xff]  }
   0xb   :  { %318 = vmatprep.subr.bf16.mxu0 %v758_v0  ;;  %685 = vmatprep.subr.bf16.mxu1 %v758_v0  ;;  %v749_v31 = vld [vmem:[%s1110_s0 + $0xd4] ss:$8 sps:$4 sm:$0xff]   ;;  %v733_v32 = vld [vmem:[%s1110_s0 + $0x50] ss:$8 sps:$4 sm:$0xff]   ;;  %v737_v34 = vld [vmem:[%s1110_s0 + $0x64] ss:$8 sps:$4 sm:$0xff]  }
   0xc   :  { %v751_v33 = vld [vmem:[%s1110_s0 + $0xd0] ss:$8 sps:$4 sm:$0xff]   ;;  %v752_v35 = vld [vmem:[%s1110_s0 + $0xe4] ss:$8 sps:$4 sm:$0xff]   ;;  %v739_v36 = vld [vmem:[%s1110_s0 + $0x60] ss:$8 sps:$4 sm:$0xff]  }
   0xd   :  { %v754_v37 = vld [vmem:[%s1110_s0 + $0xe0] ss:$8 sps:$4 sm:$0xff]   ;;  %v743_v38 = vld [vmem:[%s1110_s0 + $0x74] ss:$8 sps:$4 sm:$0xff]   ;;  %v745_v40 = vld [vmem:[%s1110_s0 + $0x70] ss:$8 sps:$4 sm:$0xff]  }
   0xe   :  { %319 = vmatpush1.bf16.msra.mxu0 %v704_v4  ;;  %694 = vmatpush1.bf16.msra.mxu1 %v704_v4  ;;  %v755_v39 = vld [vmem:[%s1110_s0 + $0xf4] ss:$8 sps:$4 sm:$0xff]   ;;  %v757_v41 = vld [vmem:[%s1110_s0 + $0xf0] ss:$8 sps:$4 sm:$0xff]  }
   0xf   :  { %320 = vmatprep.subr.bf16.mxu0 %v758_v0  ;;  %686 = vmatprep.subr.bf16.mxu1 %v758_v0 }
  0x12   :  { %321 = vmatpush1.bf16.msra.mxu0 %v705_v6  ;;  %695 = vmatpush1.bf16.msra.mxu1 %v705_v6 }
  0x13   :  { %322 = vmatprep.subr.bf16.mxu0 %v758_v0  ;;  %687 = vmatprep.subr.bf16.mxu1 %v758_v0 }
  0x16   :  { %323 = vmatpush1.bf16.msra.mxu0 %v706_v8  ;;  %696 = vmatpush1.bf16.msra.mxu1 %v706_v8 }
  0x17   :  { %324 = vmatprep.subr.bf16.mxu0 %v758_v0  ;;  %688 = vmatprep.subr.bf16.mxu1 %v758_v0 }
  0x1a   :  { %325 = vmatpush1.bf16.msra.mxu0 %v707_v9  ;;  %697 = vmatpush1.bf16.msra.mxu1 %v707_v9 }
  0x1b   :  { %326 = vmatprep.subr.bf16.mxu0 %v758_v0  ;;  %689 = vmatprep.subr.bf16.mxu1 %v758_v0 }
  0x1e   :  { %327 = vmatpush1.bf16.msra.mxu0 %v708_v10  ;;  %698 = vmatpush1.bf16.msra.mxu1 %v708_v10 }
  0x1f   :  { %342 = vmatprep.subr.bf16.mxu0 %v758_v0  ;;  %690 = vmatprep.subr.bf16.mxu1 %v758_v0 }
  0x22   :  { %343 = vmatpush2.bf16.msra.mxu0 %v709_v11  ;;  %699 = vmatpush2.bf16.msra.mxu1 %v709_v11 }
  0x25   :  { %345 = vmatmul.mubr.bf16.vlgmr.msra.gmra.mxu0 %v710_v12  ;;  %409 = vmatmul.mubr.bf16.vlgmr.msra.gmra.mxu1 %v722_v13 }
  0x26   :  { %667 = vmatprep.mubr.msk.bf16.mxu0 %vm263_vm0, %v713_v14  ;;  %675 = vmatprep.mubr.msk.bf16.mxu1 %vm263_vm0, %v728_v15 }
  0x2d   :  { %353 = vmatmul.mubr.bf16.gmra.mxu0 %v715_v16  ;;  %417 = vmatmul.mubr.bf16.gmra.mxu1 %v730_v17 }
  0x2e   :  { %668 = vmatprep.mubr.msk.bf16.mxu0 %vm263_vm0, %v716_v18  ;;  %676 = vmatprep.mubr.msk.bf16.mxu1 %vm263_vm0, %v734_v19 }
  0x35   :  { %361 = vmatmul.mubr.bf16.gmra.mxu0 %v718_v20  ;;  %425 = vmatmul.mubr.bf16.gmra.mxu1 %v736_v21 }
  0x36   :  { %669 = vmatprep.mubr.msk.bf16.mxu0 %vm263_vm0, %v719_v22  ;;  %677 = vmatprep.mubr.msk.bf16.mxu1 %vm263_vm0, %v740_v23 }
  0x3d   :  { %369 = vmatmul.mubr.bf16.gmra.mxu0 %v721_v24  ;;  %433 = vmatmul.mubr.bf16.gmra.mxu1 %v742_v25 }
  0x3e   :  { %670 = vmatprep.mubr.msk.bf16.mxu0 %vm263_vm0, %v725_v26  ;;  %678 = vmatprep.mubr.msk.bf16.mxu1 %vm263_vm0, %v746_v27 }
  0x45   :  { %377 = vmatmul.mubr.bf16.gmra.mxu0 %v727_v28  ;;  %441 = vmatmul.mubr.bf16.gmra.mxu1 %v748_v29 }
  0x46   :  { %671 = vmatprep.mubr.msk.bf16.mxu0 %vm263_vm0, %v731_v30  ;;  %679 = vmatprep.mubr.msk.bf16.mxu1 %vm263_vm0, %v749_v31 }
  0x4d   :  { %385 = vmatmul.mubr.bf16.gmra.mxu0 %v733_v32  ;;  %449 = vmatmul.mubr.bf16.gmra.mxu1 %v751_v33 }
  0x4e   :  { %672 = vmatprep.mubr.msk.bf16.mxu0 %vm263_vm0, %v737_v34  ;;  %680 = vmatprep.mubr.msk.bf16.mxu1 %vm263_vm0, %v752_v35 }
  0x55   :  { %393 = vmatmul.mubr.bf16.gmra.mxu0 %v739_v36  ;;  %457 = vmatmul.mubr.bf16.gmra.mxu1 %v754_v37 }
  0x56   :  { %673 = vmatprep.mubr.msk.bf16.mxu0 %vm263_vm0, %v743_v38  ;;  %681 = vmatprep.mubr.msk.bf16.mxu1 %vm263_vm0, %v755_v39 }
  0x5d   :  { %401 = vmatmul.mubr.bf16.gmra.mxu0 %v745_v40  ;;  %465 = vmatmul.mubr.bf16.gmra.mxu1 %v757_v41 }
  0xe5   :  { %v346_v42 = vpop.f32.mrf.mxu0  ;;  %v923_v43 = vpop.f32.mrf.mxu1 }
  0xe6   :  { %473 = vst [vmem:[%s1111_s2] sm:$0xff] %v346_v42  ;;  %489 = vst [vmem:[%s1111_s2 + $0x80] sm:$0xff] %v923_v43  ;;  %v542_v13 = vmul.f32 %v346_v42, %v346_v42 }
  0xe7   :  { %v348_v44 = vpop.f32.mrf.mxu0  ;;  %v412_v45 = vpop.f32.mrf.mxu1 }
  0xe9   :  { %v349_v46 = vpop.f32.mrf.mxu0  ;;  %v932_v47 = vpop.f32.mrf.mxu1 }
  0xea   :  { %474 = vst [vmem:[%s1111_s2 + $0x8] sm:$0xff] %v349_v46  ;;  %490 = vst [vmem:[%s1111_s2 + $0x88] sm:$0xff] %v932_v47  ;;  %v543_v10 = vmul.f32 %v349_v46, %v349_v46  ;;  %v505_v14 = vadd.f32 %v349_v46, %v346_v42 }
  0xeb   :  { %v351_v48 = vpop.f32.mrf.mxu0  ;;  %v415_v49 = vpop.f32.mrf.mxu1 }
  0xec   :  { %v574_v18 = vadd.f32 %v543_v10, %v542_v13 }
  0xed   :  { %v354_v50 = vpop.f32.mrf.mxu0  ;;  %v941_v51 = vpop.f32.mrf.mxu1 }
  0xee   :  { %475 = vst [vmem:[%s1111_s2 + $0x10] sm:$0xff] %v354_v50  ;;  %491 = vst [vmem:[%s1111_s2 + $0x90] sm:$0xff] %v941_v51  ;;  %v544_v15 = vmul.f32 %v354_v50, %v354_v50  ;;  %v506_v19 = vadd.f32 %v505_v14, %v354_v50 }
  0xef   :  { %v356_v52 = vpop.f32.mrf.mxu0  ;;  %v420_v53 = vpop.f32.mrf.mxu1 }
  0xf0   :  { %v575_v23 = vadd.f32 %v574_v18, %v544_v15 }
  0xf1   :  { %v357_v54 = vpop.f32.mrf.mxu0  ;;  %v950_v55 = vpop.f32.mrf.mxu1 }
  0xf2   :  { %476 = vst [vmem:[%s1111_s2 + $0x18] sm:$0xff] %v357_v54  ;;  %492 = vst [vmem:[%s1111_s2 + $0x98] sm:$0xff] %v950_v55  ;;  %v545_v20 = vmul.f32 %v357_v54, %v357_v54  ;;  %v507_v24 = vadd.f32 %v506_v19, %v357_v54 }
  0xf3   :  { %v359_v56 = vpop.f32.mrf.mxu0  ;;  %v423_v57 = vpop.f32.mrf.mxu1 }
  0xf4   :  { %v576_v28 = vadd.f32 %v575_v23, %v545_v20 }
  0xf5   :  { %v362_v58 = vpop.f32.mrf.mxu0  ;;  %v959_v59 = vpop.f32.mrf.mxu1 }
  0xf6   :  { %477 = vst [vmem:[%s1111_s2 + $0x20] sm:$0xff] %v362_v58  ;;  %493 = vst [vmem:[%s1111_s2 + $0xa0] sm:$0xff] %v959_v59  ;;  %v546_v25 = vmul.f32 %v362_v58, %v362_v58  ;;  %v508_v29 = vadd.f32 %v507_v24, %v362_v58 }
  0xf7   :  { %v364_v60 = vpop.f32.mrf.mxu0  ;;  %v428_v61 = vpop.f32.mrf.mxu1 }
  0xf8   :  { %v577_v33 = vadd.f32 %v576_v28, %v546_v25 }
  0xf9   :  { %v365_v62 = vpop.f32.mrf.mxu0  ;;  %v968_v63 = vpop.f32.mrf.mxu1 }
  0xfa   :  { %478 = vst [vmem:[%s1111_s2 + $0x28] sm:$0xff] %v365_v62  ;;  %494 = vst [vmem:[%s1111_s2 + $0xa8] sm:$0xff] %v968_v63  ;;  %v547_v30 = vmul.f32 %v365_v62, %v365_v62  ;;  %v509_v34 = vadd.f32 %v508_v29, %v365_v62 }
  0xfb   :  { %v367_v0 = vpop.f32.mrf.mxu0  ;;  %v431_v1 = vpop.f32.mrf.mxu1 }
  0xfc   :  { %v578_v38 = vadd.f32 %v577_v33, %v547_v30 }
  0xfd   :  { %v370_v2 = vpop.f32.mrf.mxu0  ;;  %v977_v3 = vpop.f32.mrf.mxu1 }
  0xfe   :  { %479 = vst [vmem:[%s1111_s2 + $0x30] sm:$0xff] %v370_v2  ;;  %495 = vst [vmem:[%s1111_s2 + $0xb0] sm:$0xff] %v977_v3  ;;  %v548_v35 = vmul.f32 %v370_v2, %v370_v2  ;;  %v510_v39 = vadd.f32 %v509_v34, %v370_v2  ;;  %v558_v34 = vmul.f32 %v923_v43, %v923_v43 }
  0xff   :  { %v372_v4 = vpop.f32.mrf.mxu0  ;;  %v436_v5 = vpop.f32.mrf.mxu1 }
 0x100   :  { %v579_v44 = vadd.f32 %v578_v38, %v548_v35 }
 0x101   :  { %v373_v6 = vpop.f32.mrf.mxu0  ;;  %v986_v7 = vpop.f32.mrf.mxu1 }
 0x102   :  { %480 = vst [vmem:[%s1111_s2 + $0x38] sm:$0xff] %v373_v6  ;;  %496 = vst [vmem:[%s1111_s2 + $0xb8] sm:$0xff] %v986_v7  ;;  %v549_v40 = vmul.f32 %v373_v6, %v373_v6  ;;  %v511_v45 = vadd.f32 %v510_v39, %v373_v6 }
 0x103   :  { %v375_v8 = vpop.f32.mrf.mxu0  ;;  %v439_v9 = vpop.f32.mrf.mxu1 }
 0x104   :  { %v580_v50 = vadd.f32 %v579_v44, %v549_v40  ;;  %v560_v40 = vmul.f32 %v941_v51, %v941_v51 }
 0x105   :  { %v378_v11 = vpop.f32.mrf.mxu0  ;;  %v995_v12 = vpop.f32.mrf.mxu1 }
 0x106   :  { %481 = vst [vmem:[%s1111_s2 + $0x40] sm:$0xff] %v378_v11  ;;  %497 = vst [vmem:[%s1111_s2 + $0xc0] sm:$0xff] %v995_v12  ;;  %v550_v46 = vmul.f32 %v378_v11, %v378_v11  ;;  %v512_v52 = vadd.f32 %v511_v45, %v378_v11  ;;  %v561_v45 = vmul.f32 %v950_v55, %v950_v55 }
 0x107   :  { %v380_v16 = vpop.f32.mrf.mxu0  ;;  %v444_v17 = vpop.f32.mrf.mxu1 }
 0x108   :  { %v581_v57 = vadd.f32 %v580_v50, %v550_v46 }
 0x109   :  { %v381_v21 = vpop.f32.mrf.mxu0  ;;  %v1004_v22 = vpop.f32.mrf.mxu1 }
 0x10a   :  { %482 = vst [vmem:[%s1111_s2 + $0x48] sm:$0xff] %v381_v21  ;;  %498 = vst [vmem:[%s1111_s2 + $0xc8] sm:$0xff] %v1004_v22  ;;  %v551_v53 = vmul.f32 %v381_v21, %v381_v21  ;;  %v513_v58 = vadd.f32 %v512_v52, %v381_v21 }
 0x10b   :  { %v383_v26 = vpop.f32.mrf.mxu0  ;;  %v447_v27 = vpop.f32.mrf.mxu1 }
 0x10c   :  { %v582_v0 = vadd.f32 %v581_v57, %v551_v53 }
 0x10d   :  { %v386_v31 = vpop.f32.mrf.mxu0  ;;  %v1013_v32 = vpop.f32.mrf.mxu1 }
 0x10e   :  { %483 = vst [vmem:[%s1111_s2 + $0x50] sm:$0xff] %v386_v31  ;;  %499 = vst [vmem:[%s1111_s2 + $0xd0] sm:$0xff] %v1013_v32  ;;  %v552_v60 = vmul.f32 %v386_v31, %v386_v31  ;;  %v514_v1 = vadd.f32 %v513_v58, %v386_v31 }
 0x10f   :  { %v388_v36 = vpop.f32.mrf.mxu0  ;;  %v452_v37 = vpop.f32.mrf.mxu1 }
 0x110   :  { %v583_v6 = vadd.f32 %v582_v0, %v552_v60  ;;  %v559_v37 = vmul.f32 %v932_v47, %v932_v47  ;;  %v567_v0 = vmul.f32 %v1004_v22, %v1004_v22 }
 0x111   :  { %v389_v41 = vpop.f32.mrf.mxu0  ;;  %v1022_v42 = vpop.f32.mrf.mxu1 }
 0x112   :  { %484 = vst [vmem:[%s1111_s2 + $0x58] sm:$0xff] %v389_v41  ;;  %500 = vst [vmem:[%s1111_s2 + $0xd8] sm:$0xff] %v1022_v42  ;;  %v553_v2 = vmul.f32 %v389_v41, %v389_v41  ;;  %v515_v8 = vadd.f32 %v514_v1, %v389_v41 }
 0x113   :  { %v391_v48 = vpop.f32.mrf.mxu0  ;;  %v455_v49 = vpop.f32.mrf.mxu1 }
 0x114   :  { %v584_v13 = vadd.f32 %v583_v6, %v553_v2 }
 0x115   :  { %v394_v54 = vpop.f32.mrf.mxu0  ;;  %v1031_v56 = vpop.f32.mrf.mxu1 }
 0x116   :  { %485 = vst [vmem:[%s1111_s2 + $0x60] sm:$0xff] %v394_v54  ;;  %501 = vst [vmem:[%s1111_s2 + $0xe0] sm:$0xff] %v1031_v56  ;;  %v554_v9 = vmul.f32 %v394_v54, %v394_v54  ;;  %v516_v14 = vadd.f32 %v515_v8, %v394_v54  ;;  %v569_v8 = vmul.f32 %v1022_v42, %v1022_v42 }
 0x117   :  { %v396_v61 = vpop.f32.mrf.mxu0  ;;  %v460_v62 = vpop.f32.mrf.mxu1 }
 0x118   :  { %v585_v18 = vadd.f32 %v584_v13, %v554_v9 }
 0x119   :  { %v397_v4 = vpop.f32.mrf.mxu0  ;;  %v1040_v5 = vpop.f32.mrf.mxu1 }
 0x11a   :  { %486 = vst [vmem:[%s1111_s2 + $0x68] sm:$0xff] %v397_v4  ;;  %502 = vst [vmem:[%s1111_s2 + $0xe8] sm:$0xff] %v1040_v5  ;;  %v555_v15 = vmul.f32 %v397_v4, %v397_v4  ;;  %v517_v19 = vadd.f32 %v516_v14, %v397_v4  ;;  %v568_v4 = vmul.f32 %v1013_v32, %v1013_v32 }
 0x11b   :  { %v399_v10 = vpop.f32.mrf.mxu0  ;;  %v463_v11 = vpop.f32.mrf.mxu1  ;;  %v571_v13 = vmul.f32 %v1040_v5, %v1040_v5 }
 0x11c   :  { %v586_v24 = vadd.f32 %v585_v18, %v555_v15  ;;  %v570_v10 = vmul.f32 %v1031_v56, %v1031_v56 }
 0x11d   :  { %v402_v16 = vpop.f32.mrf.mxu0  ;;  %v466_v17 = vpop.f32.mrf.mxu1 }
 0x11e   :  { %487 = vst [vmem:[%s1111_s2 + $0x70] sm:$0xff] %v402_v16  ;;  %v556_v20 = vmul.f32 %v402_v16, %v402_v16  ;;  %503 = vst [vmem:[%s1111_s2 + $0xf0] sm:$0xff] %v466_v17  ;;  %v518_v25 = vadd.f32 %v517_v19, %v402_v16  ;;  %v572_v15 = vmul.f32 %v466_v17, %v466_v17 }
 0x11f   :  { %v404_v21 = vpop.f32.mrf.mxu0  ;;  %v468_v23 = vpop.f32.mrf.mxu1 }
 0x120   :  { %v587_v28 = vadd.f32 %v586_v24, %v556_v20 }
 0x121   :  { %v405_v26 = vpop.f32.mrf.mxu0  ;;  %v469_v27 = vpop.f32.mrf.mxu1 }
 0x122   :  { %488 = vst [vmem:[%s1111_s2 + $0x78] sm:$0xff] %v405_v26  ;;  %v519_v29 = vadd.f32 %v518_v25, %v405_v26  ;;  %v557_v30 = vmul.f32 %v405_v26, %v405_v26  ;;  %504 = vst [vmem:[%s1111_s2 + $0xf8] sm:$0xff] %v469_v27  ;;  %v573_v19 = vmul.f32 %v469_v27, %v469_v27 }
 0x123   :  { %v407_v31 = vpop.f32.mrf.mxu0  ;;  %v471_v33 = vpop.f32.mrf.mxu1 }
 0x124   :  { %v520_v35 = vadd.f32 %v519_v29, %v923_v43  ;;  %v588_v36 = vadd.f32 %v587_v28, %v557_v30  ;;  %v562_v43 = vmul.f32 %v959_v59, %v959_v59 }
 0x126   :  { %v521_v38 = vadd.f32 %v520_v35, %v932_v47  ;;  %v589_v39 = vadd.f32 %v588_v36, %v558_v34  ;;  %v563_v47 = vmul.f32 %v968_v63, %v968_v63 }
 0x128   :  { %v522_v41 = vadd.f32 %v521_v38, %v941_v51  ;;  %v590_v44 = vadd.f32 %v589_v39, %v559_v37  ;;  %v564_v51 = vmul.f32 %v977_v3, %v977_v3 }
 0x12a   :  { %v523_v46 = vadd.f32 %v522_v41, %v950_v55  ;;  %v591_v48 = vadd.f32 %v590_v44, %v560_v40  ;;  %v565_v55 = vmul.f32 %v986_v7, %v986_v7 }
 0x12c   :  { %v592_v49 = vadd.f32 %v591_v48, %v561_v45  ;;  %v524_v50 = vadd.f32 %v523_v46, %v959_v59  ;;  %v566_v59 = vmul.f32 %v995_v12, %v995_v12 }
 0x12e   :  { %v525_v52 = vadd.f32 %v524_v50, %v968_v63  ;;  %v593_v53 = vadd.f32 %v592_v49, %v562_v43 }
 0x130   :  { %v526_v54 = vadd.f32 %v525_v52, %v977_v3  ;;  %v594_v57 = vadd.f32 %v593_v53, %v563_v47 }
 0x132   :  { %v527_v58 = vadd.f32 %v526_v54, %v986_v7  ;;  %v595_v60 = vadd.f32 %v594_v57, %v564_v51 }
 0x134   :  { %v528_v61 = vadd.f32 %v527_v58, %v995_v12  ;;  %v596_v62 = vadd.f32 %v595_v60, %v565_v55 }
 0x136   :  { %v529_v63 = vadd.f32 %v528_v61, %v1004_v22  ;;  %v597_v1 = vadd.f32 %v596_v62, %v566_v59 }
 0x138   :  { %v598_v3 = vadd.f32 %v597_v1, %v567_v0  ;;  %v530_v2 = vadd.f32 %v529_v63, %v1013_v32 }
 0x13a   :  { %v599_v7 = vadd.f32 %v598_v3, %v568_v4  ;;  %v531_v6 = vadd.f32 %v530_v2, %v1022_v42 }
 0x13c   :  { %v600_v12 = vadd.f32 %v599_v7, %v569_v8  ;;  %v532_v9 = vadd.f32 %v531_v6, %v1031_v56 }
 0x13e   :  { %v601_v22 = vadd.f32 %v600_v12, %v570_v10  ;;  %v533_v11 = vadd.f32 %v532_v9, %v1040_v5 }
 0x140   :  { %v602_v14 = vadd.f32 %v601_v22, %v571_v13  ;;  %v534_v32 = vadd.f32 %v533_v11, %v466_v17 }
 0x142   :  { %v603_v16 = vadd.f32 %v602_v14, %v572_v15  ;;  %v535_v18 = vadd.f32 %v534_v32, %v469_v27 }
 0x144   :  { %v536_v20 = vrot.slane %v535_v18, 4  ;;  %v604_v42 = vadd.f32 %v603_v16, %v573_v19 }
 0x146   :  { %v537_v21 = vadd.f32 %v536_v20, %v535_v18  ;;  %v605_v23 = vrot.slane %v604_v42, 4 }
 0x148   :  { %v538_v24 = vrot.slane %v537_v21, 2  ;;  %v606_v25 = vadd.f32 %v605_v23, %v604_v42 }
 0x14a   :  { %v539_v26 = vadd.f32 %v538_v24, %v537_v21  ;;  %v607_v56 = vrot.slane %v606_v25, 2 }
 0x14c   :  { %v540_v28 = vrot.slane %v539_v26, 1  ;;  %v608_v29 = vadd.f32 %v607_v56, %v606_v25 }
 0x14e   :  { %v541_v30 = vadd.f32 %v540_v28, %v539_v26  ;;  %v609_v31 = vrot.slane %v608_v29, 1 }
 0x150   :  { %v610_v33 = vadd.f32 %v609_v31, %v608_v29  ;;  %611 = vst [vmem:[%s1112_s3] sm:$0xff] %v541_v30 }
 0x152   :  { %612 = vst [vmem:[%s1113_s4] sm:$0xff] %v610_v33 }

// kernel: dwac_forward.27
= control target key start
LH: loop header
LB: loop body
LE: loop exit
PB: predicated region body
PF: predicated region fallthrough
CT: control target
= control target key end

     0   :  { %vm135_vm0 = vcmask 130048   ;;  %s860_s1 = inlined_call_operand.vmem [shape: bf16[16,128], index: 1, kind: input, shape index: {}]   ;;  %s861_s0 = inlined_call_operand.vmem [shape: bf16[256,16], index: 0, kind: input, shape index: {}]   ;;  %s862_s2 = inlined_call_operand.vmem [shape: f32[256,128], index: 2, kind: output, shape index: {0}]   ;;  %s863_s3 = inlined_call_operand.vmem [shape: f32[8,128], index: 3, kind: output, shape index: {1}]   ;;  %s864_s4 = inlined_call_operand.vmem [shape: f32[8,128], index: 4, kind: output, shape index: {2}]  }
   0x1   :  { %v583_v0 = vld [vmem:[%s860_s1] sm:$0xff]   ;;  %v585_v2 = vld [vmem:[%s861_s0 + $0x8] sm:$0xff]   ;;  %v586_v3 = vld [vmem:[%s861_s0 + $0x10] sm:$0xff]  }
   0x2   :  { %v584_v1 = vld [vmem:[%s861_s0] sm:$0xff]   ;;  %547 = vmatprep.subr.bf16.mxu0 %v583_v0  ;;  %581 = vmatprep.subr.bf16.mxu1 %v583_v0  ;;  %v587_v4 = vld [vmem:[%s861_s0 + $0x18] sm:$0xff]   ;;  %v593_v7 = vld [vmem:[%s861_s0 + $0x48] sm:$0xff]  }
   0x3   :  { %548 = vmatpush3.bf16.msra.mxu0 %v583_v0  ;;  %549 = vmatprep.mubr.msk.bf16.mxu0 %vm135_vm0, %v584_v1  ;;  %v588_v5 = vld [vmem:[%s861_s0 + $0x20] sm:$0xff]   ;;  %v594_v8 = vld [vmem:[%s861_s0 + $0x50] sm:$0xff]   ;;  %v595_v9 = vld [vmem:[%s861_s0 + $0x58] sm:$0xff]  }
   0x4   :  { %582 = vmatpush3.bf16.msra.mxu1 %v583_v0  ;;  %v592_v6 = vld [vmem:[%s861_s0 + $0x40] sm:$0xff]   ;;  %v589_v11 = vld [vmem:[%s861_s0 + $0x28] sm:$0xff]   ;;  %v590_v12 = vld [vmem:[%s861_s0 + $0x30] sm:$0xff]  }
   0x5   :  { %565 = vmatprep.mubr.msk.bf16.mxu1 %vm135_vm0, %v592_v6  ;;  %v596_v10 = vld [vmem:[%s861_s0 + $0x60] sm:$0xff]   ;;  %v597_v13 = vld [vmem:[%s861_s0 + $0x68] sm:$0xff]   ;;  %v598_v14 = vld [vmem:[%s861_s0 + $0x70] sm:$0xff]  }
   0x6   :  { %550 = vmatmul.mubr.msk.bf16.vlgmr.msra.gmra.mxu0 %vm135_vm0, %v585_v2  ;;  %v591_v15 = vld [vmem:[%s861_s0 + $0x38] sm:$0xff]  }
   0x7   :  { %553 = vmatprep.mubr.msk.bf16.mxu0 %vm135_vm0, %v586_v3  ;;  %566 = vmatmul.mubr.msk.bf16.vlgmr.msra.gmra.mxu1 %vm135_vm0, %v593_v7  ;;  %v599_v16 = vld [vmem:[%s861_s0 + $0x78] sm:$0xff]  }
   0x8   :  { %569 = vmatprep.mubr.msk.bf16.mxu1 %vm135_vm0, %v594_v8 }
   0xe   :  { %554 = vmatmul.mubr.msk.bf16.gmra.mxu0 %vm135_vm0, %v587_v4 }
   0xf   :  { %557 = vmatprep.mubr.msk.bf16.mxu0 %vm135_vm0, %v588_v5  ;;  %570 = vmatmul.mubr.msk.bf16.gmra.mxu1 %vm135_vm0, %v595_v9 }
  0x10   :  { %573 = vmatprep.mubr.msk.bf16.mxu1 %vm135_vm0, %v596_v10 }
  0x16   :  { %558 = vmatmul.mubr.msk.bf16.gmra.mxu0 %vm135_vm0, %v589_v11 }
  0x17   :  { %561 = vmatprep.mubr.msk.bf16.mxu0 %vm135_vm0, %v590_v12  ;;  %574 = vmatmul.mubr.msk.bf16.gmra.mxu1 %vm135_vm0, %v597_v13 }
  0x18   :  { %577 = vmatprep.mubr.msk.bf16.mxu1 %vm135_vm0, %v598_v14 }
  0x1e   :  { %562 = vmatmul.mubr.msk.bf16.gmra.mxu0 %vm135_vm0, %v591_v15 }
  0x1f   :  { %578 = vmatmul.mubr.msk.bf16.gmra.mxu1 %vm135_vm0, %v599_v16 }
  0xc6   :  { %v551_v17 = vpop.f32.mrf.mxu0 }
  0xc7   :  { %347 = vst [vmem:[%s862_s2 + $0x10] sm:$0xff] %v551_v17  ;;  %v701_v21 = vpop.f32.mrf.mxu1  ;;  %v416_v27 = vmul.f32 %v551_v17, %v551_v17 }
  0xc8   :  { %v218_v18 = vpop.f32.mrf.mxu0  ;;  %363 = vst [vmem:[%s862_s2 + $0x90] sm:$0xff] %v701_v21 }
  0xc9   :  { %345 = vst [vmem:[%s862_s2] sm:$0xff] %v218_v18  ;;  %v414_v22 = vmul.f32 %v218_v18, %v218_v18  ;;  %v710_v26 = vpop.f32.mrf.mxu1 }
  0xca   :  { %v552_v19 = vpop.f32.mrf.mxu0  ;;  %361 = vst [vmem:[%s862_s2 + $0x80] sm:$0xff] %v710_v26 }
  0xcb   :  { %348 = vst [vmem:[%s862_s2 + $0x18] sm:$0xff] %v552_v19  ;;  %v719_v31 = vpop.f32.mrf.mxu1  ;;  %v417_v32 = vmul.f32 %v552_v19, %v552_v19 }
  0xcc   :  { %v221_v20 = vpop.f32.mrf.mxu0  ;;  %364 = vst [vmem:[%s862_s2 + $0x98] sm:$0xff] %v719_v31 }
  0xcd   :  { %346 = vst [vmem:[%s862_s2 + $0x8] sm:$0xff] %v221_v20  ;;  %v377_v23 = vadd.f32 %v221_v20, %v218_v18  ;;  %v415_v24 = vmul.f32 %v221_v20, %v221_v20  ;;  %v728_v36 = vpop.f32.mrf.mxu1 }
  0xce   :  { %v555_v25 = vpop.f32.mrf.mxu0  ;;  %362 = vst [vmem:[%s862_s2 + $0x88] sm:$0xff] %v728_v36 }
  0xcf   :  { %v378_v28 = vadd.f32 %v551_v17, %v377_v23  ;;  %v446_v29 = vadd.f32 %v415_v24, %v414_v22  ;;  %351 = vst [vmem:[%s862_s2 + $0x30] sm:$0xff] %v555_v25  ;;  %v737_v41 = vpop.f32.mrf.mxu1  ;;  %v420_v47 = vmul.f32 %v555_v25, %v555_v25 }
  0xd0   :  { %v234_v30 = vpop.f32.mrf.mxu0  ;;  %367 = vst [vmem:[%s862_s2 + $0xb0] sm:$0xff] %v737_v41 }
  0xd1   :  { %v447_v33 = vadd.f32 %v446_v29, %v416_v27  ;;  %349 = vst [vmem:[%s862_s2 + $0x20] sm:$0xff] %v234_v30  ;;  %v379_v34 = vadd.f32 %v552_v19, %v378_v28  ;;  %v418_v38 = vmul.f32 %v234_v30, %v234_v30  ;;  %v746_v46 = vpop.f32.mrf.mxu1 }
  0xd2   :  { %v556_v35 = vpop.f32.mrf.mxu0  ;;  %365 = vst [vmem:[%s862_s2 + $0xa0] sm:$0xff] %v746_v46 }
  0xd3   :  { %v380_v37 = vadd.f32 %v379_v34, %v234_v30  ;;  %v448_v39 = vadd.f32 %v447_v33, %v417_v32  ;;  %352 = vst [vmem:[%s862_s2 + $0x38] sm:$0xff] %v556_v35  ;;  %v755_v51 = vpop.f32.mrf.mxu1  ;;  %v421_v52 = vmul.f32 %v556_v35, %v556_v35  ;;  %v430_v33 = vmul.f32 %v710_v26, %v710_v26 }
  0xd4   :  { %v237_v40 = vpop.f32.mrf.mxu0  ;;  %368 = vst [vmem:[%s862_s2 + $0xb8] sm:$0xff] %v755_v51 }
  0xd5   :  { %v449_v42 = vadd.f32 %v448_v39, %v418_v38  ;;  %350 = vst [vmem:[%s862_s2 + $0x28] sm:$0xff] %v237_v40  ;;  %v381_v43 = vadd.f32 %v380_v37, %v237_v40  ;;  %v419_v44 = vmul.f32 %v237_v40, %v237_v40  ;;  %v764_v56 = vpop.f32.mrf.mxu1  ;;  %v431_v38 = vmul.f32 %v728_v36, %v728_v36 }
  0xd6   :  { %v559_v45 = vpop.f32.mrf.mxu0  ;;  %366 = vst [vmem:[%s862_s2 + $0xa8] sm:$0xff] %v764_v56  ;;  %v432_v40 = vmul.f32 %v701_v21, %v701_v21 }
  0xd7   :  { %v382_v48 = vadd.f32 %v555_v25, %v381_v43  ;;  %v450_v49 = vadd.f32 %v449_v42, %v419_v44  ;;  %355 = vst [vmem:[%s862_s2 + $0x50] sm:$0xff] %v559_v45  ;;  %v773_v61 = vpop.f32.mrf.mxu1  ;;  %v424_v3 = vmul.f32 %v559_v45, %v559_v45  ;;  %v433_v44 = vmul.f32 %v719_v31, %v719_v31 }
  0xd8   :  { %v250_v50 = vpop.f32.mrf.mxu0  ;;  %371 = vst [vmem:[%s862_s2 + $0xd0] sm:$0xff] %v773_v61 }
  0xd9   :  { %v451_v53 = vadd.f32 %v450_v49, %v420_v47  ;;  %353 = vst [vmem:[%s862_s2 + $0x40] sm:$0xff] %v250_v50  ;;  %v383_v54 = vadd.f32 %v556_v35, %v382_v48  ;;  %v422_v58 = vmul.f32 %v250_v50, %v250_v50  ;;  %v782_v2 = vpop.f32.mrf.mxu1  ;;  %v434_v48 = vmul.f32 %v746_v46, %v746_v46 }
  0xda   :  { %v560_v55 = vpop.f32.mrf.mxu0  ;;  %369 = vst [vmem:[%s862_s2 + $0xc0] sm:$0xff] %v782_v2 }
  0xdb   :  { %v384_v57 = vadd.f32 %v383_v54, %v250_v50  ;;  %v452_v59 = vadd.f32 %v451_v53, %v421_v52  ;;  %356 = vst [vmem:[%s862_s2 + $0x58] sm:$0xff] %v560_v55  ;;  %v791_v7 = vpop.f32.mrf.mxu1  ;;  %v425_v8 = vmul.f32 %v560_v55, %v560_v55  ;;  %v435_v52 = vmul.f32 %v764_v56, %v764_v56 }
  0xdc   :  { %v253_v60 = vpop.f32.mrf.mxu0  ;;  %372 = vst [vmem:[%s862_s2 + $0xd8] sm:$0xff] %v791_v7 }
  0xdd   :  { %v453_v62 = vadd.f32 %v452_v59, %v422_v58  ;;  %354 = vst [vmem:[%s862_s2 + $0x48] sm:$0xff] %v253_v60  ;;  %v385_v63 = vadd.f32 %v384_v57, %v253_v60  ;;  %v423_v0 = vmul.f32 %v253_v60, %v253_v60  ;;  %v317_v12 = vpop.f32.mrf.mxu1  ;;  %v438_v58 = vmul.f32 %v782_v2, %v782_v2 }
  0xde   :  { %v563_v1 = vpop.f32.mrf.mxu0  ;;  %370 = vst [vmem:[%s862_s2 + $0xc8] sm:$0xff] %v317_v12 }
  0xdf   :  { %v386_v4 = vadd.f32 %v559_v45, %v385_v63  ;;  %v454_v5 = vadd.f32 %v453_v62, %v423_v0  ;;  %359 = vst [vmem:[%s862_s2 + $0x70] sm:$0xff] %v563_v1  ;;  %v579_v17 = vpop.f32.mrf.mxu1  ;;  %v428_v23 = vmul.f32 %v563_v1, %v563_v1  ;;  %v439_v62 = vmul.f32 %v317_v12, %v317_v12 }
  0xe0   :  { %v266_v6 = vpop.f32.mrf.mxu0  ;;  %375 = vst [vmem:[%s862_s2 + $0xf0] sm:$0xff] %v579_v17  ;;  %v440_v63 = vmul.f32 %v773_v61, %v773_v61 }
  0xe1   :  { %v455_v9 = vadd.f32 %v454_v5, %v424_v3  ;;  %357 = vst [vmem:[%s862_s2 + $0x60] sm:$0xff] %v266_v6  ;;  %v387_v10 = vadd.f32 %v560_v55, %v386_v4  ;;  %v426_v14 = vmul.f32 %v266_v6, %v266_v6  ;;  %v330_v22 = vpop.f32.mrf.mxu1 }
  0xe2   :  { %v564_v11 = vpop.f32.mrf.mxu0  ;;  %373 = vst [vmem:[%s862_s2 + $0xe0] sm:$0xff] %v330_v22  ;;  %v442_v5 = vmul.f32 %v330_v22, %v330_v22 }
  0xe3   :  { %v388_v13 = vadd.f32 %v387_v10, %v266_v6  ;;  %v456_v15 = vadd.f32 %v455_v9, %v425_v8  ;;  %360 = vst [vmem:[%s862_s2 + $0x78] sm:$0xff] %v564_v11  ;;  %v580_v27 = vpop.f32.mrf.mxu1  ;;  %v429_v28 = vmul.f32 %v564_v11, %v564_v11  ;;  %v444_v10 = vmul.f32 %v579_v17, %v579_v17 }
  0xe4   :  { %v269_v16 = vpop.f32.mrf.mxu0  ;;  %376 = vst [vmem:[%s862_s2 + $0xf8] sm:$0xff] %v580_v27 }
  0xe5   :  { %v457_v18 = vadd.f32 %v456_v15, %v426_v14  ;;  %358 = vst [vmem:[%s862_s2 + $0x68] sm:$0xff] %v269_v16  ;;  %v389_v19 = vadd.f32 %v388_v13, %v269_v16  ;;  %v427_v20 = vmul.f32 %v269_v16, %v269_v16  ;;  %v333_v32 = vpop.f32.mrf.mxu1  ;;  %v445_v13 = vmul.f32 %v580_v27, %v580_v27 }
  0xe6   :  { %374 = vst [vmem:[%s862_s2 + $0xe8] sm:$0xff] %v333_v32  ;;  %v443_v9 = vmul.f32 %v333_v32, %v333_v32 }
  0xe7   :  { %v390_v24 = vadd.f32 %v563_v1, %v389_v19  ;;  %v458_v25 = vadd.f32 %v457_v18, %v427_v20  ;;  %v441_v1 = vmul.f32 %v791_v7, %v791_v7 }
  0xe9   :  { %v391_v29 = vadd.f32 %v564_v11, %v390_v24  ;;  %v459_v30 = vadd.f32 %v458_v25, %v428_v23 }
  0xeb   :  { %v460_v34 = vadd.f32 %v459_v30, %v429_v28  ;;  %v392_v35 = vadd.f32 %v391_v29, %v710_v26 }
  0xed   :  { %v393_v37 = vadd.f32 %v392_v35, %v728_v36  ;;  %v461_v39 = vadd.f32 %v460_v34, %v430_v33 }
  0xef   :  { %v394_v42 = vadd.f32 %v701_v21, %v393_v37  ;;  %v462_v43 = vadd.f32 %v461_v39, %v431_v38  ;;  %v436_v21 = vmul.f32 %v737_v41, %v737_v41 }
  0xf1   :  { %v463_v26 = vadd.f32 %v462_v43, %v432_v40  ;;  %v395_v45 = vadd.f32 %v719_v31, %v394_v42  ;;  %v437_v31 = vmul.f32 %v755_v51, %v755_v51 }
  0xf3   :  { %v396_v47 = vadd.f32 %v395_v45, %v746_v46  ;;  %v464_v49 = vadd.f32 %v463_v26, %v433_v44 }
  0xf5   :  { %v465_v36 = vadd.f32 %v464_v49, %v434_v48  ;;  %v397_v50 = vadd.f32 %v396_v47, %v764_v56 }
  0xf7   :  { %v398_v53 = vadd.f32 %v737_v41, %v397_v50  ;;  %v466_v54 = vadd.f32 %v465_v36, %v435_v52 }
  0xf9   :  { %v467_v55 = vadd.f32 %v466_v54, %v436_v21  ;;  %v399_v57 = vadd.f32 %v755_v51, %v398_v53 }
  0xfb   :  { %v400_v46 = vadd.f32 %v399_v57, %v782_v2  ;;  %v468_v59 = vadd.f32 %v467_v55, %v437_v31 }
  0xfd   :  { %v469_v60 = vadd.f32 %v468_v59, %v438_v58  ;;  %v401_v56 = vadd.f32 %v400_v46, %v317_v12 }
  0xff   :  { %v402_v41 = vadd.f32 %v773_v61, %v401_v56  ;;  %v470_v0 = vadd.f32 %v469_v60, %v439_v62 }
 0x101   :  { %v471_v3 = vadd.f32 %v470_v0, %v440_v63  ;;  %v403_v51 = vadd.f32 %v791_v7, %v402_v41 }
 0x103   :  { %v404_v4 = vadd.f32 %v403_v51, %v330_v22  ;;  %v472_v6 = vadd.f32 %v471_v3, %v441_v1 }
 0x105   :  { %v473_v2 = vadd.f32 %v472_v6, %v442_v5  ;;  %v405_v8 = vadd.f32 %v404_v4, %v333_v32 }
 0x107   :  { %v406_v11 = vadd.f32 %v579_v17, %v405_v8  ;;  %v474_v12 = vadd.f32 %v473_v2, %v443_v9 }
 0x109   :  { %v407_v14 = vadd.f32 %v580_v27, %v406_v11  ;;  %v475_v15 = vadd.f32 %v474_v12, %v444_v10 }
 0x10b   :  { %v408_v61 = vrot.slane %v407_v14, 4  ;;  %v476_v16 = vadd.f32 %v475_v15, %v445_v13 }
 0x10d   :  { %v409_v18 = vadd.f32 %v408_v61, %v407_v14  ;;  %v477_v19 = vrot.slane %v476_v16, 4 }
 0x10f   :  { %v410_v20 = vrot.slane %v409_v18, 2  ;;  %v478_v23 = vadd.f32 %v477_v19, %v476_v16 }
 0x111   :  { %v411_v24 = vadd.f32 %v410_v20, %v409_v18  ;;  %v479_v7 = vrot.slane %v478_v23, 2 }
 0x113   :  { %v412_v25 = vrot.slane %v411_v24, 1  ;;  %v480_v22 = vadd.f32 %v479_v7, %v478_v23 }
 0x115   :  { %v413_v28 = vadd.f32 %v412_v25, %v411_v24  ;;  %v481_v29 = vrot.slane %v480_v22, 1 }
 0x117   :  { %v482_v30 = vadd.f32 %v481_v29, %v480_v22  ;;  %483 = vst [vmem:[%s863_s3] sm:$0xff] %v413_v28 }
 0x119   :  { %484 = vst [vmem:[%s864_s4] sm:$0xff] %v482_v30 }

// kernel: dwac_forward.26
= control target key start
LH: loop header
LB: loop body
LE: loop exit
PB: predicated region body
PF: predicated region fallthrough
CT: control target
= control target key end

     0   :  { %vm463_vm0 = vcmask 261120   ;;  %s1721_s1 = inlined_call_operand.vmem [shape: bf16[288,128], index: 1, kind: input, shape index: {}]   ;;  %s1722_s0 = inlined_call_operand.vmem [shape: bf16[256,288], index: 0, kind: input, shape index: {}]   ;;  %s1723_s2 = inlined_call_operand.vmem [shape: f32[256,128], index: 2, kind: output, shape index: {0}]   ;;  %s1724_s3 = inlined_call_operand.vmem [shape: f32[8,128], index: 3, kind: output, shape index: {1}]   ;;  %s1725_s4 = inlined_call_operand.vmem [shape: f32[8,128], index: 4, kind: output, shape index: {2}]  }
   0x1   :  { %v1250_v0 = vld [vmem:[%s1721_s1 + $0x78] sm:$0xff]   ;;  %v1252_v2 = vld [vmem:[%s1721_s1 + $0x70] sm:$0xff]   ;;  %v1254_v4 = vld [vmem:[%s1721_s1 + $0x68] sm:$0xff]  }
   0x2   :  { %v1251_v1 = vld [vmem:[%s1721_s1 + $0x38] sm:$0xff]   ;;  %1068 = vmatprep.subr.bf16.mxu0 %v1250_v0  ;;  %1234 = vmatprep.subr.bf16.mxu1 %v1250_v0  ;;  %v1253_v3 = vld [vmem:[%s1721_s1 + $0x30] sm:$0xff]   ;;  %v1255_v5 = vld [vmem:[%s1721_s1 + $0x28] sm:$0xff]  }
   0x3   :  { %1069 = vmatpush3.bf16.msra.mxu0 %v1251_v1  ;;  %1242 = vmatpush3.bf16.msra.mxu1 %v1251_v1  ;;  %v1256_v6 = vld [vmem:[%s1721_s1 + $0x60] sm:$0xff]   ;;  %v1258_v8 = vld [vmem:[%s1721_s1 + $0x58] sm:$0xff]   ;;  %v1260_v10 = vld [vmem:[%s1721_s1 + $0x50] sm:$0xff]  }
   0x4   :  { %1070 = vmatprep.subr.bf16.mxu0 %v1252_v2  ;;  %1235 = vmatprep.subr.bf16.mxu1 %v1252_v2  ;;  %v1257_v7 = vld [vmem:[%s1721_s1 + $0x20] sm:$0xff]   ;;  %v1259_v9 = vld [vmem:[%s1721_s1 + $0x18] sm:$0xff]   ;;  %v1261_v13 = vld [vmem:[%s1721_s1 + $0x10] sm:$0xff]  }
   0x5   :  { %v1268_v11 = vld [vmem:[%s1722_s0 + $0x4] ss:$12 sps:$4 sm:$0xff]   ;;  %v1262_v14 = vld [vmem:[%s1721_s1 + $0x48] sm:$0xff]   ;;  %v1279_v26 = vld [vmem:[%s1722_s0 + $0x34] ss:$12 sps:$4 sm:$0xff]  }
   0x6   :  { %v1271_v12 = vld [vmem:[%s1722_s0 + $0x124] ss:$12 sps:$4 sm:$0xff]   ;;  %544 = vmatprep.mubr.bf16.mxu0 %v1268_v11  ;;  %v1263_v15 = vld [vmem:[%s1721_s1 + $0x8] sm:$0xff]   ;;  %v1281_v27 = vld [vmem:[%s1722_s0 + $0x154] ss:$12 sps:$4 sm:$0xff]  }
   0x7   :  { %1071 = vmatpush3.bf16.msra.mxu0 %v1253_v3  ;;  %1243 = vmatpush3.bf16.msra.mxu1 %v1253_v3  ;;  %v1264_v16 = vld [vmem:[%s1721_s1 + $0x40] sm:$0xff]   ;;  %v1278_v18 = vld [vmem:[%s1721_s1 + $0x88] sm:$0xff]   ;;  %v1283_v28 = vld [vmem:[%s1722_s0 + $0x30] ss:$12 sps:$4 sm:$0xff]  }
   0x8   :  { %1072 = vmatprep.subr.bf16.mxu0 %v1254_v4  ;;  %1236 = vmatprep.subr.bf16.mxu1 %v1254_v4  ;;  %v1265_v17 = vld [vmem:[%s1721_s1] sm:$0xff]   ;;  %v1272_v21 = vld [vmem:[%s1722_s0 + $0x1c] ss:$12 sps:$4 sm:$0xff]   ;;  %v1285_v30 = vld [vmem:[%s1722_s0 + $0x4c] ss:$12 sps:$4 sm:$0xff]  }
   0x9   :  { %640 = vmatprep.mubr.bf16.mxu1 %v1271_v12  ;;  %v1266_v19 = vld [vmem:[%s1722_s0] ss:$12 sps:$4 sm:$0xff]   ;;  %v1274_v22 = vld [vmem:[%s1722_s0 + $0x13c] ss:$12 sps:$4 sm:$0xff]   ;;  %v1276_v24 = vld [vmem:[%s1722_s0 + $0x18] ss:$12 sps:$4 sm:$0xff]  }
   0xa   :  { %v1269_v20 = vld [vmem:[%s1722_s0 + $0x120] ss:$12 sps:$4 sm:$0xff]   ;;  %v1277_v25 = vld [vmem:[%s1722_s0 + $0x138] ss:$12 sps:$4 sm:$0xff]   ;;  %v1284_v29 = vld [vmem:[%s1722_s0 + $0x150] ss:$12 sps:$4 sm:$0xff]  }
   0xb   :  { %1073 = vmatpush3.bf16.msra.mxu0 %v1255_v5  ;;  %1244 = vmatpush3.bf16.msra.mxu1 %v1255_v5  ;;  %v1291_v23 = vld [vmem:[%s1721_s1 + $0x80] sm:$0xff]   ;;  %v1287_v31 = vld [vmem:[%s1722_s0 + $0x16c] ss:$12 sps:$4 sm:$0xff]   ;;  %v1289_v32 = vld [vmem:[%s1722_s0 + $0x48] ss:$12 sps:$4 sm:$0xff]  }
   0xc   :  { %1074 = vmatprep.subr.bf16.mxu0 %v1256_v6  ;;  %1237 = vmatprep.subr.bf16.mxu1 %v1256_v6  ;;  %v1290_v33 = vld [vmem:[%s1722_s0 + $0x168] ss:$12 sps:$4 sm:$0xff]   ;;  %v1292_v34 = vld [vmem:[%s1722_s0 + $0x64] ss:$12 sps:$4 sm:$0xff]   ;;  %v1295_v36 = vld [vmem:[%s1722_s0 + $0x60] ss:$12 sps:$4 sm:$0xff]  }
   0xd   :  { %v1294_v35 = vld [vmem:[%s1722_s0 + $0x8] ss:$12 sps:$4 sm:$0xff]   ;;  %v1296_v37 = vld [vmem:[%s1722_s0 + $0x20] ss:$12 sps:$4 sm:$0xff]   ;;  %v1299_v39 = vld [vmem:[%s1722_s0 + $0x38] ss:$12 sps:$4 sm:$0xff]  }
   0xe   :  { %v1297_v38 = vld [vmem:[%s1722_s0 + $0x7c] ss:$12 sps:$4 sm:$0xff]   ;;  %v1300_v40 = vld [vmem:[%s1722_s0 + $0x78] ss:$12 sps:$4 sm:$0xff]   ;;  %v1302_v42 = vld [vmem:[%s1722_s0 + $0x94] ss:$12 sps:$4 sm:$0xff]  }
   0xf   :  { %1075 = vmatpush3.bf16.msra.mxu0 %v1257_v7  ;;  %1245 = vmatpush3.bf16.msra.mxu1 %v1257_v7  ;;  %v1301_v41 = vld [vmem:[%s1722_s0 + $0x50] ss:$12 sps:$4 sm:$0xff]   ;;  %v1304_v43 = vld [vmem:[%s1722_s0 + $0x68] ss:$12 sps:$4 sm:$0xff]   ;;  %v1306_v45 = vld [vmem:[%s1722_s0 + $0x80] ss:$12 sps:$4 sm:$0xff]  }
  0x10   :  { %1076 = vmatprep.subr.bf16.mxu0 %v1258_v8  ;;  %1238 = vmatprep.subr.bf16.mxu1 %v1258_v8  ;;  %v1305_v44 = vld [vmem:[%s1722_s0 + $0x90] ss:$12 sps:$4 sm:$0xff]   ;;  %v1307_v46 = vld [vmem:[%s1722_s0 + $0xac] ss:$12 sps:$4 sm:$0xff]   ;;  %v1310_v48 = vld [vmem:[%s1722_s0 + $0xa8] ss:$12 sps:$4 sm:$0xff]  }
  0x11   :  { %v1309_v47 = vld [vmem:[%s1722_s0 + $0x98] ss:$12 sps:$4 sm:$0xff]   ;;  %v1311_v49 = vld [vmem:[%s1722_s0 + $0xb0] ss:$12 sps:$4 sm:$0xff]   ;;  %v1314_v51 = vld [vmem:[%s1722_s0 + $0xc8] ss:$12 sps:$4 sm:$0xff]  }
  0x12   :  { %v1312_v50 = vld [vmem:[%s1722_s0 + $0xc4] ss:$12 sps:$4 sm:$0xff]   ;;  %v1315_v52 = vld [vmem:[%s1722_s0 + $0xc0] ss:$12 sps:$4 sm:$0xff]   ;;  %v1317_v54 = vld [vmem:[%s1722_s0 + $0xdc] ss:$12 sps:$4 sm:$0xff]  }
  0x13   :  { %1077 = vmatpush3.bf16.msra.mxu0 %v1259_v9  ;;  %1246 = vmatpush3.bf16.msra.mxu1 %v1259_v9  ;;  %v1316_v53 = vld [vmem:[%s1722_s0 + $0xe0] ss:$12 sps:$4 sm:$0xff]   ;;  %v1319_v55 = vld [vmem:[%s1722_s0 + $0xf8] ss:$12 sps:$4 sm:$0xff]   ;;  %v1321_v57 = vld [vmem:[%s1722_s0 + $0x110] ss:$12 sps:$4 sm:$0xff]  }
  0x14   :  { %1078 = vmatprep.subr.bf16.mxu0 %v1260_v10  ;;  %1239 = vmatprep.subr.bf16.mxu1 %v1260_v10  ;;  %v1320_v56 = vld [vmem:[%s1722_s0 + $0xd8] ss:$12 sps:$4 sm:$0xff]   ;;  %v1322_v58 = vld [vmem:[%s1722_s0 + $0xf4] ss:$12 sps:$4 sm:$0xff]   ;;  %v1325_v60 = vld [vmem:[%s1722_s0 + $0xf0] ss:$12 sps:$4 sm:$0xff]  }
  0x15   :  { %v1324_v59 = vld [vmem:[%s1722_s0 + $0x128] ss:$12 sps:$4 sm:$0xff]   ;;  %v1326_v61 = vld [vmem:[%s1722_s0 + $0x140] ss:$12 sps:$4 sm:$0xff]   ;;  %v1329_v63 = vld [vmem:[%s1722_s0 + $0x158] ss:$12 sps:$4 sm:$0xff]  }
  0x16   :  { %v1327_v62 = vld [vmem:[%s1722_s0 + $0x10c] ss:$12 sps:$4 sm:$0xff]   ;;  %v1330_v0 = vld [vmem:[%s1722_s0 + $0x108] ss:$12 sps:$4 sm:$0xff]   ;;  %v1331_v1 = vld [vmem:[%s1722_s0 + $0x170] ss:$12 sps:$4 sm:$0xff]  }
  0x17   :  { %1079 = vmatpush3.bf16.msra.mxu0 %v1261_v13  ;;  %1247 = vmatpush3.bf16.msra.mxu1 %v1261_v13 }
  0x18   :  { %1080 = vmatprep.subr.bf16.mxu0 %v1262_v14  ;;  %1240 = vmatprep.subr.bf16.mxu1 %v1262_v14 }
  0x1b   :  { %1081 = vmatpush3.bf16.msra.mxu0 %v1263_v15  ;;  %1248 = vmatpush3.bf16.msra.mxu1 %v1263_v15 }
  0x1c   :  { %1082 = vmatprep.subr.bf16.mxu0 %v1264_v16  ;;  %1241 = vmatprep.subr.bf16.mxu1 %v1264_v16 }
  0x1f   :  { %1083 = vmatpush3.bf16.msra.mxu0 %v1265_v17  ;;  %1249 = vmatpush3.bf16.msra.mxu1 %v1265_v17 }
  0x20   :  { %1198 = vmatprep.subr.bf16.mxu1 %v1278_v18 }
  0x22   :  { %545 = vmatmul.mubr.bf16.vlgmr.msra.gmra.mxu0 %v1266_v19  ;;  %641 = vmatmul.mubr.bf16.vlgmr.msra.gmra.mxu1 %v1269_v20 }
  0x23   :  { %552 = vmatprep.mubr.bf16.mxu0 %v1272_v21  ;;  %648 = vmatprep.mubr.bf16.mxu1 %v1274_v22 }
  0x24   :  { %1199 = vmatpush3.bf16.msra.mxu1 %v1278_v18 }
  0x25   :  { %1200 = vmatprep.subr.bf16.mxu1 %v1291_v23 }
  0x28   :  { %1201 = vmatpush3.bf16.msra.mxu1 %v1291_v23 }
  0x2a   :  { %553 = vmatmul.mubr.bf16.gmra.mxu0 %v1276_v24  ;;  %649 = vmatmul.mubr.bf16.gmra.mxu1 %v1277_v25 }
  0x2b   :  { %560 = vmatprep.mubr.bf16.mxu0 %v1279_v26  ;;  %656 = vmatprep.mubr.bf16.mxu1 %v1281_v27 }
  0x32   :  { %561 = vmatmul.mubr.bf16.gmra.mxu0 %v1283_v28  ;;  %657 = vmatmul.mubr.bf16.gmra.mxu1 %v1284_v29 }
  0x33   :  { %568 = vmatprep.mubr.bf16.mxu0 %v1285_v30  ;;  %664 = vmatprep.mubr.bf16.mxu1 %v1287_v31 }
  0x3a   :  { %569 = vmatmul.mubr.bf16.gmra.mxu0 %v1289_v32  ;;  %665 = vmatmul.mubr.bf16.gmra.mxu1 %v1290_v33 }
  0x3b   :  { %576 = vmatprep.mubr.bf16.mxu0 %v1292_v34  ;;  %1202 = vmatprep.mubr.msk.bf16.mxu1 %vm463_vm0, %v1294_v35 }
  0x42   :  { %577 = vmatmul.mubr.bf16.gmra.mxu0 %v1295_v36  ;;  %1203 = vmatmul.mubr.msk.bf16.vlgmr.msra.gmra.mxu1 %vm463_vm0, %v1296_v37 }
  0x43   :  { %584 = vmatprep.mubr.bf16.mxu0 %v1297_v38  ;;  %1206 = vmatprep.mubr.msk.bf16.mxu1 %vm463_vm0, %v1299_v39 }
  0x4a   :  { %585 = vmatmul.mubr.bf16.gmra.mxu0 %v1300_v40  ;;  %1207 = vmatmul.mubr.msk.bf16.gmra.mxu1 %vm463_vm0, %v1301_v41 }
  0x4b   :  { %592 = vmatprep.mubr.bf16.mxu0 %v1302_v42  ;;  %1210 = vmatprep.mubr.msk.bf16.mxu1 %vm463_vm0, %v1304_v43 }
  0x52   :  { %593 = vmatmul.mubr.bf16.gmra.mxu0 %v1305_v44  ;;  %1211 = vmatmul.mubr.msk.bf16.gmra.mxu1 %vm463_vm0, %v1306_v45 }
  0x53   :  { %600 = vmatprep.mubr.bf16.mxu0 %v1307_v46  ;;  %1214 = vmatprep.mubr.msk.bf16.mxu1 %vm463_vm0, %v1309_v47 }
  0x5a   :  { %601 = vmatmul.mubr.bf16.gmra.mxu0 %v1310_v48  ;;  %1215 = vmatmul.mubr.msk.bf16.gmra.mxu1 %vm463_vm0, %v1311_v49 }
  0x5b   :  { %608 = vmatprep.mubr.bf16.mxu0 %v1312_v50  ;;  %1218 = vmatprep.mubr.msk.bf16.mxu1 %vm463_vm0, %v1314_v51 }
  0x62   :  { %609 = vmatmul.mubr.bf16.gmra.mxu0 %v1315_v52  ;;  %1219 = vmatmul.mubr.msk.bf16.gmra.mxu1 %vm463_vm0, %v1316_v53 }
  0x63   :  { %616 = vmatprep.mubr.bf16.mxu0 %v1317_v54  ;;  %1222 = vmatprep.mubr.msk.bf16.mxu1 %vm463_vm0, %v1319_v55 }
  0x6a   :  { %617 = vmatmul.mubr.bf16.gmra.mxu0 %v1320_v56  ;;  %1223 = vmatmul.mubr.msk.bf16.gmra.mxu1 %vm463_vm0, %v1321_v57 }
  0x6b   :  { %624 = vmatprep.mubr.bf16.mxu0 %v1322_v58  ;;  %1226 = vmatprep.mubr.msk.bf16.mxu1 %vm463_vm0, %v1324_v59 }
  0x72   :  { %625 = vmatmul.mubr.bf16.gmra.mxu0 %v1325_v60  ;;  %1227 = vmatmul.mubr.msk.bf16.gmra.mxu1 %vm463_vm0, %v1326_v61 }
  0x73   :  { %632 = vmatprep.mubr.bf16.mxu0 %v1327_v62  ;;  %1230 = vmatprep.mubr.msk.bf16.mxu1 %vm463_vm0, %v1329_v63 }
  0x7a   :  { %633 = vmatmul.mubr.bf16.gmra.mxu0 %v1330_v0  ;;  %1231 = vmatmul.mubr.msk.bf16.gmra.mxu1 %vm463_vm0, %v1331_v1 }
  0xe2   :  { %v1084_v2 = vpop.f32.mrf.mxu0  ;;  %v1156_v3 = vpop.f32.mrf.mxu1 }
  0xe4   :  { %v1085_v4 = vpop.f32.mrf.mxu0  ;;  %v1157_v5 = vpop.f32.mrf.mxu1 }
  0xe5   :  { %v1571_v6 = vadd.f32 %v1157_v5, %v1156_v3  ;;  %v1086_v43 = vadd.f32 %v1085_v4, %v1084_v2 }
  0xe6   :  { %v1087_v7 = vpop.f32.mrf.mxu0  ;;  %v1159_v8 = vpop.f32.mrf.mxu1 }
  0xe8   :  { %v1088_v9 = vpop.f32.mrf.mxu0  ;;  %v1160_v10 = vpop.f32.mrf.mxu1 }
  0xe9   :  { %v1573_v11 = vadd.f32 %v1160_v10, %v1159_v8  ;;  %v1089_v51 = vadd.f32 %v1088_v9, %v1087_v7 }
  0xea   :  { %v1090_v12 = vpop.f32.mrf.mxu0  ;;  %v1162_v13 = vpop.f32.mrf.mxu1 }
  0xec   :  { %v1091_v14 = vpop.f32.mrf.mxu0  ;;  %v1163_v15 = vpop.f32.mrf.mxu1 }
  0xed   :  { %v1575_v16 = vadd.f32 %v1163_v15, %v1162_v13  ;;  %v1092_v40 = vadd.f32 %v1091_v14, %v1090_v12 }
  0xee   :  { %v1093_v17 = vpop.f32.mrf.mxu0  ;;  %v1165_v18 = vpop.f32.mrf.mxu1 }
  0xf0   :  { %v1094_v19 = vpop.f32.mrf.mxu0  ;;  %v1166_v20 = vpop.f32.mrf.mxu1 }
  0xf1   :  { %v1577_v21 = vadd.f32 %v1166_v20, %v1165_v18  ;;  %v1095_v47 = vadd.f32 %v1094_v19, %v1093_v17 }
  0xf2   :  { %v1096_v22 = vpop.f32.mrf.mxu0  ;;  %v1168_v23 = vpop.f32.mrf.mxu1 }
  0xf4   :  { %v1097_v24 = vpop.f32.mrf.mxu0  ;;  %v1169_v25 = vpop.f32.mrf.mxu1 }
  0xf5   :  { %v1579_v26 = vadd.f32 %v1169_v25, %v1168_v23  ;;  %v1098_v63 = vadd.f32 %v1097_v24, %v1096_v22 }
  0xf6   :  { %v1099_v27 = vpop.f32.mrf.mxu0  ;;  %v1171_v28 = vpop.f32.mrf.mxu1 }
  0xf8   :  { %v1100_v29 = vpop.f32.mrf.mxu0  ;;  %v1172_v30 = vpop.f32.mrf.mxu1 }
  0xf9   :  { %v1581_v31 = vadd.f32 %v1172_v30, %v1171_v28  ;;  %v1101_v15 = vadd.f32 %v1100_v29, %v1099_v27 }
  0xfa   :  { %v1102_v32 = vpop.f32.mrf.mxu0  ;;  %v1583_v33 = vpop.f32.mrf.mxu1 }
  0xfc   :  { %v1103_v34 = vpop.f32.mrf.mxu0  ;;  %v1585_v35 = vpop.f32.mrf.mxu1 }
  0xfd   :  { %v1104_v55 = vadd.f32 %v1103_v34, %v1102_v32 }
  0xfe   :  { %v1105_v36 = vpop.f32.mrf.mxu0  ;;  %v1587_v37 = vpop.f32.mrf.mxu1 }
 0x100   :  { %v1106_v38 = vpop.f32.mrf.mxu0  ;;  %v1589_v39 = vpop.f32.mrf.mxu1 }
 0x101   :  { %v1107_v2 = vadd.f32 %v1106_v38, %v1105_v36 }
 0x102   :  { %v1108_v41 = vpop.f32.mrf.mxu0  ;;  %v1204_v42 = vpop.f32.mrf.mxu1 }
 0x103   :  { %v716_v44 = vadd.f32 %v1204_v42, %v1092_v40 }
 0x104   :  { %v1109_v45 = vpop.f32.mrf.mxu0  ;;  %v707_v46 = vpop.f32.mrf.mxu1 }
 0x105   :  { %836 = vst [vmem:[%s1723_s2 + $0x10] sm:$0xff] %v716_v44  ;;  %v708_v48 = vadd.f32 %v1086_v43, %v707_v46  ;;  %v905_v3 = vmul.f32 %v716_v44, %v716_v44  ;;  %v1110_v30 = vadd.f32 %v1109_v45, %v1108_v41 }
 0x106   :  { %v1111_v49 = vpop.f32.mrf.mxu0  ;;  %v1205_v50 = vpop.f32.mrf.mxu1 }
 0x107   :  { %834 = vst [vmem:[%s1723_s2] sm:$0xff] %v708_v48  ;;  %v719_v52 = vadd.f32 %v1205_v50, %v1095_v47  ;;  %v903_v59 = vmul.f32 %v708_v48, %v708_v48 }
 0x108   :  { %v1112_v53 = vpop.f32.mrf.mxu0  ;;  %v710_v54 = vpop.f32.mrf.mxu1 }
 0x109   :  { %837 = vst [vmem:[%s1723_s2 + $0x18] sm:$0xff] %v719_v52  ;;  %v711_v56 = vadd.f32 %v1089_v51, %v710_v54  ;;  %v906_v10 = vmul.f32 %v719_v52, %v719_v52  ;;  %v1113_v47 = vadd.f32 %v1112_v53, %v1111_v49 }
 0x10a   :  { %v1114_v57 = vpop.f32.mrf.mxu0  ;;  %v1208_v58 = vpop.f32.mrf.mxu1 }
 0x10b   :  { %835 = vst [vmem:[%s1723_s2 + $0x8] sm:$0xff] %v711_v56  ;;  %v866_v60 = vadd.f32 %v711_v56, %v708_v48  ;;  %v904_v61 = vmul.f32 %v711_v56, %v711_v56  ;;  %v732_v62 = vadd.f32 %v1208_v58, %v1104_v55 }
 0x10c   :  { %v1115_v0 = vpop.f32.mrf.mxu0  ;;  %v723_v1 = vpop.f32.mrf.mxu1 }
 0x10d   :  { %v867_v4 = vadd.f32 %v866_v60, %v716_v44  ;;  %v935_v5 = vadd.f32 %v904_v61, %v903_v59  ;;  %840 = vst [vmem:[%s1723_s2 + $0x30] sm:$0xff] %v732_v62  ;;  %v724_v7 = vadd.f32 %v1098_v63, %v723_v1  ;;  %v1116_v19 = vadd.f32 %v1115_v0, %v1114_v57 }
 0x10e   :  { %v1117_v8 = vpop.f32.mrf.mxu0  ;;  %v1209_v9 = vpop.f32.mrf.mxu1  ;;  %v909_v43 = vmul.f32 %v732_v62, %v732_v62 }
 0x10f   :  { %v936_v12 = vadd.f32 %v935_v5, %v905_v3  ;;  %v868_v13 = vadd.f32 %v867_v4, %v719_v52  ;;  %v735_v14 = vadd.f32 %v1209_v9, %v1107_v2  ;;  %838 = vst [vmem:[%s1723_s2 + $0x20] sm:$0xff] %v724_v7  ;;  %v907_v22 = vmul.f32 %v724_v7, %v724_v7 }
 0x110   :  { %v1118_v17 = vpop.f32.mrf.mxu0  ;;  %v726_v18 = vpop.f32.mrf.mxu1 }
 0x111   :  { %v869_v20 = vadd.f32 %v868_v13, %v724_v7  ;;  %v937_v23 = vadd.f32 %v936_v12, %v906_v10  ;;  %841 = vst [vmem:[%s1723_s2 + $0x38] sm:$0xff] %v735_v14  ;;  %v727_v24 = vadd.f32 %v1101_v15, %v726_v18  ;;  %v1119_v40 = vadd.f32 %v1118_v17, %v1117_v8 }
 0x112   :  { %v1120_v25 = vpop.f32.mrf.mxu0  ;;  %v1212_v28 = vpop.f32.mrf.mxu1  ;;  %v910_v50 = vmul.f32 %v735_v14, %v735_v14 }
 0x113   :  { %v938_v32 = vadd.f32 %v937_v23, %v907_v22  ;;  %v748_v27 = vadd.f32 %v1212_v28, %v1116_v19  ;;  %839 = vst [vmem:[%s1723_s2 + $0x28] sm:$0xff] %v727_v24  ;;  %v870_v29 = vadd.f32 %v869_v20, %v727_v24  ;;  %v908_v34 = vmul.f32 %v727_v24, %v727_v24 }
 0x114   :  { %v1121_v36 = vpop.f32.mrf.mxu0  ;;  %v739_v38 = vpop.f32.mrf.mxu1 }
 0x115   :  { %844 = vst [vmem:[%s1723_s2 + $0x50] sm:$0xff] %v748_v27  ;;  %v740_v42 = vadd.f32 %v1110_v30, %v739_v38  ;;  %v871_v44 = vadd.f32 %v870_v29, %v732_v62  ;;  %v939_v46 = vadd.f32 %v938_v32, %v908_v34  ;;  %v1122_v53 = vadd.f32 %v1121_v36, %v1120_v25 }
 0x116   :  { %v1123_v41 = vpop.f32.mrf.mxu0  ;;  %v1213_v45 = vpop.f32.mrf.mxu1  ;;  %v913_v4 = vmul.f32 %v748_v27, %v748_v27 }
 0x117   :  { %842 = vst [vmem:[%s1723_s2 + $0x40] sm:$0xff] %v740_v42  ;;  %v751_v48 = vadd.f32 %v1213_v45, %v1119_v40  ;;  %v940_v51 = vadd.f32 %v939_v46, %v909_v43  ;;  %v872_v52 = vadd.f32 %v871_v44, %v735_v14  ;;  %v911_v58 = vmul.f32 %v740_v42, %v740_v42 }
 0x118   :  { %v1124_v54 = vpop.f32.mrf.mxu0  ;;  %v742_v55 = vpop.f32.mrf.mxu1 }
 0x119   :  { %845 = vst [vmem:[%s1723_s2 + $0x58] sm:$0xff] %v751_v48  ;;  %v743_v56 = vadd.f32 %v1113_v47, %v742_v55  ;;  %v873_v57 = vadd.f32 %v872_v52, %v740_v42  ;;  %v941_v59 = vadd.f32 %v940_v51, %v910_v50  ;;  %v1125_v9 = vadd.f32 %v1124_v54, %v1123_v41 }
 0x11a   :  { %v1126_v60 = vpop.f32.mrf.mxu0  ;;  %v1216_v49 = vpop.f32.mrf.mxu1  ;;  %v914_v19 = vmul.f32 %v751_v48, %v751_v48 }
 0x11b   :  { %843 = vst [vmem:[%s1723_s2 + $0x48] sm:$0xff] %v743_v56  ;;  %v912_v61 = vmul.f32 %v743_v56, %v743_v56  ;;  %v942_v62 = vadd.f32 %v941_v59, %v911_v58  ;;  %v874_v63 = vadd.f32 %v873_v57, %v743_v56 }
 0x11c   :  { %v1127_v0 = vpop.f32.mrf.mxu0  ;;  %v755_v1 = vpop.f32.mrf.mxu1 }
 0x11d   :  { %v1128_v2 = vadd.f32 %v1127_v0, %v1126_v60  ;;  %v756_v3 = vadd.f32 %v1122_v53, %v755_v1  ;;  %v943_v5 = vadd.f32 %v942_v62, %v912_v61  ;;  %v875_v10 = vadd.f32 %v874_v63, %v748_v27 }
 0x11e   :  { %v1129_v7 = vpop.f32.mrf.mxu0  ;;  %v1217_v8 = vpop.f32.mrf.mxu1 }
 0x11f   :  { %v764_v12 = vadd.f32 %v1216_v49, %v1128_v2  ;;  %846 = vst [vmem:[%s1723_s2 + $0x60] sm:$0xff] %v756_v3  ;;  %v944_v13 = vadd.f32 %v943_v5, %v913_v4  ;;  %v876_v23 = vadd.f32 %v875_v10, %v751_v48  ;;  %v915_v27 = vmul.f32 %v756_v3, %v756_v3 }
 0x120   :  { %v1130_v14 = vpop.f32.mrf.mxu0  ;;  %v758_v15 = vpop.f32.mrf.mxu1 }
 0x121   :  { %848 = vst [vmem:[%s1723_s2 + $0x70] sm:$0xff] %v764_v12  ;;  %v1131_v17 = vadd.f32 %v1130_v14, %v1129_v7  ;;  %v759_v18 = vadd.f32 %v1125_v9, %v758_v15  ;;  %v945_v25 = vadd.f32 %v944_v13, %v914_v19  ;;  %v877_v36 = vadd.f32 %v876_v23, %v756_v3 }
 0x122   :  { %v1132_v20 = vpop.f32.mrf.mxu0  ;;  %v1220_v22 = vpop.f32.mrf.mxu1  ;;  %v917_v55 = vmul.f32 %v764_v12, %v764_v12  ;;  %v1176_v23 = vadd.f32 %v1585_v35, %v1583_v33 }
 0x123   :  { %v767_v24 = vadd.f32 %v1217_v8, %v1131_v17  ;;  %847 = vst [vmem:[%s1723_s2 + $0x68] sm:$0xff] %v759_v18  ;;  %v946_v40 = vadd.f32 %v945_v25, %v915_v27  ;;  %v916_v42 = vmul.f32 %v759_v18, %v759_v18  ;;  %v878_v47 = vadd.f32 %v877_v36, %v759_v18 }
 0x124   :  { %v1133_v28 = vpop.f32.mrf.mxu0  ;;  %v771_v30 = vpop.f32.mrf.mxu1 }
 0x125   :  { %849 = vst [vmem:[%s1723_s2 + $0x78] sm:$0xff] %v767_v24  ;;  %v1134_v32 = vadd.f32 %v1133_v28, %v1132_v20  ;;  %v947_v50 = vadd.f32 %v946_v40, %v916_v42  ;;  %v879_v58 = vadd.f32 %v878_v47, %v764_v12  ;;  %v918_v62 = vmul.f32 %v767_v24, %v767_v24 }
 0x126   :  { %v1135_v29 = vpop.f32.mrf.mxu0  ;;  %v1221_v34 = vpop.f32.mrf.mxu1 }
 0x127   :  { %v772_v38 = vadd.f32 %v1134_v32, %v771_v30  ;;  %v948_v60 = vadd.f32 %v947_v50, %v917_v55  ;;  %v880_v1 = vadd.f32 %v879_v58, %v767_v24 }
 0x128   :  { %v1136_v43 = vpop.f32.mrf.mxu0  ;;  %v774_v44 = vpop.f32.mrf.mxu1 }
 0x129   :  { %850 = vst [vmem:[%s1723_s2 + $0x80] sm:$0xff] %v772_v38  ;;  %v1137_v46 = vadd.f32 %v1136_v43, %v1135_v29  ;;  %v919_v4 = vmul.f32 %v772_v38, %v772_v38  ;;  %v949_v5 = vadd.f32 %v948_v60, %v918_v62  ;;  %v881_v14 = vadd.f32 %v880_v1, %v772_v38 }
 0x12a   :  { %v1138_v41 = vpop.f32.mrf.mxu0  ;;  %v1642_v45 = vpop.f32.mrf.mxu1  ;;  %v1179_v38 = vadd.f32 %v1589_v39, %v1587_v37 }
 0x12b   :  { %v775_v48 = vadd.f32 %v1137_v46, %v774_v44  ;;  %v950_v18 = vadd.f32 %v949_v5, %v919_v4 }
 0x12c   :  { %v1139_v51 = vpop.f32.mrf.mxu0  ;;  %v787_v52 = vpop.f32.mrf.mxu1 }
 0x12d   :  { %851 = vst [vmem:[%s1723_s2 + $0x88] sm:$0xff] %v775_v48  ;;  %v1140_v54 = vadd.f32 %v1139_v51, %v1138_v41  ;;  %v920_v10 = vmul.f32 %v775_v48, %v775_v48  ;;  %v882_v24 = vadd.f32 %v881_v14, %v775_v48 }
 0x12e   :  { %v1141_v56 = vpop.f32.mrf.mxu0  ;;  %v1647_v57 = vpop.f32.mrf.mxu1 }
 0x12f   :  { %v780_v59 = vadd.f32 %v1220_v22, %v1140_v54 }
 0x130   :  { %v1142_v49 = vpop.f32.mrf.mxu0  ;;  %v790_v53 = vpop.f32.mrf.mxu1 }
 0x131   :  { %852 = vst [vmem:[%s1723_s2 + $0x90] sm:$0xff] %v780_v59  ;;  %v1143_v61 = vadd.f32 %v1142_v49, %v1141_v56  ;;  %v921_v19 = vmul.f32 %v780_v59, %v780_v59  ;;  %v883_v27 = vadd.f32 %v882_v24, %v780_v59 }
 0x132   :  { %v1144_v63 = vpop.f32.mrf.mxu0  ;;  %v1228_v0 = vpop.f32.mrf.mxu1 }
 0x133   :  { %v783_v2 = vadd.f32 %v1221_v34, %v1143_v61  ;;  %v1653_v3 = vadd.f32 %v1228_v0, %v1575_v16 }
 0x134   :  { %v1145_v7 = vpop.f32.mrf.mxu0  ;;  %v803_v8 = vpop.f32.mrf.mxu1 }
 0x135   :  { %853 = vst [vmem:[%s1723_s2 + $0x98] sm:$0xff] %v783_v2  ;;  %860 = vst [vmem:[%s1723_s2 + $0xd0] sm:$0xff] %v1653_v3  ;;  %v1146_v9 = vadd.f32 %v1145_v7, %v1144_v63  ;;  %v804_v12 = vadd.f32 %v1571_v6, %v803_v8  ;;  %v922_v25 = vmul.f32 %v783_v2, %v783_v2 }
 0x136   :  { %v1147_v13 = vpop.f32.mrf.mxu0  ;;  %v1229_v16 = vpop.f32.mrf.mxu1  ;;  %v884_v40 = vadd.f32 %v883_v27, %v783_v2 }
 0x137   :  { %v788_v15 = vadd.f32 %v1146_v9, %v787_v52  ;;  %v1664_v17 = vadd.f32 %v1229_v16, %v1577_v21  ;;  %858 = vst [vmem:[%s1723_s2 + $0xc0] sm:$0xff] %v804_v12  ;;  %v951_v21 = vadd.f32 %v950_v18, %v920_v10  ;;  %v927_v61 = vmul.f32 %v804_v12, %v804_v12 }
 0x138   :  { %v1148_v20 = vpop.f32.mrf.mxu0  ;;  %v806_v22 = vpop.f32.mrf.mxu1 }
 0x139   :  { %854 = vst [vmem:[%s1723_s2 + $0xa0] sm:$0xff] %v788_v15  ;;  %861 = vst [vmem:[%s1723_s2 + $0xd8] sm:$0xff] %v1664_v17  ;;  %v1149_v6 = vadd.f32 %v1148_v20, %v1147_v13  ;;  %v807_v28 = vadd.f32 %v1573_v11, %v806_v22  ;;  %v952_v35 = vadd.f32 %v951_v21, %v921_v19 }
 0x13a   :  { %v1150_v30 = vpop.f32.mrf.mxu0  ;;  %v1232_v32 = vpop.f32.mrf.mxu1  ;;  %v923_v42 = vmul.f32 %v788_v15, %v788_v15  ;;  %v885_v47 = vadd.f32 %v884_v40, %v788_v15  ;;  %v930_v5 = vmul.f32 %v1664_v17, %v1664_v17 }
 0x13b   :  { %v791_v29 = vadd.f32 %v1149_v6, %v790_v53  ;;  %v828_v33 = vadd.f32 %v1232_v32, %v1176_v23  ;;  %859 = vst [vmem:[%s1723_s2 + $0xc8] sm:$0xff] %v807_v28  ;;  %v953_v43 = vadd.f32 %v952_v35, %v922_v25  ;;  %v928_v0 = vmul.f32 %v807_v28, %v807_v28 }
 0x13c   :  { %v1151_v34 = vpop.f32.mrf.mxu0  ;;  %v819_v36 = vpop.f32.mrf.mxu1 }
 0x13d   :  { %855 = vst [vmem:[%s1723_s2 + $0xa8] sm:$0xff] %v791_v29  ;;  %864 = vst [vmem:[%s1723_s2 + $0xf0] sm:$0xff] %v828_v33  ;;  %v1152_v11 = vadd.f32 %v1151_v34, %v1150_v30  ;;  %v820_v44 = vadd.f32 %v1579_v26, %v819_v36  ;;  %v924_v48 = vmul.f32 %v791_v29, %v791_v29 }
 0x13e   :  { %v1153_v46 = vpop.f32.mrf.mxu0  ;;  %v1233_v41 = vpop.f32.mrf.mxu1  ;;  %v954_v52 = vadd.f32 %v953_v43, %v923_v42  ;;  %v886_v54 = vadd.f32 %v885_v47, %v791_v29  ;;  %v933_v15 = vmul.f32 %v828_v33, %v828_v33 }
 0x13f   :  { %v796_v37 = vadd.f32 %v1642_v45, %v1152_v11  ;;  %v831_v39 = vadd.f32 %v1233_v41, %v1179_v38  ;;  %862 = vst [vmem:[%s1723_s2 + $0xe0] sm:$0xff] %v820_v44  ;;  %v931_v9 = vmul.f32 %v820_v44, %v820_v44 }
 0x140   :  { %v1154_v50 = vpop.f32.mrf.mxu0  ;;  %v822_v51 = vpop.f32.mrf.mxu1  ;;  %v955_v56 = vadd.f32 %v954_v52, %v924_v48 }
 0x141   :  { %856 = vst [vmem:[%s1723_s2 + $0xb0] sm:$0xff] %v796_v37  ;;  %v925_v26 = vmul.f32 %v796_v37, %v796_v37  ;;  %865 = vst [vmem:[%s1723_s2 + $0xf8] sm:$0xff] %v831_v39  ;;  %v1155_v55 = vadd.f32 %v1154_v50, %v1153_v46  ;;  %v823_v45 = vadd.f32 %v1581_v31, %v822_v51 }
 0x142   :  { %v887_v58 = vadd.f32 %v886_v54, %v796_v37  ;;  %v934_v20 = vmul.f32 %v831_v39, %v831_v39 }
 0x143   :  { %v799_v59 = vadd.f32 %v1647_v57, %v1155_v55  ;;  %863 = vst [vmem:[%s1723_s2 + $0xe8] sm:$0xff] %v823_v45  ;;  %v956_v60 = vadd.f32 %v955_v56, %v925_v26  ;;  %v929_v57 = vmul.f32 %v1653_v3, %v1653_v3  ;;  %v932_v16 = vmul.f32 %v823_v45, %v823_v45 }
 0x145   :  { %857 = vst [vmem:[%s1723_s2 + $0xb8] sm:$0xff] %v799_v59  ;;  %v888_v49 = vadd.f32 %v887_v58, %v799_v59  ;;  %v926_v53 = vmul.f32 %v799_v59, %v799_v59 }
 0x147   :  { %v889_v62 = vadd.f32 %v888_v49, %v804_v12  ;;  %v957_v63 = vadd.f32 %v956_v60, %v926_v53 }
 0x149   :  { %v890_v31 = vadd.f32 %v889_v62, %v807_v28  ;;  %v958_v1 = vadd.f32 %v957_v63, %v927_v61 }
 0x14b   :  { %v959_v2 = vadd.f32 %v958_v1, %v928_v0  ;;  %v891_v4 = vadd.f32 %v890_v31, %v1653_v3 }
 0x14d   :  { %v892_v7 = vadd.f32 %v891_v4, %v1664_v17  ;;  %v960_v8 = vadd.f32 %v959_v2, %v929_v57 }
 0x14f   :  { %v893_v10 = vadd.f32 %v892_v7, %v820_v44  ;;  %v961_v13 = vadd.f32 %v960_v8, %v930_v5 }
 0x151   :  { %v894_v12 = vadd.f32 %v893_v10, %v823_v45  ;;  %v962_v14 = vadd.f32 %v961_v13, %v931_v9 }
 0x153   :  { %v895_v18 = vadd.f32 %v894_v12, %v828_v33  ;;  %v963_v19 = vadd.f32 %v962_v14, %v932_v16 }
 0x155   :  { %v896_v22 = vadd.f32 %v895_v18, %v831_v39  ;;  %v964_v23 = vadd.f32 %v963_v19, %v933_v15 }
 0x157   :  { %v897_v24 = vrot.slane %v896_v22, 4  ;;  %v965_v3 = vadd.f32 %v964_v23, %v934_v20 }
 0x159   :  { %v898_v6 = vadd.f32 %v897_v24, %v896_v22  ;;  %v966_v21 = vrot.slane %v965_v3, 4 }
 0x15b   :  { %v899_v25 = vrot.slane %v898_v6, 2  ;;  %v967_v28 = vadd.f32 %v966_v21, %v965_v3 }
 0x15d   :  { %v900_v17 = vadd.f32 %v899_v25, %v898_v6  ;;  %v968_v30 = vrot.slane %v967_v28, 2 }
 0x15f   :  { %v901_v32 = vrot.slane %v900_v17, 1  ;;  %v969_v27 = vadd.f32 %v968_v30, %v967_v28 }
 0x161   :  { %v902_v29 = vadd.f32 %v901_v32, %v900_v17  ;;  %v970_v35 = vrot.slane %v969_v27, 1 }
 0x163   :  { %v971_v34 = vadd.f32 %v970_v35, %v969_v27  ;;  %972 = vst [vmem:[%s1724_s3] sm:$0xff] %v902_v29 }
 0x165   :  { %973 = vst [vmem:[%s1725_s4] sm:$0xff] %v971_v34 }

// kernel: dwac_forward.30
= control target key start
LH: loop header
LB: loop body
LE: loop exit
PB: predicated region body
PF: predicated region fallthrough
CT: control target
= control target key end

     0   :  { %vm235_vm0 = vcmask 261120   ;;  %s725_s1 = inlined_call_operand.vmem [shape: bf16[288,128], index: 1, kind: input, shape index: {}]   ;;  %s726_s0 = inlined_call_operand.vmem [shape: bf16[64,288], index: 0, kind: input, shape index: {}]   ;;  %s727_s2 = inlined_call_operand.vmem [shape: f32[64,128], index: 2, kind: output, shape index: {0}]   ;;  %s728_s3 = inlined_call_operand.vmem [shape: f32[8,128], index: 3, kind: output, shape index: {1}]   ;;  %s729_s4 = inlined_call_operand.vmem [shape: f32[8,128], index: 4, kind: output, shape index: {2}]  }
   0x1   :  { %v542_v0 = vld [vmem:[%s725_s1 + $0x78] sm:$0xff]   ;;  %v544_v2 = vld [vmem:[%s725_s1 + $0x70] sm:$0xff]   ;;  %v546_v4 = vld [vmem:[%s725_s1 + $0x68] sm:$0xff]  }
   0x2   :  { %v543_v1 = vld [vmem:[%s725_s1 + $0x38] sm:$0xff]   ;;  %468 = vmatprep.subr.bf16.mxu0 %v542_v0  ;;  %526 = vmatprep.subr.bf16.mxu1 %v542_v0  ;;  %v545_v3 = vld [vmem:[%s725_s1 + $0x30] sm:$0xff]   ;;  %v547_v5 = vld [vmem:[%s725_s1 + $0x28] sm:$0xff]  }
   0x3   :  { %469 = vmatpush3.bf16.msra.mxu0 %v543_v1  ;;  %534 = vmatpush3.bf16.msra.mxu1 %v543_v1  ;;  %v548_v6 = vld [vmem:[%s725_s1 + $0x60] sm:$0xff]   ;;  %v550_v8 = vld [vmem:[%s725_s1 + $0x58] sm:$0xff]   ;;  %v552_v10 = vld [vmem:[%s725_s1 + $0x50] sm:$0xff]  }
   0x4   :  { %470 = vmatprep.subr.bf16.mxu0 %v544_v2  ;;  %527 = vmatprep.subr.bf16.mxu1 %v544_v2  ;;  %v549_v7 = vld [vmem:[%s725_s1 + $0x20] sm:$0xff]   ;;  %v551_v9 = vld [vmem:[%s725_s1 + $0x18] sm:$0xff]   ;;  %v553_v13 = vld [vmem:[%s725_s1 + $0x10] sm:$0xff]  }
   0x5   :  { %v560_v11 = vld [vmem:[%s726_s0 + $0x4] ss:$12 sps:$4 sm:$0xff]   ;;  %v563_v12 = vld [vmem:[%s726_s0 + $0x4c] ss:$12 sps:$4 sm:$0xff]   ;;  %v561_v20 = vld [vmem:[%s726_s0 + $0x48] ss:$12 sps:$4 sm:$0xff]  }
   0x6   :  { %v554_v14 = vld [vmem:[%s725_s1 + $0x48] sm:$0xff]   ;;  %280 = vmatprep.mubr.bf16.mxu0 %v560_v11  ;;  %304 = vmatprep.mubr.bf16.mxu1 %v563_v12  ;;  %v556_v16 = vld [vmem:[%s725_s1 + $0x40] sm:$0xff]   ;;  %v574_v28 = vld [vmem:[%s726_s0 + $0x30] ss:$12 sps:$4 sm:$0xff]  }
   0x7   :  { %471 = vmatpush3.bf16.msra.mxu0 %v545_v3  ;;  %535 = vmatpush3.bf16.msra.mxu1 %v545_v3  ;;  %v555_v15 = vld [vmem:[%s725_s1 + $0x8] sm:$0xff]   ;;  %v557_v17 = vld [vmem:[%s725_s1] sm:$0xff]   ;;  %v575_v29 = vld [vmem:[%s726_s0 + $0x50] ss:$12 sps:$4 sm:$0xff]  }
   0x8   :  { %472 = vmatprep.subr.bf16.mxu0 %v546_v4  ;;  %528 = vmatprep.subr.bf16.mxu1 %v546_v4  ;;  %v564_v18 = vld [vmem:[%s725_s1 + $0x88] sm:$0xff]   ;;  %v565_v22 = vld [vmem:[%s725_s1 + $0x80] sm:$0xff]  }
   0x9   :  { %v558_v19 = vld [vmem:[%s726_s0] ss:$12 sps:$4 sm:$0xff]   ;;  %v566_v21 = vld [vmem:[%s726_s0 + $0x1c] ss:$12 sps:$4 sm:$0xff]   ;;  %v569_v24 = vld [vmem:[%s726_s0 + $0x18] ss:$12 sps:$4 sm:$0xff]  }
   0xa   :  { %v568_v23 = vld [vmem:[%s726_s0 + $0x8] ss:$12 sps:$4 sm:$0xff]   ;;  %v570_v25 = vld [vmem:[%s726_s0 + $0x20] ss:$12 sps:$4 sm:$0xff]   ;;  %v573_v27 = vld [vmem:[%s726_s0 + $0x38] ss:$12 sps:$4 sm:$0xff]  }
   0xb   :  { %473 = vmatpush3.bf16.msra.mxu0 %v547_v5  ;;  %536 = vmatpush3.bf16.msra.mxu1 %v547_v5  ;;  %v571_v26 = vld [vmem:[%s726_s0 + $0x34] ss:$12 sps:$4 sm:$0xff]  }
   0xc   :  { %474 = vmatprep.subr.bf16.mxu0 %v548_v6  ;;  %529 = vmatprep.subr.bf16.mxu1 %v548_v6 }
   0xf   :  { %475 = vmatpush3.bf16.msra.mxu0 %v549_v7  ;;  %537 = vmatpush3.bf16.msra.mxu1 %v549_v7 }
  0x10   :  { %476 = vmatprep.subr.bf16.mxu0 %v550_v8  ;;  %530 = vmatprep.subr.bf16.mxu1 %v550_v8 }
  0x13   :  { %477 = vmatpush3.bf16.msra.mxu0 %v551_v9  ;;  %538 = vmatpush3.bf16.msra.mxu1 %v551_v9 }
  0x14   :  { %478 = vmatprep.subr.bf16.mxu0 %v552_v10  ;;  %531 = vmatprep.subr.bf16.mxu1 %v552_v10 }
  0x17   :  { %479 = vmatpush3.bf16.msra.mxu0 %v553_v13  ;;  %539 = vmatpush3.bf16.msra.mxu1 %v553_v13 }
  0x18   :  { %480 = vmatprep.subr.bf16.mxu0 %v554_v14  ;;  %532 = vmatprep.subr.bf16.mxu1 %v554_v14 }
  0x1b   :  { %481 = vmatpush3.bf16.msra.mxu0 %v555_v15  ;;  %540 = vmatpush3.bf16.msra.mxu1 %v555_v15 }
  0x1c   :  { %482 = vmatprep.subr.bf16.mxu0 %v556_v16  ;;  %533 = vmatprep.subr.bf16.mxu1 %v556_v16 }
  0x1f   :  { %483 = vmatpush3.bf16.msra.mxu0 %v557_v17  ;;  %541 = vmatpush3.bf16.msra.mxu1 %v557_v17 }
  0x20   :  { %514 = vmatprep.subr.bf16.mxu1 %v564_v18 }
  0x22   :  { %281 = vmatmul.mubr.bf16.vlgmr.msra.gmra.mxu0 %v558_v19  ;;  %305 = vmatmul.mubr.bf16.vlgmr.msra.gmra.mxu1 %v561_v20 }
  0x23   :  { %515 = vmatpush3.bf16.msra.mxu1 %v564_v18  ;;  %288 = vmatprep.mubr.bf16.mxu0 %v566_v21 }
  0x24   :  { %516 = vmatprep.subr.bf16.mxu1 %v565_v22  ;;  %518 = vmatprep.mubr.msk.bf16.mxu1 %vm235_vm0, %v568_v23 }
  0x27   :  { %517 = vmatpush3.bf16.msra.mxu1 %v565_v22 }
  0x2a   :  { %289 = vmatmul.mubr.bf16.gmra.mxu0 %v569_v24  ;;  %519 = vmatmul.mubr.msk.bf16.vlgmr.msra.gmra.mxu1 %vm235_vm0, %v570_v25 }
  0x2b   :  { %296 = vmatprep.mubr.bf16.mxu0 %v571_v26  ;;  %522 = vmatprep.mubr.msk.bf16.mxu1 %vm235_vm0, %v573_v27 }
  0x32   :  { %297 = vmatmul.mubr.bf16.gmra.mxu0 %v574_v28  ;;  %523 = vmatmul.mubr.msk.bf16.gmra.mxu1 %vm235_vm0, %v575_v29 }
  0xe2   :  { %v484_v30 = vpop.f32.mrf.mxu0  ;;  %v502_v31 = vpop.f32.mrf.mxu1 }
  0xe4   :  { %v485_v32 = vpop.f32.mrf.mxu0  ;;  %v503_v33 = vpop.f32.mrf.mxu1 }
  0xe5   :  { %v486_v40 = vadd.f32 %v485_v32, %v484_v30  ;;  %v504_v51 = vadd.f32 %v503_v33, %v502_v31 }
  0xe6   :  { %v487_v34 = vpop.f32.mrf.mxu0  ;;  %v505_v35 = vpop.f32.mrf.mxu1 }
  0xe8   :  { %v488_v36 = vpop.f32.mrf.mxu0  ;;  %v506_v37 = vpop.f32.mrf.mxu1 }
  0xe9   :  { %v489_v47 = vadd.f32 %v488_v36, %v487_v34  ;;  %v507_v63 = vadd.f32 %v506_v37, %v505_v35 }
  0xea   :  { %v490_v38 = vpop.f32.mrf.mxu0  ;;  %v520_v39 = vpop.f32.mrf.mxu1 }
  0xec   :  { %v491_v41 = vpop.f32.mrf.mxu0  ;;  %v347_v42 = vpop.f32.mrf.mxu1 }
  0xed   :  { %v492_v43 = vadd.f32 %v491_v41, %v490_v38  ;;  %v348_v44 = vadd.f32 %v486_v40, %v347_v42 }
  0xee   :  { %v493_v45 = vpop.f32.mrf.mxu0  ;;  %v521_v46 = vpop.f32.mrf.mxu1 }
  0xef   :  { %v356_v48 = vadd.f32 %v520_v39, %v492_v43  ;;  %378 = vst [vmem:[%s727_s2] sm:$0xff] %v348_v44  ;;  %v399_v54 = vmul.f32 %v348_v44, %v348_v44 }
  0xf0   :  { %v494_v49 = vpop.f32.mrf.mxu0  ;;  %v350_v50 = vpop.f32.mrf.mxu1 }
  0xf1   :  { %380 = vst [vmem:[%s727_s2 + $0x10] sm:$0xff] %v356_v48  ;;  %v495_v52 = vadd.f32 %v494_v49, %v493_v45  ;;  %v351_v53 = vadd.f32 %v489_v47, %v350_v50  ;;  %v401_v0 = vmul.f32 %v356_v48, %v356_v48 }
  0xf2   :  { %v496_v55 = vpop.f32.mrf.mxu0  ;;  %v524_v56 = vpop.f32.mrf.mxu1 }
  0xf3   :  { %v359_v57 = vadd.f32 %v521_v46, %v495_v52  ;;  %379 = vst [vmem:[%s727_s2 + $0x8] sm:$0xff] %v351_v53  ;;  %v386_v58 = vadd.f32 %v351_v53, %v348_v44  ;;  %v400_v59 = vmul.f32 %v351_v53, %v351_v53  ;;  %v372_v60 = vadd.f32 %v524_v56, %v504_v51 }
  0xf4   :  { %v497_v61 = vpop.f32.mrf.mxu0  ;;  %v363_v62 = vpop.f32.mrf.mxu1 }
  0xf5   :  { %381 = vst [vmem:[%s727_s2 + $0x18] sm:$0xff] %v359_v57  ;;  %v387_v1 = vadd.f32 %v386_v58, %v356_v48  ;;  %v407_v2 = vadd.f32 %v400_v59, %v399_v54  ;;  %384 = vst [vmem:[%s727_s2 + $0x30] sm:$0xff] %v372_v60  ;;  %v498_v3 = vadd.f32 %v497_v61, %v496_v55 }
  0xf6   :  { %v499_v4 = vpop.f32.mrf.mxu0  ;;  %v525_v5 = vpop.f32.mrf.mxu1  ;;  %v402_v6 = vmul.f32 %v359_v57, %v359_v57  ;;  %v405_v21 = vmul.f32 %v372_v60, %v372_v60 }
  0xf7   :  { %v408_v7 = vadd.f32 %v407_v2, %v401_v0  ;;  %v388_v8 = vadd.f32 %v387_v1, %v359_v57  ;;  %v375_v9 = vadd.f32 %v525_v5, %v507_v63  ;;  %v364_v10 = vadd.f32 %v498_v3, %v363_v62 }
  0xf8   :  { %v500_v11 = vpop.f32.mrf.mxu0  ;;  %v366_v15 = vpop.f32.mrf.mxu1 }
  0xf9   :  { %v409_v12 = vadd.f32 %v408_v7, %v402_v6  ;;  %385 = vst [vmem:[%s727_s2 + $0x38] sm:$0xff] %v375_v9  ;;  %v501_v13 = vadd.f32 %v500_v11, %v499_v4  ;;  %382 = vst [vmem:[%s727_s2 + $0x20] sm:$0xff] %v364_v10  ;;  %v403_v14 = vmul.f32 %v364_v10, %v364_v10 }
  0xfa   :  { %v389_v16 = vadd.f32 %v388_v8, %v364_v10  ;;  %v406_v24 = vmul.f32 %v375_v9, %v375_v9 }
  0xfb   :  { %v367_v17 = vadd.f32 %v501_v13, %v366_v15  ;;  %v410_v18 = vadd.f32 %v409_v12, %v403_v14 }
  0xfd   :  { %383 = vst [vmem:[%s727_s2 + $0x28] sm:$0xff] %v367_v17  ;;  %v390_v19 = vadd.f32 %v389_v16, %v367_v17  ;;  %v404_v20 = vmul.f32 %v367_v17, %v367_v17 }
  0xff   :  { %v391_v22 = vadd.f32 %v390_v19, %v372_v60  ;;  %v411_v23 = vadd.f32 %v410_v18, %v404_v20 }
 0x101   :  { %v392_v25 = vadd.f32 %v391_v22, %v375_v9  ;;  %v412_v26 = vadd.f32 %v411_v23, %v405_v21 }
 0x103   :  { %v393_v27 = vrot.slane %v392_v25, 4  ;;  %v413_v28 = vadd.f32 %v412_v26, %v406_v24 }
 0x105   :  { %v394_v29 = vadd.f32 %v393_v27, %v392_v25  ;;  %v414_v30 = vrot.slane %v413_v28, 4 }
 0x107   :  { %v395_v31 = vrot.slane %v394_v29, 2  ;;  %v415_v32 = vadd.f32 %v414_v30, %v413_v28 }
 0x109   :  { %v396_v33 = vadd.f32 %v395_v31, %v394_v29  ;;  %v416_v34 = vrot.slane %v415_v32, 2 }
 0x10b   :  { %v397_v35 = vrot.slane %v396_v33, 1  ;;  %v417_v36 = vadd.f32 %v416_v34, %v415_v32 }
 0x10d   :  { %v398_v37 = vadd.f32 %v397_v35, %v396_v33  ;;  %v418_v38 = vrot.slane %v417_v36, 1 }
 0x10f   :  { %v419_v39 = vadd.f32 %v418_v38, %v417_v36  ;;  %420 = vst [vmem:[%s728_s3] sm:$0xff] %v398_v37 }
 0x111   :  { %421 = vst [vmem:[%s729_s4] sm:$0xff] %v419_v39 }

// kernel: dwac_forward.32
= control target key start
LH: loop header
LB: loop body
LE: loop exit
PB: predicated region body
PF: predicated region fallthrough
CT: control target
= control target key end

     0   :  { %vm59_vm0 = vcmask 261120   ;;  %s304_s1 = inlined_call_operand.vmem [shape: bf16[32,128], index: 1, kind: input, shape index: {}]   ;;  %s305_s0 = inlined_call_operand.vmem [shape: bf16[64,32], index: 0, kind: input, shape index: {}]   ;;  %s306_s2 = inlined_call_operand.vmem [shape: f32[64,128], index: 2, kind: output, shape index: {0}]   ;;  %s307_s3 = inlined_call_operand.vmem [shape: f32[8,128], index: 3, kind: output, shape index: {1}]   ;;  %s308_s4 = inlined_call_operand.vmem [shape: f32[8,128], index: 4, kind: output, shape index: {2}]  }
   0x1   :  { %v225_v0 = vld [vmem:[%s304_s1 + $0x8] sm:$0xff]   ;;  %v226_v1 = vld [vmem:[%s304_s1] sm:$0xff]   ;;  %v229_v3 = vld [vmem:[%s305_s0 + $0x10] sm:$0xff]  }
   0x2   :  { %209 = vmatprep.subr.bf16.mxu0 %v225_v0  ;;  %221 = vmatprep.subr.bf16.mxu1 %v225_v0  ;;  %v227_v2 = vld [vmem:[%s305_s0] sm:$0xff]   ;;  %v228_v4 = vld [vmem:[%s305_s0 + $0x8] sm:$0xff]   ;;  %v230_v5 = vld [vmem:[%s305_s0 + $0x18] sm:$0xff]  }
   0x3   :  { %210 = vmatpush3.bf16.msra.mxu0 %v225_v0  ;;  %223 = vmatpush3.bf16.msra.mxu1 %v225_v0 }
   0x4   :  { %211 = vmatprep.subr.bf16.mxu0 %v226_v1  ;;  %222 = vmatprep.subr.bf16.mxu1 %v226_v1 }
   0x5   :  { %213 = vmatprep.mubr.msk.bf16.mxu0 %vm59_vm0, %v227_v2  ;;  %217 = vmatprep.mubr.msk.bf16.mxu1 %vm59_vm0, %v229_v3 }
   0x7   :  { %212 = vmatpush3.bf16.msra.mxu0 %v226_v1  ;;  %224 = vmatpush3.bf16.msra.mxu1 %v226_v1 }
   0xa   :  { %214 = vmatmul.mubr.msk.bf16.vlgmr.msra.gmra.mxu0 %vm59_vm0, %v228_v4  ;;  %218 = vmatmul.mubr.msk.bf16.vlgmr.msra.gmra.mxu1 %vm59_vm0, %v230_v5 }
  0xca   :  { %v215_v6 = vpop.f32.mrf.mxu0  ;;  %v219_v7 = vpop.f32.mrf.mxu1 }
  0xcb   :  { %139 = vst [vmem:[%s306_s2 + $0x10] sm:$0xff] %v215_v6  ;;  %143 = vst [vmem:[%s306_s2 + $0x30] sm:$0xff] %v219_v7  ;;  %v160_v17 = vmul.f32 %v215_v6, %v215_v6  ;;  %v164_v29 = vmul.f32 %v219_v7, %v219_v7 }
  0xcc   :  { %v106_v8 = vpop.f32.mrf.mxu0  ;;  %v122_v9 = vpop.f32.mrf.mxu1 }
  0xcd   :  { %137 = vst [vmem:[%s306_s2] sm:$0xff] %v106_v8  ;;  %141 = vst [vmem:[%s306_s2 + $0x20] sm:$0xff] %v122_v9  ;;  %v158_v14 = vmul.f32 %v106_v8, %v106_v8  ;;  %v162_v23 = vmul.f32 %v122_v9, %v122_v9 }
  0xce   :  { %v216_v10 = vpop.f32.mrf.mxu0  ;;  %v220_v11 = vpop.f32.mrf.mxu1 }
  0xcf   :  { %140 = vst [vmem:[%s306_s2 + $0x18] sm:$0xff] %v216_v10  ;;  %144 = vst [vmem:[%s306_s2 + $0x38] sm:$0xff] %v220_v11  ;;  %v161_v20 = vmul.f32 %v216_v10, %v216_v10  ;;  %v165_v32 = vmul.f32 %v220_v11, %v220_v11 }
  0xd0   :  { %v109_v12 = vpop.f32.mrf.mxu0  ;;  %v125_v13 = vpop.f32.mrf.mxu1 }
  0xd1   :  { %138 = vst [vmem:[%s306_s2 + $0x8] sm:$0xff] %v109_v12  ;;  %v145_v15 = vadd.f32 %v109_v12, %v106_v8  ;;  %v159_v16 = vmul.f32 %v109_v12, %v109_v12  ;;  %142 = vst [vmem:[%s306_s2 + $0x28] sm:$0xff] %v125_v13  ;;  %v163_v27 = vmul.f32 %v125_v13, %v125_v13 }
  0xd3   :  { %v146_v18 = vadd.f32 %v215_v6, %v145_v15  ;;  %v166_v19 = vadd.f32 %v159_v16, %v158_v14 }
  0xd5   :  { %v167_v21 = vadd.f32 %v166_v19, %v160_v17  ;;  %v147_v22 = vadd.f32 %v216_v10, %v146_v18 }
  0xd7   :  { %v148_v24 = vadd.f32 %v147_v22, %v122_v9  ;;  %v168_v25 = vadd.f32 %v167_v21, %v161_v20 }
  0xd9   :  { %v149_v26 = vadd.f32 %v148_v24, %v125_v13  ;;  %v169_v28 = vadd.f32 %v168_v25, %v162_v23 }
  0xdb   :  { %v150_v30 = vadd.f32 %v219_v7, %v149_v26  ;;  %v170_v31 = vadd.f32 %v169_v28, %v163_v27 }
  0xdd   :  { %v151_v33 = vadd.f32 %v220_v11, %v150_v30  ;;  %v171_v34 = vadd.f32 %v170_v31, %v164_v29 }
  0xdf   :  { %v152_v35 = vrot.slane %v151_v33, 4  ;;  %v172_v36 = vadd.f32 %v171_v34, %v165_v32 }
  0xe1   :  { %v153_v37 = vadd.f32 %v152_v35, %v151_v33  ;;  %v173_v38 = vrot.slane %v172_v36, 4 }
  0xe3   :  { %v154_v39 = vrot.slane %v153_v37, 2  ;;  %v174_v40 = vadd.f32 %v173_v38, %v172_v36 }
  0xe5   :  { %v155_v41 = vadd.f32 %v154_v39, %v153_v37  ;;  %v175_v42 = vrot.slane %v174_v40, 2 }
  0xe7   :  { %v156_v43 = vrot.slane %v155_v41, 1  ;;  %v176_v44 = vadd.f32 %v175_v42, %v174_v40 }
  0xe9   :  { %v157_v45 = vadd.f32 %v156_v43, %v155_v41  ;;  %v177_v46 = vrot.slane %v176_v44, 1 }
  0xeb   :  { %v178_v47 = vadd.f32 %v177_v46, %v176_v44  ;;  %179 = vst [vmem:[%s307_s3] sm:$0xff] %v157_v45 }
  0xed   :  { %180 = vst [vmem:[%s308_s4] sm:$0xff] %v178_v47 }

// kernel: dwac_forward.31
= control target key start
LH: loop header
LB: loop body
LE: loop exit
PB: predicated region body
PF: predicated region fallthrough
CT: control target
= control target key end

     0   :  { %vm427_vm0 = vcmask 523264   ;;  %s1150_s1 = inlined_call_operand.vmem [shape: bf16[576,128], index: 1, kind: input, shape index: {}]   ;;  %s1151_s0 = inlined_call_operand.vmem [shape: bf16[64,576], index: 0, kind: input, shape index: {}]   ;;  %s1152_s2 = inlined_call_operand.vmem [shape: f32[64,128], index: 2, kind: output, shape index: {0}]   ;;  %s1153_s3 = inlined_call_operand.vmem [shape: f32[8,128], index: 3, kind: output, shape index: {1}]   ;;  %s1154_s4 = inlined_call_operand.vmem [shape: f32[8,128], index: 4, kind: output, shape index: {2}]  }
   0x1   :  { %v863_v0 = vld [vmem:[%s1150_s1 + $0x78] sm:$0xff]   ;;  %v867_v4 = vld [vmem:[%s1150_s1 + $0x70] sm:$0xff]   ;;  %v871_v8 = vld [vmem:[%s1150_s1 + $0x68] sm:$0xff]  }
   0x2   :  { %v864_v1 = vld [vmem:[%s1150_s1 + $0xf8] sm:$0xff]   ;;  %751 = vmatprep.subr.bf16.mxu0 %v863_v0  ;;  %v868_v5 = vld [vmem:[%s1150_s1 + $0xf0] sm:$0xff]   ;;  %v872_v9 = vld [vmem:[%s1150_s1 + $0xe8] sm:$0xff]  }
   0x3   :  { %v865_v2 = vld [vmem:[%s1150_s1 + $0x38] sm:$0xff]   ;;  %791 = vmatprep.subr.bf16.mxu1 %v864_v1  ;;  %v869_v6 = vld [vmem:[%s1150_s1 + $0x30] sm:$0xff]   ;;  %v873_v10 = vld [vmem:[%s1150_s1 + $0x28] sm:$0xff]  }
   0x4   :  { %v866_v3 = vld [vmem:[%s1150_s1 + $0xb8] sm:$0xff]   ;;  %752 = vmatpush3.bf16.msra.mxu0 %v865_v2  ;;  %v870_v7 = vld [vmem:[%s1150_s1 + $0xb0] sm:$0xff]   ;;  %v874_v11 = vld [vmem:[%s1150_s1 + $0xa8] sm:$0xff]  }
   0x5   :  { %792 = vmatpush3.bf16.msra.mxu1 %v866_v3  ;;  %753 = vmatprep.subr.bf16.mxu0 %v867_v4  ;;  %v875_v12 = vld [vmem:[%s1150_s1 + $0x60] sm:$0xff]   ;;  %v879_v16 = vld [vmem:[%s1150_s1 + $0x58] sm:$0xff]   ;;  %v883_v20 = vld [vmem:[%s1150_s1 + $0x50] sm:$0xff]  }
   0x6   :  { %793 = vmatprep.subr.bf16.mxu1 %v868_v5  ;;  %v876_v13 = vld [vmem:[%s1150_s1 + $0xe0] sm:$0xff]   ;;  %v880_v17 = vld [vmem:[%s1150_s1 + $0xd8] sm:$0xff]   ;;  %v884_v21 = vld [vmem:[%s1150_s1 + $0xd0] sm:$0xff]  }
   0x7   :  { %v877_v14 = vld [vmem:[%s1150_s1 + $0x20] sm:$0xff]   ;;  %v881_v18 = vld [vmem:[%s1150_s1 + $0x18] sm:$0xff]   ;;  %v885_v22 = vld [vmem:[%s1150_s1 + $0x10] sm:$0xff]  }
   0x8   :  { %754 = vmatpush3.bf16.msra.mxu0 %v869_v6  ;;  %v878_v15 = vld [vmem:[%s1150_s1 + $0xa0] sm:$0xff]   ;;  %v882_v19 = vld [vmem:[%s1150_s1 + $0x98] sm:$0xff]   ;;  %v886_v23 = vld [vmem:[%s1150_s1 + $0x90] sm:$0xff]  }
   0x9   :  { %794 = vmatpush3.bf16.msra.mxu1 %v870_v7  ;;  %755 = vmatprep.subr.bf16.mxu0 %v871_v8  ;;  %v887_v24 = vld [vmem:[%s1150_s1 + $0x48] sm:$0xff]   ;;  %v891_v28 = vld [vmem:[%s1150_s1 + $0x40] sm:$0xff]   ;;  %v901_v36 = vld [vmem:[%s1150_s1 + $0x118] sm:$0xff]  }
   0xa   :  { %795 = vmatprep.subr.bf16.mxu1 %v872_v9  ;;  %v888_v25 = vld [vmem:[%s1150_s1 + $0xc8] sm:$0xff]   ;;  %v892_v29 = vld [vmem:[%s1150_s1 + $0xc0] sm:$0xff]   ;;  %v908_v39 = vld [vmem:[%s1150_s1 + $0x110] sm:$0xff]  }
   0xb   :  { %v889_v26 = vld [vmem:[%s1150_s1 + $0x8] sm:$0xff]   ;;  %v893_v30 = vld [vmem:[%s1150_s1] sm:$0xff]   ;;  %v911_v43 = vld [vmem:[%s1151_s0 + $0x5c] ss:$20 sps:$4 sm:$0xff]  }
   0xc   :  { %756 = vmatpush3.bf16.msra.mxu0 %v873_v10  ;;  %v890_v27 = vld [vmem:[%s1150_s1 + $0x88] sm:$0xff]   ;;  %v894_v31 = vld [vmem:[%s1150_s1 + $0x80] sm:$0xff]   ;;  %v916_v48 = vld [vmem:[%s1151_s0 + $0x7c] ss:$20 sps:$4 sm:$0xff]  }
   0xd   :  { %796 = vmatpush3.bf16.msra.mxu1 %v874_v11  ;;  %757 = vmatprep.subr.bf16.mxu0 %v875_v12  ;;  %v895_v32 = vld [vmem:[%s1151_s0] ss:$20 sps:$4 sm:$0xff]   ;;  %v897_v33 = vld [vmem:[%s1151_s0 + $0x4] ss:$20 sps:$4 sm:$0xff]   ;;  %v898_v34 = vld [vmem:[%s1151_s0 + $0x8] ss:$20 sps:$4 sm:$0xff]  }
   0xe   :  { %797 = vmatprep.subr.bf16.mxu1 %v876_v13  ;;  %v900_v35 = vld [vmem:[%s1151_s0 + $0xc] ss:$20 sps:$4 sm:$0xff]   ;;  %472 = vmatprep.mubr.bf16.mxu0 %v897_v33  ;;  %v904_v38 = vld [vmem:[%s1151_s0 + $0x34] ss:$20 sps:$4 sm:$0xff]   ;;  %v907_v41 = vld [vmem:[%s1151_s0 + $0x30] ss:$20 sps:$4 sm:$0xff]  }
   0xf   :  { %537 = vmatprep.mubr.bf16.mxu1 %v900_v35  ;;  %v902_v37 = vld [vmem:[%s1151_s0 + $0x2c] ss:$20 sps:$4 sm:$0xff]   ;;  %v906_v40 = vld [vmem:[%s1151_s0 + $0x28] ss:$20 sps:$4 sm:$0xff]   ;;  %v913_v46 = vld [vmem:[%s1151_s0 + $0x50] ss:$20 sps:$4 sm:$0xff]  }
  0x10   :  { %758 = vmatpush3.bf16.msra.mxu0 %v877_v14  ;;  %v909_v42 = vld [vmem:[%s1151_s0 + $0x54] ss:$20 sps:$4 sm:$0xff]   ;;  %v922_v45 = vld [vmem:[%s1150_s1 + $0x100] sm:$0xff]   ;;  %v914_v47 = vld [vmem:[%s1151_s0 + $0x58] ss:$20 sps:$4 sm:$0xff]  }
  0x11   :  { %798 = vmatpush3.bf16.msra.mxu1 %v878_v15  ;;  %759 = vmatprep.subr.bf16.mxu0 %v879_v16  ;;  %v915_v44 = vld [vmem:[%s1150_s1 + $0x108] sm:$0xff]   ;;  %v918_v49 = vld [vmem:[%s1151_s0 + $0x84] ss:$20 sps:$4 sm:$0xff]   ;;  %v921_v51 = vld [vmem:[%s1151_s0 + $0x80] ss:$20 sps:$4 sm:$0xff]  }
  0x12   :  { %799 = vmatprep.subr.bf16.mxu1 %v880_v17  ;;  %v920_v50 = vld [vmem:[%s1151_s0 + $0x78] ss:$20 sps:$4 sm:$0xff]   ;;  %v923_v52 = vld [vmem:[%s1151_s0 + $0x10] ss:$20 sps:$4 sm:$0xff]   ;;  %v924_v53 = vld [vmem:[%s1151_s0 + $0x60] ss:$20 sps:$4 sm:$0xff]  }
  0x13   :  { %v925_v54 = vld [vmem:[%s1151_s0 + $0x38] ss:$20 sps:$4 sm:$0xff]   ;;  %v926_v55 = vld [vmem:[%s1151_s0 + $0x88] ss:$20 sps:$4 sm:$0xff]  }
  0x14   :  { %760 = vmatpush3.bf16.msra.mxu0 %v881_v18 }
  0x15   :  { %800 = vmatpush3.bf16.msra.mxu1 %v882_v19  ;;  %761 = vmatprep.subr.bf16.mxu0 %v883_v20 }
  0x16   :  { %801 = vmatprep.subr.bf16.mxu1 %v884_v21 }
  0x18   :  { %762 = vmatpush3.bf16.msra.mxu0 %v885_v22 }
  0x19   :  { %802 = vmatpush3.bf16.msra.mxu1 %v886_v23  ;;  %763 = vmatprep.subr.bf16.mxu0 %v887_v24 }
  0x1a   :  { %803 = vmatprep.subr.bf16.mxu1 %v888_v25 }
  0x1c   :  { %764 = vmatpush3.bf16.msra.mxu0 %v889_v26 }
  0x1d   :  { %804 = vmatpush3.bf16.msra.mxu1 %v890_v27  ;;  %765 = vmatprep.subr.bf16.mxu0 %v891_v28 }
  0x1e   :  { %805 = vmatprep.subr.bf16.mxu1 %v892_v29 }
  0x20   :  { %766 = vmatpush3.bf16.msra.mxu0 %v893_v30 }
  0x21   :  { %806 = vmatpush3.bf16.msra.mxu1 %v894_v31  ;;  %839 = vmatprep.subr.bf16.mxu0 %v901_v36 }
  0x22   :  { %855 = vmatprep.subr.bf16.mxu1 %v901_v36 }
  0x23   :  { %473 = vmatmul.mubr.bf16.vlgmr.msra.gmra.mxu0 %v895_v32 }
  0x24   :  { %538 = vmatmul.mubr.bf16.vlgmr.msra.gmra.mxu1 %v898_v34  ;;  %840 = vmatpush3.bf16.msra.mxu0 %v901_v36 }
  0x25   :  { %480 = vmatprep.mubr.bf16.mxu0 %v902_v37  ;;  %545 = vmatprep.mubr.bf16.mxu1 %v904_v38 }
  0x26   :  { %859 = vmatpush3.bf16.msra.mxu1 %v901_v36  ;;  %841 = vmatprep.subr.bf16.mxu0 %v908_v39 }
  0x27   :  { %856 = vmatprep.subr.bf16.mxu1 %v908_v39 }
  0x28   :  { %842 = vmatpush3.bf16.msra.mxu0 %v908_v39 }
  0x29   :  { %843 = vmatprep.subr.bf16.mxu0 %v915_v44 }
  0x2a   :  { %860 = vmatpush3.bf16.msra.mxu1 %v908_v39 }
  0x2b   :  { %481 = vmatmul.mubr.bf16.gmra.mxu0 %v906_v40  ;;  %857 = vmatprep.subr.bf16.mxu1 %v915_v44 }
  0x2c   :  { %546 = vmatmul.mubr.bf16.gmra.mxu1 %v907_v41  ;;  %488 = vmatprep.mubr.bf16.mxu0 %v909_v42 }
  0x2d   :  { %553 = vmatprep.mubr.bf16.mxu1 %v911_v43  ;;  %844 = vmatpush3.bf16.msra.mxu0 %v915_v44 }
  0x2e   :  { %845 = vmatprep.subr.bf16.mxu0 %v922_v45  ;;  %861 = vmatpush3.bf16.msra.mxu1 %v915_v44 }
  0x2f   :  { %858 = vmatprep.subr.bf16.mxu1 %v922_v45 }
  0x31   :  { %846 = vmatpush3.bf16.msra.mxu0 %v922_v45 }
  0x32   :  { %862 = vmatpush3.bf16.msra.mxu1 %v922_v45 }
  0x33   :  { %489 = vmatmul.mubr.bf16.gmra.mxu0 %v913_v46 }
  0x34   :  { %554 = vmatmul.mubr.bf16.gmra.mxu1 %v914_v47  ;;  %496 = vmatprep.mubr.bf16.mxu0 %v916_v48 }
  0x35   :  { %561 = vmatprep.mubr.bf16.mxu1 %v918_v49 }
  0x3b   :  { %497 = vmatmul.mubr.bf16.gmra.mxu0 %v920_v50 }
  0x3c   :  { %562 = vmatmul.mubr.bf16.gmra.mxu1 %v921_v51  ;;  %847 = vmatprep.mubr.msk.bf16.mxu0 %vm427_vm0, %v923_v52 }
  0x3d   :  { %851 = vmatprep.mubr.msk.bf16.mxu1 %vm427_vm0, %v924_v53 }
  0x43   :  { %848 = vmatmul.mubr.msk.bf16.vlgmr.msra.gmra.mxu0 %vm427_vm0, %v925_v54 }
  0x44   :  { %852 = vmatmul.mubr.msk.bf16.vlgmr.msra.gmra.mxu1 %vm427_vm0, %v926_v55 }
  0xe3   :  { %v767_v56 = vpop.f32.mrf.mxu0 }
  0xe4   :  { %v807_v57 = vpop.f32.mrf.mxu1 }
  0xe5   :  { %v768_v58 = vpop.f32.mrf.mxu0 }
  0xe6   :  { %v808_v59 = vpop.f32.mrf.mxu1  ;;  %v769_v25 = vadd.f32 %v768_v58, %v767_v56 }
  0xe7   :  { %v770_v60 = vpop.f32.mrf.mxu0  ;;  %v809_v26 = vadd.f32 %v808_v59, %v807_v57 }
  0xe8   :  { %v810_v61 = vpop.f32.mrf.mxu1 }
  0xe9   :  { %v771_v62 = vpop.f32.mrf.mxu0  ;;  %v540_v43 = vadd.f32 %v809_v26, %v769_v25 }
  0xea   :  { %v811_v63 = vpop.f32.mrf.mxu1  ;;  %v772_v39 = vadd.f32 %v771_v62, %v770_v60 }
  0xeb   :  { %v773_v0 = vpop.f32.mrf.mxu0  ;;  %v812_v40 = vadd.f32 %v811_v63, %v810_v61 }
  0xec   :  { %v813_v1 = vpop.f32.mrf.mxu1 }
  0xed   :  { %v774_v2 = vpop.f32.mrf.mxu0  ;;  %v543_v57 = vadd.f32 %v812_v40, %v772_v39 }
  0xee   :  { %v814_v3 = vpop.f32.mrf.mxu1  ;;  %v775_v19 = vadd.f32 %v774_v2, %v773_v0 }
  0xef   :  { %v776_v4 = vpop.f32.mrf.mxu0  ;;  %v815_v20 = vadd.f32 %v814_v3, %v813_v1 }
  0xf0   :  { %v816_v5 = vpop.f32.mrf.mxu1 }
  0xf1   :  { %v777_v6 = vpop.f32.mrf.mxu0  ;;  %v548_v34 = vadd.f32 %v815_v20, %v775_v19 }
  0xf2   :  { %v817_v7 = vpop.f32.mrf.mxu1  ;;  %v778_v31 = vadd.f32 %v777_v6, %v776_v4 }
  0xf3   :  { %v779_v8 = vpop.f32.mrf.mxu0  ;;  %v818_v32 = vadd.f32 %v817_v7, %v816_v5 }
  0xf4   :  { %v819_v9 = vpop.f32.mrf.mxu1 }
  0xf5   :  { %v780_v10 = vpop.f32.mrf.mxu0  ;;  %v551_v51 = vadd.f32 %v818_v32, %v778_v31 }
  0xf6   :  { %v820_v11 = vpop.f32.mrf.mxu1  ;;  %v781_v28 = vadd.f32 %v780_v10, %v779_v8 }
  0xf7   :  { %v782_v12 = vpop.f32.mrf.mxu0  ;;  %v821_v29 = vadd.f32 %v820_v11, %v819_v9 }
  0xf8   :  { %v822_v13 = vpop.f32.mrf.mxu1 }
  0xf9   :  { %v783_v14 = vpop.f32.mrf.mxu0  ;;  %v556_v48 = vadd.f32 %v821_v29, %v781_v28 }
  0xfa   :  { %v823_v15 = vpop.f32.mrf.mxu1  ;;  %v784_v44 = vadd.f32 %v783_v14, %v782_v12 }
  0xfb   :  { %v785_v16 = vpop.f32.mrf.mxu0  ;;  %v824_v45 = vadd.f32 %v823_v15, %v822_v13 }
  0xfc   :  { %v825_v17 = vpop.f32.mrf.mxu1 }
  0xfd   :  { %v786_v18 = vpop.f32.mrf.mxu0  ;;  %v559_v60 = vadd.f32 %v824_v45, %v784_v44 }
  0xfe   :  { %v826_v21 = vpop.f32.mrf.mxu1  ;;  %v787_v22 = vadd.f32 %v786_v18, %v785_v16 }
  0xff   :  { %v827_v23 = vadd.f32 %v826_v21, %v825_v17  ;;  %v788_v24 = vpop.f32.mrf.mxu0 }
 0x100   :  { %v828_v27 = vpop.f32.mrf.mxu1 }
 0x101   :  { %v789_v30 = vpop.f32.mrf.mxu0  ;;  %v564_v38 = vadd.f32 %v827_v23, %v787_v22 }
 0x102   :  { %v829_v33 = vpop.f32.mrf.mxu1  ;;  %v790_v35 = vadd.f32 %v789_v30, %v788_v24 }
 0x103   :  { %v830_v36 = vadd.f32 %v829_v33, %v828_v27  ;;  %v849_v37 = vpop.f32.mrf.mxu0 }
 0x104   :  { %v613_v41 = vadd.f32 %v849_v37, %v548_v34  ;;  %v853_v42 = vpop.f32.mrf.mxu1 }
 0x105   :  { %v629_v46 = vadd.f32 %v853_v42, %v564_v38  ;;  %v604_v47 = vpop.f32.mrf.mxu0  ;;  %v567_v54 = vadd.f32 %v830_v36, %v790_v35 }
 0x106   :  { %637 = vst [vmem:[%s1152_s2 + $0x10] sm:$0xff] %v613_v41  ;;  %v605_v49 = vadd.f32 %v604_v47, %v540_v43  ;;  %v620_v50 = vpop.f32.mrf.mxu1  ;;  %v658_v3 = vmul.f32 %v613_v41, %v613_v41 }
 0x107   :  { %641 = vst [vmem:[%s1152_s2 + $0x30] sm:$0xff] %v629_v46  ;;  %v621_v52 = vadd.f32 %v620_v50, %v556_v48  ;;  %v850_v53 = vpop.f32.mrf.mxu0  ;;  %v662_v15 = vmul.f32 %v629_v46, %v629_v46 }
 0x108   :  { %635 = vst [vmem:[%s1152_s2] sm:$0xff] %v605_v49  ;;  %v616_v55 = vadd.f32 %v850_v53, %v551_v51  ;;  %v854_v56 = vpop.f32.mrf.mxu1  ;;  %v656_v0 = vmul.f32 %v605_v49, %v605_v49 }
 0x109   :  { %639 = vst [vmem:[%s1152_s2 + $0x20] sm:$0xff] %v621_v52  ;;  %v632_v58 = vadd.f32 %v854_v56, %v567_v54  ;;  %v607_v59 = vpop.f32.mrf.mxu0  ;;  %v660_v9 = vmul.f32 %v621_v52, %v621_v52 }
 0x10a   :  { %638 = vst [vmem:[%s1152_s2 + $0x18] sm:$0xff] %v616_v55  ;;  %v608_v61 = vadd.f32 %v607_v59, %v543_v57  ;;  %v623_v62 = vpop.f32.mrf.mxu1  ;;  %v659_v6 = vmul.f32 %v616_v55, %v616_v55 }
 0x10b   :  { %642 = vst [vmem:[%s1152_s2 + $0x38] sm:$0xff] %v632_v58  ;;  %v624_v63 = vadd.f32 %v623_v62, %v559_v60  ;;  %v663_v18 = vmul.f32 %v632_v58, %v632_v58 }
 0x10c   :  { %636 = vst [vmem:[%s1152_s2 + $0x8] sm:$0xff] %v608_v61  ;;  %v643_v1 = vadd.f32 %v608_v61, %v605_v49  ;;  %v657_v2 = vmul.f32 %v608_v61, %v608_v61 }
 0x10d   :  { %640 = vst [vmem:[%s1152_s2 + $0x28] sm:$0xff] %v624_v63  ;;  %v661_v13 = vmul.f32 %v624_v63, %v624_v63 }
 0x10e   :  { %v644_v4 = vadd.f32 %v643_v1, %v613_v41  ;;  %v664_v5 = vadd.f32 %v657_v2, %v656_v0 }
 0x110   :  { %v665_v7 = vadd.f32 %v664_v5, %v658_v3  ;;  %v645_v8 = vadd.f32 %v644_v4, %v616_v55 }
 0x112   :  { %v646_v10 = vadd.f32 %v645_v8, %v621_v52  ;;  %v666_v11 = vadd.f32 %v665_v7, %v659_v6 }
 0x114   :  { %v647_v12 = vadd.f32 %v646_v10, %v624_v63  ;;  %v667_v14 = vadd.f32 %v666_v11, %v660_v9 }
 0x116   :  { %v648_v16 = vadd.f32 %v647_v12, %v629_v46  ;;  %v668_v17 = vadd.f32 %v667_v14, %v661_v13 }
 0x118   :  { %v649_v19 = vadd.f32 %v648_v16, %v632_v58  ;;  %v669_v20 = vadd.f32 %v668_v17, %v662_v15 }
 0x11a   :  { %v650_v21 = vrot.slane %v649_v19, 4  ;;  %v670_v22 = vadd.f32 %v669_v20, %v663_v18 }
 0x11c   :  { %v651_v23 = vadd.f32 %v650_v21, %v649_v19  ;;  %v671_v24 = vrot.slane %v670_v22, 4 }
 0x11e   :  { %v652_v25 = vrot.slane %v651_v23, 2  ;;  %v672_v26 = vadd.f32 %v671_v24, %v670_v22 }
 0x120   :  { %v653_v27 = vadd.f32 %v652_v25, %v651_v23  ;;  %v673_v28 = vrot.slane %v672_v26, 2 }
 0x122   :  { %v654_v29 = vrot.slane %v653_v27, 1  ;;  %v674_v30 = vadd.f32 %v673_v28, %v672_v26 }
 0x124   :  { %v655_v31 = vadd.f32 %v654_v29, %v653_v27  ;;  %v675_v32 = vrot.slane %v674_v30, 1 }
 0x126   :  { %v676_v33 = vadd.f32 %v675_v32, %v674_v30  ;;  %677 = vst [vmem:[%s1153_s3] sm:$0xff] %v655_v31 }
 0x128   :  { %678 = vst [vmem:[%s1154_s4] sm:$0xff] %v676_v33 }

// kernel: dwac_forward.35
= control target key start
LH: loop header
LB: loop body
LE: loop exit
PB: predicated region body
PF: predicated region fallthrough
CT: control target
= control target key end

     0   :  { %v641_v34 = vmov 0.0   ;;  %vm642_vm0 = vmmov 0   ;;  %vm334_vm1 = vcmask 523264   ;;  %s803_s1 = inlined_call_operand.vmem [shape: bf16[576,128], index: 1, kind: input, shape index: {}]   ;;  %s804_s0 = inlined_call_operand.vmem [shape: bf16[16,576], index: 0, kind: input, shape index: {}]   ;;  %s805_s2 = inlined_call_operand.vmem [shape: f32[16,128], index: 2, kind: output, shape index: {0}]   ;;  %s806_s3 = inlined_call_operand.vmem [shape: f32[8,128], index: 3, kind: output, shape index: {1}]   ;;  %s807_s4 = inlined_call_operand.vmem [shape: f32[8,128], index: 4, kind: output, shape index: {2}]  }
   0x1   :  { %v598_v0 = vld [vmem:[%s803_s1 + $0x78] sm:$0xff]   ;;  %v602_v4 = vld [vmem:[%s803_s1 + $0x70] sm:$0xff]   ;;  %v606_v8 = vld [vmem:[%s803_s1 + $0x68] sm:$0xff]  }
   0x2   :  { %v599_v1 = vld [vmem:[%s803_s1 + $0xf8] sm:$0xff]   ;;  %535 = vmatprep.subr.bf16.mxu0 %v598_v0  ;;  %v603_v5 = vld [vmem:[%s803_s1 + $0xf0] sm:$0xff]   ;;  %v607_v9 = vld [vmem:[%s803_s1 + $0xe8] sm:$0xff]  }
   0x3   :  { %v600_v2 = vld [vmem:[%s803_s1 + $0x38] sm:$0xff]   ;;  %557 = vmatprep.subr.bf16.mxu1 %v599_v1  ;;  %v604_v6 = vld [vmem:[%s803_s1 + $0x30] sm:$0xff]   ;;  %v608_v10 = vld [vmem:[%s803_s1 + $0x28] sm:$0xff]  }
   0x4   :  { %v601_v3 = vld [vmem:[%s803_s1 + $0xb8] sm:$0xff]   ;;  %536 = vmatpush3.bf16.msra.mxu0 %v600_v2  ;;  %v605_v7 = vld [vmem:[%s803_s1 + $0xb0] sm:$0xff]   ;;  %v609_v11 = vld [vmem:[%s803_s1 + $0xa8] sm:$0xff]  }
   0x5   :  { %558 = vmatpush3.bf16.msra.mxu1 %v601_v3  ;;  %537 = vmatprep.subr.bf16.mxu0 %v602_v4  ;;  %v610_v12 = vld [vmem:[%s803_s1 + $0x60] sm:$0xff]   ;;  %v614_v16 = vld [vmem:[%s803_s1 + $0x58] sm:$0xff]   ;;  %v618_v20 = vld [vmem:[%s803_s1 + $0x50] sm:$0xff]  }
   0x6   :  { %559 = vmatprep.subr.bf16.mxu1 %v603_v5  ;;  %v611_v13 = vld [vmem:[%s803_s1 + $0xe0] sm:$0xff]   ;;  %v615_v17 = vld [vmem:[%s803_s1 + $0xd8] sm:$0xff]   ;;  %v619_v21 = vld [vmem:[%s803_s1 + $0xd0] sm:$0xff]  }
   0x7   :  { %v612_v14 = vld [vmem:[%s803_s1 + $0x20] sm:$0xff]   ;;  %v616_v18 = vld [vmem:[%s803_s1 + $0x18] sm:$0xff]   ;;  %v620_v22 = vld [vmem:[%s803_s1 + $0x10] sm:$0xff]  }
   0x8   :  { %538 = vmatpush3.bf16.msra.mxu0 %v604_v6  ;;  %v613_v15 = vld [vmem:[%s803_s1 + $0xa0] sm:$0xff]   ;;  %v617_v19 = vld [vmem:[%s803_s1 + $0x98] sm:$0xff]   ;;  %v621_v23 = vld [vmem:[%s803_s1 + $0x90] sm:$0xff]  }
   0x9   :  { %560 = vmatpush3.bf16.msra.mxu1 %v605_v7  ;;  %539 = vmatprep.subr.bf16.mxu0 %v606_v8  ;;  %v622_v24 = vld [vmem:[%s803_s1 + $0x48] sm:$0xff]   ;;  %v626_v28 = vld [vmem:[%s803_s1 + $0x40] sm:$0xff]   ;;  %v636_v37 = vld [vmem:[%s803_s1 + $0x118] sm:$0xff]  }
   0xa   :  { %561 = vmatprep.subr.bf16.mxu1 %v607_v9  ;;  %v623_v25 = vld [vmem:[%s803_s1 + $0xc8] sm:$0xff]   ;;  %v627_v29 = vld [vmem:[%s803_s1 + $0xc0] sm:$0xff]   ;;  %v637_v38 = vld [vmem:[%s803_s1 + $0x110] sm:$0xff]  }
   0xb   :  { %v624_v26 = vld [vmem:[%s803_s1 + $0x8] sm:$0xff]   ;;  %v628_v30 = vld [vmem:[%s803_s1] sm:$0xff]  }
   0xc   :  { %540 = vmatpush3.bf16.msra.mxu0 %v608_v10  ;;  %v625_v27 = vld [vmem:[%s803_s1 + $0x88] sm:$0xff]   ;;  %v629_v31 = vld [vmem:[%s803_s1 + $0x80] sm:$0xff]  }
   0xd   :  { %562 = vmatpush3.bf16.msra.mxu1 %v609_v11  ;;  %541 = vmatprep.subr.bf16.mxu0 %v610_v12  ;;  %v630_v32 = vld [vmem:[%s804_s0] ss:$20 sps:$4 sm:$0xff]   ;;  %v632_v33 = vld [vmem:[%s804_s0 + $0x4] ss:$20 sps:$4 sm:$0xff]   ;;  %v633_v35 = vld [vmem:[%s804_s0 + $0x8] ss:$20 sps:$4 sm:$0xff]  }
   0xe   :  { %563 = vmatprep.subr.bf16.mxu1 %v611_v13  ;;  %v635_v36 = vld [vmem:[%s804_s0 + $0xc] ss:$20 sps:$4 sm:$0xff]   ;;  %370 = vmatprep.mubr.bf16.mxu0 %v632_v33  ;;  %v640_v41 = vld [vmem:[%s804_s0 + $0x10] ss:$20 sps:$4 sm:$0xff]  }
   0xf   :  { %411 = vmatprep.mubr.bf16.mxu1 %v635_v36  ;;  %v638_v39 = vld [vmem:[%s803_s1 + $0x108] sm:$0xff]   ;;  %v639_v40 = vld [vmem:[%s803_s1 + $0x100] sm:$0xff]  }
  0x10   :  { %542 = vmatpush3.bf16.msra.mxu0 %v612_v14 }
  0x11   :  { %564 = vmatpush3.bf16.msra.mxu1 %v613_v15  ;;  %543 = vmatprep.subr.bf16.mxu0 %v614_v16 }
  0x12   :  { %565 = vmatprep.subr.bf16.mxu1 %v615_v17 }
  0x14   :  { %544 = vmatpush3.bf16.msra.mxu0 %v616_v18 }
  0x15   :  { %566 = vmatpush3.bf16.msra.mxu1 %v617_v19  ;;  %545 = vmatprep.subr.bf16.mxu0 %v618_v20 }
  0x16   :  { %567 = vmatprep.subr.bf16.mxu1 %v619_v21 }
  0x18   :  { %546 = vmatpush3.bf16.msra.mxu0 %v620_v22 }
  0x19   :  { %568 = vmatpush3.bf16.msra.mxu1 %v621_v23  ;;  %547 = vmatprep.subr.bf16.mxu0 %v622_v24 }
  0x1a   :  { %569 = vmatprep.subr.bf16.mxu1 %v623_v25 }
  0x1c   :  { %548 = vmatpush3.bf16.msra.mxu0 %v624_v26 }
  0x1d   :  { %570 = vmatpush3.bf16.msra.mxu1 %v625_v27  ;;  %549 = vmatprep.subr.bf16.mxu0 %v626_v28 }
  0x1e   :  { %571 = vmatprep.subr.bf16.mxu1 %v627_v29 }
  0x20   :  { %550 = vmatpush3.bf16.msra.mxu0 %v628_v30 }
  0x21   :  { %572 = vmatpush3.bf16.msra.mxu1 %v629_v31  ;;  %584 = vmatprep.subr.bf16.mxu0 %v641_v34 }
  0x23   :  { %371 = vmatmul.mubr.bf16.vlgmr.msra.gmra.mxu0 %v630_v32 }
  0x24   :  { %412 = vmatmul.mubr.bf16.vlgmr.msra.gmra.mxu1 %v633_v35  ;;  %585 = vmatpush3.bf16.msra.mxu0 %v636_v37 }
  0x25   :  { %586 = vmatprep.subr.bf16.mxu0 %v641_v34  ;;  %592 = vmatprep.mubr.msk.bf16.mxu0 %vm642_vm0, %v641_v34 }
  0x28   :  { %587 = vmatpush3.bf16.msra.mxu0 %v637_v38 }
  0x29   :  { %588 = vmatprep.subr.bf16.mxu0 %v641_v34 }
  0x2c   :  { %589 = vmatpush3.bf16.msra.mxu0 %v638_v39 }
  0x2d   :  { %590 = vmatprep.subr.bf16.mxu0 %v641_v34 }
  0x30   :  { %591 = vmatpush3.bf16.msra.mxu0 %v639_v40 }
  0x33   :  { %593 = vmatmul.mubr.msk.bf16.vlgmr.msra.gmra.mxu0 %vm334_vm1, %v640_v41 }
  0xe3   :  { %v551_v42 = vpop.f32.mrf.mxu0 }
  0xe4   :  { %v573_v43 = vpop.f32.mrf.mxu1 }
  0xe5   :  { %v552_v44 = vpop.f32.mrf.mxu0 }
  0xe6   :  { %v574_v45 = vpop.f32.mrf.mxu1  ;;  %v553_v48 = vadd.f32 %v552_v44, %v551_v42 }
  0xe7   :  { %v554_v46 = vpop.f32.mrf.mxu0  ;;  %v575_v49 = vadd.f32 %v574_v45, %v573_v43 }
  0xe8   :  { %v576_v47 = vpop.f32.mrf.mxu1 }
  0xe9   :  { %v555_v50 = vpop.f32.mrf.mxu0  ;;  %v414_v54 = vadd.f32 %v575_v49, %v553_v48 }
  0xea   :  { %v577_v51 = vpop.f32.mrf.mxu1  ;;  %v556_v52 = vadd.f32 %v555_v50, %v554_v46 }
  0xeb   :  { %v578_v53 = vadd.f32 %v577_v51, %v576_v47 }
  0xed   :  { %v417_v58 = vadd.f32 %v578_v53, %v556_v52 }
  0xf3   :  { %v454_v55 = vpop.f32.mrf.mxu0 }
  0xf4   :  { %v455_v56 = vadd.f32 %v454_v55, %v414_v54 }
  0xf5   :  { %v594_v57 = vpop.f32.mrf.mxu0 }
  0xf6   :  { %461 = vst [vmem:[%s805_s2] sm:$0xff] %v455_v56  ;;  %v470_v62 = vmul.f32 %v455_v56, %v455_v56 }
  0xf7   :  { %v457_v59 = vpop.f32.mrf.mxu0 }
  0xf8   :  { %v458_v60 = vadd.f32 %v457_v59, %v417_v58 }
  0xf9   :  { %v595_v61 = vpop.f32.mrf.mxu0 }
  0xfa   :  { %462 = vst [vmem:[%s805_s2 + $0x8] sm:$0xff] %v458_v60  ;;  %v463_v63 = vadd.f32 %v458_v60, %v455_v56  ;;  %v471_v0 = vmul.f32 %v458_v60, %v458_v60 }
  0xfc   :  { %v464_v1 = vrot.slane %v463_v63, 4  ;;  %v472_v2 = vadd.f32 %v471_v0, %v470_v62 }
  0xfe   :  { %v465_v3 = vadd.f32 %v464_v1, %v463_v63  ;;  %v473_v4 = vrot.slane %v472_v2, 4 }
 0x100   :  { %v466_v5 = vrot.slane %v465_v3, 2  ;;  %v474_v6 = vadd.f32 %v473_v4, %v472_v2 }
 0x102   :  { %v467_v7 = vadd.f32 %v466_v5, %v465_v3  ;;  %v475_v8 = vrot.slane %v474_v6, 2 }
 0x104   :  { %v468_v9 = vrot.slane %v467_v7, 1  ;;  %v476_v10 = vadd.f32 %v475_v8, %v474_v6 }
 0x106   :  { %v469_v11 = vadd.f32 %v468_v9, %v467_v7  ;;  %v477_v12 = vrot.slane %v476_v10, 1 }
 0x108   :  { %v478_v13 = vadd.f32 %v477_v12, %v476_v10  ;;  %479 = vst [vmem:[%s806_s3] sm:$0xff] %v469_v11 }
 0x10a   :  { %480 = vst [vmem:[%s807_s4] sm:$0xff] %v478_v13 }

// kernel: dwac_forward.37
= control target key start
LH: loop header
LB: loop body
LE: loop exit
PB: predicated region body
PF: predicated region fallthrough
CT: control target
= control target key end

     0   :  { %v161_v0 = vmov 0.0   ;;  %vm162_vm0 = vmmov 0   ;;  %vm54_vm1 = vcmask 523264   ;;  %s215_s1 = inlined_call_operand.vmem [shape: bf16[64,128], index: 1, kind: input, shape index: {}]   ;;  %s216_s0 = inlined_call_operand.vmem [shape: bf16[16,64], index: 0, kind: input, shape index: {}]   ;;  %s217_s2 = inlined_call_operand.vmem [shape: f32[16,128], index: 2, kind: output, shape index: {0}]   ;;  %s218_s3 = inlined_call_operand.vmem [shape: f32[8,128], index: 3, kind: output, shape index: {1}]   ;;  %s219_s4 = inlined_call_operand.vmem [shape: f32[8,128], index: 4, kind: output, shape index: {2}]  }
   0x1   :  { %142 = vmatprep.subr.bf16.mxu0 %v161_v0  ;;  %v156_v1 = vld [vmem:[%s215_s1 + $0x18] sm:$0xff]   ;;  %150 = vmatprep.mubr.msk.bf16.mxu0 %vm162_vm0, %v161_v0  ;;  %v157_v2 = vld [vmem:[%s215_s1 + $0x10] sm:$0xff]   ;;  %v158_v3 = vld [vmem:[%s215_s1 + $0x8] sm:$0xff]  }
   0x2   :  { %143 = vmatpush3.bf16.msra.mxu0 %v156_v1  ;;  %v159_v4 = vld [vmem:[%s215_s1] sm:$0xff]  }
   0x3   :  { %144 = vmatprep.subr.bf16.mxu0 %v161_v0  ;;  %v160_v5 = vld [vmem:[%s216_s0] sm:$0xff]  }
   0x6   :  { %145 = vmatpush3.bf16.msra.mxu0 %v157_v2 }
   0x7   :  { %146 = vmatprep.subr.bf16.mxu0 %v161_v0 }
   0xa   :  { %147 = vmatpush3.bf16.msra.mxu0 %v158_v3 }
   0xb   :  { %148 = vmatprep.subr.bf16.mxu0 %v161_v0 }
   0xe   :  { %149 = vmatpush3.bf16.msra.mxu0 %v159_v4 }
  0x11   :  { %151 = vmatmul.mubr.msk.bf16.vlgmr.msra.gmra.mxu0 %vm54_vm1, %v160_v5 }
  0xd1   :  { %v92_v6 = vpop.f32.mrf.mxu0 }
  0xd2   :  { %99 = vst [vmem:[%s217_s2] sm:$0xff] %v92_v6  ;;  %v108_v9 = vmul.f32 %v92_v6, %v92_v6 }
  0xd3   :  { %v152_v7 = vpop.f32.mrf.mxu0 }
  0xd5   :  { %v95_v8 = vpop.f32.mrf.mxu0 }
  0xd6   :  { %100 = vst [vmem:[%s217_s2 + $0x8] sm:$0xff] %v95_v8  ;;  %v101_v10 = vadd.f32 %v95_v8, %v92_v6  ;;  %v109_v11 = vmul.f32 %v95_v8, %v95_v8 }
  0xd7   :  { %v153_v12 = vpop.f32.mrf.mxu0 }
  0xd8   :  { %v102_v13 = vrot.slane %v101_v10, 4  ;;  %v110_v14 = vadd.f32 %v109_v11, %v108_v9 }
  0xda   :  { %v103_v15 = vadd.f32 %v102_v13, %v101_v10  ;;  %v111_v16 = vrot.slane %v110_v14, 4 }
  0xdc   :  { %v104_v17 = vrot.slane %v103_v15, 2  ;;  %v112_v18 = vadd.f32 %v111_v16, %v110_v14 }
  0xde   :  { %v105_v19 = vadd.f32 %v104_v17, %v103_v15  ;;  %v113_v20 = vrot.slane %v112_v18, 2 }
  0xe0   :  { %v106_v21 = vrot.slane %v105_v19, 1  ;;  %v114_v22 = vadd.f32 %v113_v20, %v112_v18 }
  0xe2   :  { %v107_v23 = vadd.f32 %v106_v21, %v105_v19  ;;  %v115_v24 = vrot.slane %v114_v22, 1 }
  0xe4   :  { %v116_v25 = vadd.f32 %v115_v24, %v114_v22  ;;  %117 = vst [vmem:[%s218_s3] sm:$0xff] %v107_v23 }
  0xe6   :  { %118 = vst [vmem:[%s219_s4] sm:$0xff] %v116_v25 }

// kernel: dwac_forward.36
= control target key start
LH: loop header
LB: loop body
LE: loop exit
PB: predicated region body
PF: predicated region fallthrough
CT: control target
= control target key end

     0   :  { %vm1170_vm0 = vmmov 0   ;;  %s1451_s1 = inlined_call_operand.vmem [shape: bf16[1152,128], index: 1, kind: input, shape index: {}]   ;;  %s1452_s0 = inlined_call_operand.vmem [shape: bf16[16,1152], index: 0, kind: input, shape index: {}]   ;;  %s1453_s2 = inlined_call_operand.vmem [shape: f32[16,128], index: 2, kind: output, shape index: {0}]   ;;  %s1454_s3 = inlined_call_operand.vmem [shape: f32[8,128], index: 3, kind: output, shape index: {1}]   ;;  %s1455_s4 = inlined_call_operand.vmem [shape: f32[8,128], index: 4, kind: output, shape index: {2}]  }
   0x1   :  { %v1084_v0 = vld [vmem:[%s1451_s1 + $0x78] sm:$0xff]   ;;  %v1088_v4 = vld [vmem:[%s1451_s1 + $0x70] sm:$0xff]   ;;  %v1092_v8 = vld [vmem:[%s1451_s1 + $0x68] sm:$0xff]  }
   0x2   :  { %v1085_v1 = vld [vmem:[%s1451_s1 + $0xf8] sm:$0xff]   ;;  %965 = vmatprep.subr.bf16.mxu0 %v1084_v0  ;;  %v1089_v5 = vld [vmem:[%s1451_s1 + $0xf0] sm:$0xff]   ;;  %v1093_v9 = vld [vmem:[%s1451_s1 + $0xe8] sm:$0xff]  }
   0x3   :  { %v1086_v2 = vld [vmem:[%s1451_s1 + $0x38] sm:$0xff]   ;;  %987 = vmatprep.subr.bf16.mxu1 %v1085_v1  ;;  %v1090_v6 = vld [vmem:[%s1451_s1 + $0x30] sm:$0xff]   ;;  %v1094_v10 = vld [vmem:[%s1451_s1 + $0x28] sm:$0xff]  }
   0x4   :  { %v1087_v3 = vld [vmem:[%s1451_s1 + $0xb8] sm:$0xff]   ;;  %966 = vmatpush3.bf16.msra.mxu0 %v1086_v2  ;;  %v1091_v7 = vld [vmem:[%s1451_s1 + $0xb0] sm:$0xff]   ;;  %v1095_v11 = vld [vmem:[%s1451_s1 + $0xa8] sm:$0xff]  }
   0x5   :  { %988 = vmatpush3.bf16.msra.mxu1 %v1087_v3  ;;  %967 = vmatprep.subr.bf16.mxu0 %v1088_v4  ;;  %v1096_v12 = vld [vmem:[%s1451_s1 + $0x60] sm:$0xff]   ;;  %v1100_v16 = vld [vmem:[%s1451_s1 + $0x58] sm:$0xff]   ;;  %v1104_v20 = vld [vmem:[%s1451_s1 + $0x50] sm:$0xff]  }
   0x6   :  { %989 = vmatprep.subr.bf16.mxu1 %v1089_v5  ;;  %v1097_v13 = vld [vmem:[%s1451_s1 + $0xe0] sm:$0xff]   ;;  %v1101_v17 = vld [vmem:[%s1451_s1 + $0xd8] sm:$0xff]   ;;  %v1105_v21 = vld [vmem:[%s1451_s1 + $0xd0] sm:$0xff]  }
   0x7   :  { %v1098_v14 = vld [vmem:[%s1451_s1 + $0x20] sm:$0xff]   ;;  %v1102_v18 = vld [vmem:[%s1451_s1 + $0x18] sm:$0xff]   ;;  %v1106_v22 = vld [vmem:[%s1451_s1 + $0x10] sm:$0xff]  }
   0x8   :  { %968 = vmatpush3.bf16.msra.mxu0 %v1090_v6  ;;  %v1099_v15 = vld [vmem:[%s1451_s1 + $0xa0] sm:$0xff]   ;;  %v1103_v19 = vld [vmem:[%s1451_s1 + $0x98] sm:$0xff]   ;;  %v1107_v23 = vld [vmem:[%s1451_s1 + $0x90] sm:$0xff]   ;;  %v1169_v6 = vmov 0.0  }
   0x9   :  { %990 = vmatpush3.bf16.msra.mxu1 %v1091_v7  ;;  %969 = vmatprep.subr.bf16.mxu0 %v1092_v8  ;;  %v1108_v24 = vld [vmem:[%s1451_s1 + $0x48] sm:$0xff]   ;;  %v1112_v28 = vld [vmem:[%s1451_s1 + $0x40] sm:$0xff]   ;;  %v1122_v36 = vld [vmem:[%s1451_s1 + $0x178] sm:$0xff]  }
   0xa   :  { %991 = vmatprep.subr.bf16.mxu1 %v1093_v9  ;;  %v1109_v25 = vld [vmem:[%s1451_s1 + $0xc8] sm:$0xff]   ;;  %v1113_v29 = vld [vmem:[%s1451_s1 + $0xc0] sm:$0xff]   ;;  %v1123_v37 = vld [vmem:[%s1451_s1 + $0x138] sm:$0xff]  }
   0xb   :  { %v1110_v26 = vld [vmem:[%s1451_s1 + $0x8] sm:$0xff]   ;;  %v1114_v30 = vld [vmem:[%s1451_s1] sm:$0xff]   ;;  %v1124_v38 = vld [vmem:[%s1451_s1 + $0x1f8] sm:$0xff]  }
   0xc   :  { %970 = vmatpush3.bf16.msra.mxu0 %v1094_v10  ;;  %v1111_v27 = vld [vmem:[%s1451_s1 + $0x88] sm:$0xff]   ;;  %v1115_v31 = vld [vmem:[%s1451_s1 + $0x80] sm:$0xff]   ;;  %v1125_v39 = vld [vmem:[%s1451_s1 + $0x1b8] sm:$0xff]  }
   0xd   :  { %992 = vmatpush3.bf16.msra.mxu1 %v1095_v11  ;;  %971 = vmatprep.subr.bf16.mxu0 %v1096_v12  ;;  %v1116_v32 = vld [vmem:[%s1452_s0] ss:$36 sps:$4 sm:$0xff]   ;;  %v1119_v34 = vld [vmem:[%s1452_s0 + $0x8] ss:$36 sps:$4 sm:$0xff]   ;;  %v1126_v40 = vld [vmem:[%s1451_s1 + $0x170] sm:$0xff]  }
   0xe   :  { %993 = vmatprep.subr.bf16.mxu1 %v1097_v13  ;;  %v1118_v33 = vld [vmem:[%s1452_s0 + $0x4] ss:$36 sps:$4 sm:$0xff]   ;;  %v1121_v35 = vld [vmem:[%s1452_s0 + $0xc] ss:$36 sps:$4 sm:$0xff]   ;;  %v1138_v52 = vld [vmem:[%s1451_s1 + $0x158] sm:$0xff]  }
   0xf   :  { %679 = vmatprep.mubr.bf16.mxu0 %v1118_v33  ;;  %720 = vmatprep.mubr.bf16.mxu1 %v1121_v35  ;;  %v1127_v41 = vld [vmem:[%s1451_s1 + $0x130] sm:$0xff]   ;;  %v1130_v44 = vld [vmem:[%s1451_s1 + $0x168] sm:$0xff]   ;;  %v1134_v48 = vld [vmem:[%s1451_s1 + $0x160] sm:$0xff]  }
  0x10   :  { %972 = vmatpush3.bf16.msra.mxu0 %v1098_v14  ;;  %v1128_v42 = vld [vmem:[%s1451_s1 + $0x1f0] sm:$0xff]   ;;  %v1131_v45 = vld [vmem:[%s1451_s1 + $0x128] sm:$0xff]   ;;  %v1135_v49 = vld [vmem:[%s1451_s1 + $0x120] sm:$0xff]  }
  0x11   :  { %994 = vmatpush3.bf16.msra.mxu1 %v1099_v15  ;;  %973 = vmatprep.subr.bf16.mxu0 %v1100_v16  ;;  %v1129_v43 = vld [vmem:[%s1451_s1 + $0x1b0] sm:$0xff]   ;;  %v1132_v46 = vld [vmem:[%s1451_s1 + $0x1e8] sm:$0xff]   ;;  %v1136_v50 = vld [vmem:[%s1451_s1 + $0x1e0] sm:$0xff]  }
  0x12   :  { %995 = vmatprep.subr.bf16.mxu1 %v1101_v17  ;;  %v1133_v47 = vld [vmem:[%s1451_s1 + $0x1a8] sm:$0xff]   ;;  %v1137_v51 = vld [vmem:[%s1451_s1 + $0x1a0] sm:$0xff]   ;;  %v1139_v53 = vld [vmem:[%s1451_s1 + $0x118] sm:$0xff]  }
  0x13   :  { %v1140_v54 = vld [vmem:[%s1451_s1 + $0x1d8] sm:$0xff]   ;;  %v1142_v56 = vld [vmem:[%s1451_s1 + $0x150] sm:$0xff]   ;;  %v1146_v60 = vld [vmem:[%s1451_s1 + $0x148] sm:$0xff]  }
  0x14   :  { %974 = vmatpush3.bf16.msra.mxu0 %v1102_v18  ;;  %v1141_v55 = vld [vmem:[%s1451_s1 + $0x198] sm:$0xff]   ;;  %v1143_v57 = vld [vmem:[%s1451_s1 + $0x110] sm:$0xff]   ;;  %v1147_v61 = vld [vmem:[%s1451_s1 + $0x108] sm:$0xff]  }
  0x15   :  { %996 = vmatpush3.bf16.msra.mxu1 %v1103_v19  ;;  %975 = vmatprep.subr.bf16.mxu0 %v1104_v20  ;;  %v1144_v58 = vld [vmem:[%s1451_s1 + $0x1d0] sm:$0xff]   ;;  %v1148_v62 = vld [vmem:[%s1451_s1 + $0x1c8] sm:$0xff]   ;;  %v1150_v0 = vld [vmem:[%s1451_s1 + $0x140] sm:$0xff]  }
  0x16   :  { %997 = vmatprep.subr.bf16.mxu1 %v1105_v21  ;;  %v1145_v59 = vld [vmem:[%s1451_s1 + $0x190] sm:$0xff]   ;;  %v1149_v63 = vld [vmem:[%s1451_s1 + $0x188] sm:$0xff]   ;;  %v1151_v1 = vld [vmem:[%s1451_s1 + $0x100] sm:$0xff]  }
  0x17   :  { %v1152_v2 = vld [vmem:[%s1451_s1 + $0x1c0] sm:$0xff]   ;;  %v1153_v3 = vld [vmem:[%s1452_s0 + $0x10] ss:$36 sps:$4 sm:$0xff]   ;;  %v1157_v7 = vld [vmem:[%s1452_s0 + $0x18] ss:$36 sps:$4 sm:$0xff]  }
  0x18   :  { %976 = vmatpush3.bf16.msra.mxu0 %v1106_v22  ;;  %v1155_v4 = vld [vmem:[%s1452_s0 + $0x14] ss:$36 sps:$4 sm:$0xff]   ;;  %v1156_v5 = vld [vmem:[%s1451_s1 + $0x180] sm:$0xff]   ;;  %v1162_v11 = vld [vmem:[%s1451_s1 + $0x228] sm:$0xff]  }
  0x19   :  { %998 = vmatpush3.bf16.msra.mxu1 %v1107_v23  ;;  %977 = vmatprep.subr.bf16.mxu0 %v1108_v24  ;;  %v1159_v8 = vld [vmem:[%s1452_s0 + $0x1c] ss:$36 sps:$4 sm:$0xff]   ;;  %v1161_v10 = vld [vmem:[%s1451_s1 + $0x230] sm:$0xff]   ;;  %v1166_v15 = vld [vmem:[%s1451_s1 + $0x208] sm:$0xff]  }
  0x1a   :  { %999 = vmatprep.subr.bf16.mxu1 %v1109_v25  ;;  %v1160_v9 = vld [vmem:[%s1451_s1 + $0x238] sm:$0xff]   ;;  %v1163_v12 = vld [vmem:[%s1451_s1 + $0x220] sm:$0xff]   ;;  %v1165_v14 = vld [vmem:[%s1451_s1 + $0x210] sm:$0xff]  }
  0x1b   :  { %v1164_v13 = vld [vmem:[%s1451_s1 + $0x218] sm:$0xff]   ;;  %v1167_v16 = vld [vmem:[%s1451_s1 + $0x200] sm:$0xff]  }
  0x1c   :  { %978 = vmatpush3.bf16.msra.mxu0 %v1110_v26  ;;  %v1168_v17 = vld [vmem:[%s1452_s0 + $0x20] ss:$36 sps:$4 sm:$0xff]  }
  0x1d   :  { %1000 = vmatpush3.bf16.msra.mxu1 %v1111_v27  ;;  %979 = vmatprep.subr.bf16.mxu0 %v1112_v28 }
  0x1e   :  { %1001 = vmatprep.subr.bf16.mxu1 %v1113_v29 }
  0x20   :  { %980 = vmatpush3.bf16.msra.mxu0 %v1114_v30 }
  0x21   :  { %1002 = vmatpush3.bf16.msra.mxu1 %v1115_v31  ;;  %1009 = vmatprep.subr.bf16.mxu0 %v1122_v36 }
  0x22   :  { %1031 = vmatprep.subr.bf16.mxu1 %v1124_v38 }
  0x23   :  { %680 = vmatmul.mubr.bf16.vlgmr.msra.gmra.mxu0 %v1116_v32 }
  0x24   :  { %721 = vmatmul.mubr.bf16.vlgmr.msra.gmra.mxu1 %v1119_v34  ;;  %1010 = vmatpush3.bf16.msra.mxu0 %v1123_v37 }
  0x25   :  { %1032 = vmatpush3.bf16.msra.mxu1 %v1125_v39  ;;  %1011 = vmatprep.subr.bf16.mxu0 %v1126_v40 }
  0x26   :  { %1033 = vmatprep.subr.bf16.mxu1 %v1128_v42  ;;  %761 = vmatprep.mubr.bf16.mxu0 %v1155_v4 }
  0x27   :  { %802 = vmatprep.mubr.bf16.mxu1 %v1159_v8 }
  0x28   :  { %1012 = vmatpush3.bf16.msra.mxu0 %v1127_v41 }
  0x29   :  { %1034 = vmatpush3.bf16.msra.mxu1 %v1129_v43  ;;  %1013 = vmatprep.subr.bf16.mxu0 %v1130_v44 }
  0x2a   :  { %1035 = vmatprep.subr.bf16.mxu1 %v1132_v46 }
  0x2c   :  { %1014 = vmatpush3.bf16.msra.mxu0 %v1131_v45 }
  0x2d   :  { %1036 = vmatpush3.bf16.msra.mxu1 %v1133_v47  ;;  %1015 = vmatprep.subr.bf16.mxu0 %v1134_v48 }
  0x2e   :  { %1037 = vmatprep.subr.bf16.mxu1 %v1136_v50 }
  0x30   :  { %1016 = vmatpush3.bf16.msra.mxu0 %v1135_v49 }
  0x31   :  { %1038 = vmatpush3.bf16.msra.mxu1 %v1137_v51  ;;  %1017 = vmatprep.subr.bf16.mxu0 %v1138_v52 }
  0x32   :  { %1039 = vmatprep.subr.bf16.mxu1 %v1140_v54 }
  0x34   :  { %1018 = vmatpush3.bf16.msra.mxu0 %v1139_v53 }
  0x35   :  { %1040 = vmatpush3.bf16.msra.mxu1 %v1141_v55  ;;  %1019 = vmatprep.subr.bf16.mxu0 %v1142_v56 }
  0x36   :  { %1041 = vmatprep.subr.bf16.mxu1 %v1144_v58 }
  0x38   :  { %1020 = vmatpush3.bf16.msra.mxu0 %v1143_v57 }
  0x39   :  { %1042 = vmatpush3.bf16.msra.mxu1 %v1145_v59  ;;  %1021 = vmatprep.subr.bf16.mxu0 %v1146_v60 }
  0x3a   :  { %1043 = vmatprep.subr.bf16.mxu1 %v1148_v62 }
  0x3c   :  { %1022 = vmatpush3.bf16.msra.mxu0 %v1147_v61 }
  0x3d   :  { %1044 = vmatpush3.bf16.msra.mxu1 %v1149_v63  ;;  %1023 = vmatprep.subr.bf16.mxu0 %v1150_v0 }
  0x3e   :  { %1045 = vmatprep.subr.bf16.mxu1 %v1152_v2 }
  0x40   :  { %1024 = vmatpush3.bf16.msra.mxu0 %v1151_v1 }
  0x41   :  { %1062 = vmatprep.subr.bf16.mxu0 %v1169_v6  ;;  %1046 = vmatpush3.bf16.msra.mxu1 %v1156_v5 }
  0x43   :  { %762 = vmatmul.mubr.bf16.vlgmr.msra.gmra.mxu0 %v1153_v3 }
  0x44   :  { %1078 = vmatprep.mubr.msk.bf16.mxu0 %vm1170_vm0, %v1169_v6  ;;  %1063 = vmatpush3.bf16.msra.mxu0 %v1160_v9 }
  0x45   :  { %803 = vmatmul.mubr.bf16.vlgmr.msra.gmra.mxu1 %v1157_v7  ;;  %1064 = vmatprep.subr.bf16.mxu0 %v1169_v6 }
  0x48   :  { %1065 = vmatpush3.bf16.msra.mxu0 %v1161_v10 }
  0x49   :  { %1066 = vmatprep.subr.bf16.mxu0 %v1169_v6 }
  0x4c   :  { %1067 = vmatpush3.bf16.msra.mxu0 %v1162_v11 }
  0x4d   :  { %1068 = vmatprep.subr.bf16.mxu0 %v1169_v6 }
  0x50   :  { %1069 = vmatpush3.bf16.msra.mxu0 %v1163_v12 }
  0x51   :  { %1070 = vmatprep.subr.bf16.mxu0 %v1169_v6 }
  0x54   :  { %1071 = vmatpush3.bf16.msra.mxu0 %v1164_v13 }
  0x55   :  { %1072 = vmatprep.subr.bf16.mxu0 %v1169_v6 }
  0x58   :  { %1073 = vmatpush3.bf16.msra.mxu0 %v1165_v14 }
  0x59   :  { %1074 = vmatprep.subr.bf16.mxu0 %v1169_v6 }
  0x5c   :  { %1075 = vmatpush3.bf16.msra.mxu0 %v1166_v15 }
  0x5d   :  { %1076 = vmatprep.subr.bf16.mxu0 %v1169_v6 }
  0x60   :  { %1077 = vmatpush3.bf16.msra.mxu0 %v1167_v16 }
  0x63   :  { %1079 = vmatmul.mubr.bf16.vlgmr.msra.gmra.mxu0 %v1168_v17 }
  0xe3   :  { %v981_v18 = vpop.f32.mrf.mxu0 }
  0xe4   :  { %v1003_v19 = vpop.f32.mrf.mxu1 }
  0xe5   :  { %v982_v20 = vpop.f32.mrf.mxu0 }
  0xe6   :  { %v1004_v21 = vpop.f32.mrf.mxu1  ;;  %v983_v31 = vadd.f32 %v982_v20, %v981_v18 }
  0xe7   :  { %v984_v22 = vpop.f32.mrf.mxu0  ;;  %v1005_v32 = vadd.f32 %v1004_v21, %v1003_v19 }
  0xe8   :  { %v1006_v23 = vpop.f32.mrf.mxu1 }
  0xe9   :  { %v985_v24 = vpop.f32.mrf.mxu0  ;;  %v723_v36 = vadd.f32 %v1005_v32, %v983_v31 }
  0xea   :  { %v1007_v26 = vpop.f32.mrf.mxu1  ;;  %v986_v37 = vadd.f32 %v985_v24, %v984_v22 }
  0xeb   :  { %v1008_v38 = vadd.f32 %v1007_v26, %v1006_v23 }
  0xed   :  { %v726_v43 = vadd.f32 %v1008_v38, %v986_v37 }
 0x103   :  { %v1025_v25 = vpop.f32.mrf.mxu0 }
 0x105   :  { %v1026_v27 = vpop.f32.mrf.mxu0  ;;  %v1047_v28 = vpop.f32.mrf.mxu1 }
 0x106   :  { %v1027_v33 = vadd.f32 %v1026_v27, %v1025_v25 }
 0x107   :  { %v1028_v29 = vpop.f32.mrf.mxu0  ;;  %v1048_v30 = vpop.f32.mrf.mxu1 }
 0x108   :  { %v764_v39 = vadd.f32 %v1027_v33, %v723_v36  ;;  %v1049_v40 = vadd.f32 %v1048_v30, %v1047_v28 }
 0x109   :  { %v1029_v34 = vpop.f32.mrf.mxu0  ;;  %v1050_v35 = vpop.f32.mrf.mxu1 }
 0x10a   :  { %v1030_v41 = vadd.f32 %v1029_v34, %v1028_v29  ;;  %v805_v46 = vadd.f32 %v1049_v40, %v764_v39 }
 0x10b   :  { %v1051_v42 = vpop.f32.mrf.mxu1 }
 0x10c   :  { %v767_v44 = vadd.f32 %v1030_v41, %v726_v43  ;;  %v1052_v45 = vadd.f32 %v1051_v42, %v1050_v35 }
 0x10e   :  { %v808_v50 = vadd.f32 %v1052_v45, %v767_v44 }
 0x123   :  { %v845_v47 = vpop.f32.mrf.mxu0 }
 0x124   :  { %v846_v48 = vadd.f32 %v845_v47, %v805_v46 }
 0x125   :  { %v1080_v49 = vpop.f32.mrf.mxu0 }
 0x126   :  { %852 = vst [vmem:[%s1453_s2] sm:$0xff] %v846_v48  ;;  %v861_v54 = vmul.f32 %v846_v48, %v846_v48 }
 0x127   :  { %v848_v51 = vpop.f32.mrf.mxu0 }
 0x128   :  { %v849_v52 = vadd.f32 %v848_v51, %v808_v50 }
 0x129   :  { %v1081_v53 = vpop.f32.mrf.mxu0 }
 0x12a   :  { %853 = vst [vmem:[%s1453_s2 + $0x8] sm:$0xff] %v849_v52  ;;  %v854_v55 = vadd.f32 %v849_v52, %v846_v48  ;;  %v862_v56 = vmul.f32 %v849_v52, %v849_v52 }
 0x12c   :  { %v855_v57 = vrot.slane %v854_v55, 4  ;;  %v863_v58 = vadd.f32 %v862_v56, %v861_v54 }
 0x12e   :  { %v856_v59 = vadd.f32 %v855_v57, %v854_v55  ;;  %v864_v60 = vrot.slane %v863_v58, 4 }
 0x130   :  { %v857_v61 = vrot.slane %v856_v59, 2  ;;  %v865_v62 = vadd.f32 %v864_v60, %v863_v58 }
 0x132   :  { %v858_v63 = vadd.f32 %v857_v61, %v856_v59  ;;  %v866_v0 = vrot.slane %v865_v62, 2 }
 0x134   :  { %v859_v1 = vrot.slane %v858_v63, 1  ;;  %v867_v2 = vadd.f32 %v866_v0, %v865_v62 }
 0x136   :  { %v860_v3 = vadd.f32 %v859_v1, %v858_v63  ;;  %v868_v4 = vrot.slane %v867_v2, 1 }
 0x138   :  { %v869_v5 = vadd.f32 %v868_v4, %v867_v2  ;;  %870 = vst [vmem:[%s1454_s3] sm:$0xff] %v860_v3 }
 0x13a   :  { %871 = vst [vmem:[%s1455_s4] sm:$0xff] %v869_v5 }

</bundles_post_ra>
